<compile_context>
chip_gen: v6e
topology: v6e:2x2x1
jax: 0.10.0
libtpu: 0.0.40
codegen_flags: <defaults>
</compile_context>

<pallas_src>
import math
import numpy as np
import jax
import jax.numpy as jnp
from jax.experimental import pallas as pl
from jax.experimental.pallas import tpu as pltpu

N_LAYERS = 4            # "n" in flowGAN(n); even n preferred
DIM = 2                 # flow dimensionality (hard-coded 2 in the module)
HIDDEN = 512            # affine2 hidden width
TILE_B = 128            # batch tile (lane-aligned)

LOG_INV_2PI = math.log(1.0 / (2.0 * math.pi))


def _flowgan_kernel(
    lin_w_s, lin_b_s, b2_s, cld_s,            # SMEM: [(n+1)*4], [(n+1)*2], [n*2], [1]
    x_ref, w1_ref, b1_ref, w2t_ref,           # VMEM: [2,tb], [n,H,tb], [n,H,tb], [n,2,H]
    y_ref, lp_ref,                            # VMEM out: [2,tb], [1,tb]
):
    x = x_ref[...]                            # [2, tb] f32, batch on lanes
    y0 = x[0:1, :]                            # [1, tb]
    y1 = x[1:2, :]                            # [1, tb]

    # Fused (LU * ActNorm-scale) 2x2 linear + bias as 4 broadcast FMAs on the VPU.
    def fused_lin(i, a0, a1):
        w00 = lin_w_s[4 * i + 0]
        w01 = lin_w_s[4 * i + 1]
        w10 = lin_w_s[4 * i + 2]
        w11 = lin_w_s[4 * i + 3]
        c0 = lin_b_s[2 * i + 0]
        c1 = lin_b_s[2 * i + 1]
        return a0 * w00 + a1 * w10 + c0, a0 * w01 + a1 * w11 + c1

    y0, y1 = fused_lin(0, y0, y1)             # lin[0] (+ folded ActNorm[0])
    lJ = jnp.zeros_like(y0)                   # per-sample log-det: only the coupling s terms

    for i in range(N_LAYERS):                 # n=4: fully unrolled, sequential dependence
        # ---- affine2 coupling: condition on row 0, transform row 1 ----
        # h[H, tb] = relu(w1[H] * y0[b] + b1[H])  (pure VPU broadcast FMA, f32)
        h = jnp.maximum(w1_ref[i] * y0 + b1_ref[i], 0.0)          # [H, tb]
        # st[2, tb] = w2^T @ h  -- batch on the MXU N axis, bf16 operands, f32 acc.
        st = jnp.dot(w2t_ref[i], h.astype(w2t_ref.dtype),
                     preferred_element_type=jnp.float32)           # [2, tb]
        s = st[0:1, :] + b2_s[2 * i + 0]                           # log-scale [1, tb]
        t = st[1:2, :] + b2_s[2 * i + 1]                           # shift     [1, tb]
        y1 = y1 * jnp.exp(s) + t                                   # exp -> EUP (free slot)
        lJ = lJ + s

        # ---- lin[i+1] (+ folded ActNorm[i+1] except after the last layer) ----
        y0, y1 = fused_lin(i + 1, y0, y1)

    y_ref[...] = jnp.concatenate([y0, y1], axis=0)                 # [2, tb] full-lane store
    lp_ref[...] = (LOG_INV_2PI - 0.5 * (y0 * y0 + y1 * y1)
                   + lJ + cld_s[0])                                # [1, tb] lane-dense


def prepare_params(params, *, tile_b=TILE_B, mxu_dtype=jnp.bfloat16):
    """One-time host/XLA-side folding + kernel-friendly layouts.

    Call this once per parameter set; flowgan_forward reuses the result so the
    ActNorm folding, transposes and lane-broadcasts are not redone per call.
    """
    n, H = N_LAYERS, HIDDEN

    # Fold ActNorm into the preceding LU: (y @ W + b)*s == y @ (W*s) + b*s.
    scale = params["norm_scale"][:, 0, :]                          # [n, 2]
    bias = params["norm_bias"][:, 0, :]                            # [n, 2]
    w_f = params["lin_w"].at[:n].multiply(scale[:, None, :])       # W'_i = W_i * scale_i
    b_f = jnp.concatenate([bias * scale,
                           jnp.zeros((1, DIM), w_f.dtype)], axis=0)  # [n+1, 2]; lin[n] has no fold
    const_ld = (jnp.sum(params["lin_ld"]) + jnp.sum(params["norm_ld"])).reshape(1)

    # Conditioner weights: w1/b1 as columns pre-broadcast along the batch-lane
    # axis (dense one-time DMA, no in-kernel lane broadcast); w2 pre-transposed
    # to [n, 2, H] (lane-dense) in bf16 for the MXU.
    w1c = jnp.broadcast_to(params["aff_w1"].transpose(0, 2, 1), (n, H, tile_b))
    b1c = jnp.broadcast_to(params["aff_b1"].transpose(0, 2, 1), (n, H, tile_b))

    return dict(
        lin_w_s=jnp.asarray(w_f.reshape(-1), jnp.float32),          # [(n+1)*4] SMEM scalars
        lin_b_s=jnp.asarray(b_f.reshape(-1), jnp.float32),          # [(n+1)*2]
        b2_s=jnp.asarray(params["aff_b2"][:, 0, :].reshape(-1), jnp.float32),  # [n*2]
        cld_s=jnp.asarray(const_ld, jnp.float32),                   # [1]
        w1c=jnp.asarray(w1c, jnp.float32),                          # [n, H, tb]
        b1c=jnp.asarray(b1c, jnp.float32),                          # [n, H, tb]
        w2t=jnp.asarray(params["aff_w2"].transpose(0, 2, 1), mxu_dtype),  # [n, 2, H]
    )


def flowgan_forward(x, prep):
    B, D = x.shape
    assert D == DIM
    n, H = N_LAYERS, HIDDEN
    tb = prep["w1c"].shape[-1]

    pad = (-B) % tb
    Bp = B + pad

    xt = x.T.astype(jnp.float32)                                   # [2, B]  batch on lanes
    if pad:
        xt = jnp.pad(xt, ((0, 0), (0, pad)))

    const = lambda shape: pl.BlockSpec(shape, lambda b: (0,) * len(shape))

    y_t, lp = pl.pallas_call(
        _flowgan_kernel,
        out_shape=(
            jax.ShapeDtypeStruct((DIM, Bp), jnp.float32),
            jax.ShapeDtypeStruct((1, Bp), jnp.float32),
        ),
        grid_spec=pltpu.PrefetchScalarGridSpec(
            num_scalar_prefetch=0,
            grid=(Bp // tb,),
            in_specs=[
                pl.BlockSpec(memory_space=pltpu.SMEM),             # fused lin weights
                pl.BlockSpec(memory_space=pltpu.SMEM),             # fused lin biases
                pl.BlockSpec(memory_space=pltpu.SMEM),             # coupling output biases
                pl.BlockSpec(memory_space=pltpu.SMEM),             # summed constant log-det
                pl.BlockSpec((DIM, tb), lambda b: (0, b)),         # x (batch on lanes)
                const((n, H, tb)),                                 # aff_w1 (col, pre-broadcast)
                const((n, H, tb)),                                 # aff_b1 (col, pre-broadcast)
                const((n, DIM, H)),                                # aff_w2^T (lane-dense, bf16)
            ],
            out_specs=[
                pl.BlockSpec((DIM, tb), lambda b: (0, b)),         # y  [2, B]
                pl.BlockSpec((1, tb), lambda b: (0, b)),           # logp [1, B] lane-dense
            ],
        ),
        compiler_params=pltpu.CompilerParams(
            dimension_semantics=("parallel",)),
    )(prep["lin_w_s"], prep["lin_b_s"], prep["b2_s"], prep["cld_s"],
      xt, prep["w1c"], prep["b1c"], prep["w2t"])

    return y_t[:, :B].T, lp[0, :B]


def make_params(seed=0):
    keys = jax.random.split(jax.random.PRNGKey(seed), 6)
    n = N_LAYERS
    lin_w = jnp.eye(DIM, dtype=jnp.float32)[None] + \
        0.1 * jax.random.normal(keys[0], (n + 1, DIM, DIM), jnp.float32)
    lin_ld = jnp.log(jnp.abs(jnp.linalg.det(lin_w))).astype(jnp.float32)        # [n+1]
    norm_scale = 1.0 + 0.1 * jax.random.normal(keys[1], (n, 1, DIM), jnp.float32)
    norm_bias = 0.1 * jax.random.normal(keys[2], (n, 1, DIM), jnp.float32)
    norm_ld = jnp.sum(jnp.log(jnp.abs(norm_scale)), axis=(1, 2)).astype(jnp.float32)  # [n]
    aff_w1 = jax.random.normal(keys[3], (n, 1, HIDDEN), jnp.float32)             # Linear(1,H)
    aff_b1 = 0.01 * jax.random.normal(keys[4], (n, 1, HIDDEN), jnp.float32)
    aff_w2 = 0.01 * jax.random.normal(keys[5], (n, HIDDEN, DIM), jnp.float32)    # Linear(H,2)
    aff_b2 = jnp.zeros((n, 1, DIM), jnp.float32)
    return dict(lin_w=lin_w, lin_ld=lin_ld, norm_scale=norm_scale,
                norm_bias=norm_bias, norm_ld=norm_ld,
                aff_w1=aff_w1, aff_b1=aff_b1, aff_w2=aff_w2, aff_b2=aff_b2)


def flowgan_ref(x, p):
    """Pure-JAX reference mirroring the PyTorch forward exactly (f32 throughout)."""
    y = x @ p["lin_w"][0]
    lJ = jnp.full((x.shape[0],), p["lin_ld"][0])
    for i in range(N_LAYERS):
        y = (y + p["norm_bias"][i, 0]) * p["norm_scale"][i, 0]
        lJ = lJ + p["norm_ld"][i]
        x1 = y[:, 0:1]
        h = jnp.maximum(x1 * p["aff_w1"][i] + p["aff_b1"][i], 0.0)
        st = h @ p["aff_w2"][i] + p["aff_b2"][i, 0]
        s, t = st[:, 0], st[:, 1]
        y = jnp.stack([y[:, 0], y[:, 1] * jnp.exp(s) + t], axis=1)
        lJ = lJ + s
        y = y @ p["lin_w"][i + 1]
        lJ = lJ + p["lin_ld"][i + 1]
    logp = math.log(1.0 / (2.0 * math.pi)) - jnp.sum(y * y, axis=1) / 2.0 + lJ
    return y, logp


if __name__ == "__main__":
    params = make_params(seed=0)
    prep = prepare_params(params)            # one-time folding + layout prep

    fwd = jax.jit(flowgan_forward)

    # Main test: batch = 256 -> two lane-aligned tiles (exercises the "parallel" grid).
    x = jax.random.normal(jax.random.PRNGKey(0), (256, DIM), jnp.float32)
    y, logp = fwd(x, prep)
    jax.block_until_ready((y, logp))

    y_ref, logp_ref = flowgan_ref(x, params)
    # bf16 MXU operands (f32 accumulation) -> slightly looser tolerance than pure f32.
    np.testing.assert_allclose(np.asarray(y), np.asarray(y_ref), rtol=5e-2, atol=5e-2)
    np.testing.assert_allclose(np.asarray(logp), np.asarray(logp_ref), rtol=5e-2, atol=5e-2)

    # Ragged batch: exercises the zero-pad-to-TILE_B path (padded lanes sliced off).
    x2 = jax.random.normal(jax.random.PRNGKey(1), (200, DIM), jnp.float32)
    y2, logp2 = flowgan_forward(x2, prep)
    jax.block_until_ready((y2, logp2))
    y2_ref, logp2_ref = flowgan_ref(x2, params)
    np.testing.assert_allclose(np.asarray(y2), np.asarray(y2_ref), rtol=5e-2, atol=5e-2)
    np.testing.assert_allclose(np.asarray(logp2), np.asarray(logp2_ref), rtol=5e-2, atol=5e-2)

    print("KERNEL_OK")
</pallas_src>

<mosaic_0001>
module attributes {stable_mosaic.version = 11 : i64} {
  func.func @_flowgan_kernel(%arg0: i32, %arg1: memref<20xf32, #tpu.memory_space<smem>>, %arg2: memref<10xf32, #tpu.memory_space<smem>>, %arg3: memref<8xf32, #tpu.memory_space<smem>>, %arg4: memref<1xf32, #tpu.memory_space<smem>>, %arg5: memref<2x128xf32, #tpu.memory_space<vmem>>, %arg6: memref<4x512x128xf32, #tpu.memory_space<vmem>>, %arg7: memref<4x512x128xf32, #tpu.memory_space<vmem>>, %arg8: memref<4x2x512xbf16, #tpu.memory_space<vmem>>, %arg9: memref<2x128xf32, #tpu.memory_space<vmem>>, %arg10: memref<1x128xf32, #tpu.memory_space<vmem>>) attributes {dimension_semantics = [#tpu.dimension_semantics<parallel>], iteration_bounds = array<i64: 2>, scalar_prefetch = 0 : i64, scratch_operands = 0 : i64, tpu.core_type = #tpu.core_type<tc>, window_params = [{transform_indices = @transform_0, window_bounds = array<i64: 20>}, {transform_indices = @transform_1, window_bounds = array<i64: 10>}, {transform_indices = @transform_2, window_bounds = array<i64: 8>}, {transform_indices = @transform_3, window_bounds = array<i64: 1>}, {transform_indices = @transform_4, window_bounds = array<i64: 2, 128>}, {pipeline_mode = #tpu.pipeline_mode<synchronous>, transform_indices = @transform_5, window_bounds = array<i64: 4, 512, 128>}, {pipeline_mode = #tpu.pipeline_mode<synchronous>, transform_indices = @transform_6, window_bounds = array<i64: 4, 512, 128>}, {pipeline_mode = #tpu.pipeline_mode<synchronous>, transform_indices = @transform_7, window_bounds = array<i64: 4, 2, 512>}, {transform_indices = @transform_8, window_bounds = array<i64: 2, 128>}, {transform_indices = @transform_9, window_bounds = array<i64: 1, 128>}]} {
    %c0 = arith.constant 0 : index
    %c0_0 = arith.constant 0 : index
    %0 = vector.load %arg5[%c0, %c0_0] : memref<2x128xf32, #tpu.memory_space<vmem>>, vector<2x128xf32>
    %1 = vector.extract_strided_slice %0 {offsets = [0, 0], sizes = [1, 128], strides = [1, 1]} : vector<2x128xf32> to vector<1x128xf32>
    %2 = vector.extract_strided_slice %0 {offsets = [1, 0], sizes = [1, 128], strides = [1, 1]} : vector<2x128xf32> to vector<1x128xf32>
    %c0_1 = arith.constant 0 : index
    %3 = memref.load %arg1[%c0_1] : memref<20xf32, #tpu.memory_space<smem>>
    %c1 = arith.constant 1 : index
    %4 = memref.load %arg1[%c1] : memref<20xf32, #tpu.memory_space<smem>>
    %c2 = arith.constant 2 : index
    %5 = memref.load %arg1[%c2] : memref<20xf32, #tpu.memory_space<smem>>
    %c3 = arith.constant 3 : index
    %6 = memref.load %arg1[%c3] : memref<20xf32, #tpu.memory_space<smem>>
    %c0_2 = arith.constant 0 : index
    %7 = memref.load %arg2[%c0_2] : memref<10xf32, #tpu.memory_space<smem>>
    %c1_3 = arith.constant 1 : index
    %8 = memref.load %arg2[%c1_3] : memref<10xf32, #tpu.memory_space<smem>>
    %9 = vector.broadcast %3 : f32 to vector<1x128xf32>
    %10 = arith.mulf %1, %9 : vector<1x128xf32>
    %11 = vector.broadcast %5 : f32 to vector<1x128xf32>
    %12 = arith.mulf %2, %11 : vector<1x128xf32>
    %13 = arith.addf %10, %12 : vector<1x128xf32>
    %14 = vector.broadcast %7 : f32 to vector<1x128xf32>
    %15 = arith.addf %13, %14 : vector<1x128xf32>
    %16 = vector.broadcast %4 : f32 to vector<1x128xf32>
    %17 = arith.mulf %1, %16 : vector<1x128xf32>
    %18 = vector.broadcast %6 : f32 to vector<1x128xf32>
    %19 = arith.mulf %2, %18 : vector<1x128xf32>
    %20 = arith.addf %17, %19 : vector<1x128xf32>
    %21 = vector.broadcast %8 : f32 to vector<1x128xf32>
    %22 = arith.addf %20, %21 : vector<1x128xf32>
    %cst = arith.constant 0.000000e+00 : f32
    %23 = vector.broadcast %cst : f32 to vector<1x128xf32>
    %c0_4 = arith.constant 0 : index
    %c0_5 = arith.constant 0 : index
    %c0_6 = arith.constant 0 : index
    %24 = vector.load %arg6[%c0_4, %c0_5, %c0_6] : memref<4x512x128xf32, #tpu.memory_space<vmem>>, vector<1x512x128xf32>
    %25 = vector.shape_cast %24 : vector<1x512x128xf32> to vector<512x128xf32>
    %26 = vector.broadcast %15 : vector<1x128xf32> to vector<512x128xf32>
    %27 = arith.mulf %25, %26 : vector<512x128xf32>
    %c0_7 = arith.constant 0 : index
    %c0_8 = arith.constant 0 : index
    %c0_9 = arith.constant 0 : index
    %28 = vector.load %arg7[%c0_7, %c0_8, %c0_9] : memref<4x512x128xf32, #tpu.memory_space<vmem>>, vector<1x512x128xf32>
    %29 = vector.shape_cast %28 : vector<1x512x128xf32> to vector<512x128xf32>
    %30 = arith.addf %27, %29 : vector<512x128xf32>
    %cst_10 = arith.constant 0.000000e+00 : f32
    %31 = vector.broadcast %cst_10 : f32 to vector<512x128xf32>
    %32 = arith.maximumf %30, %31 : vector<512x128xf32>
    %c0_11 = arith.constant 0 : index
    %c0_12 = arith.constant 0 : index
    %c0_13 = arith.constant 0 : index
    %33 = vector.load %arg8[%c0_11, %c0_12, %c0_13] : memref<4x2x512xbf16, #tpu.memory_space<vmem>>, vector<1x2x512xbf16>
    %34 = vector.shape_cast %33 : vector<1x2x512xbf16> to vector<2x512xbf16>
    %35 = arith.truncf %32 : vector<512x128xf32> to vector<512x128xbf16>
    %cst_14 = arith.constant dense<0.000000e+00> : vector<2x128xf32>
    %36 = tpu.matmul %34, %35, %cst_14 {dimension_numbers = #tpu.dot_dimension_numbers<[1], [0], [0], [1], [0, 0, 1, 1], [], []>} : vector<2x512xbf16>, vector<512x128xbf16>, vector<2x128xf32> -> vector<2x128xf32>
    %37 = vector.extract_strided_slice %36 {offsets = [0, 0], sizes = [1, 128], strides = [1, 1]} : vector<2x128xf32> to vector<1x128xf32>
    %c0_15 = arith.constant 0 : index
    %38 = memref.load %arg3[%c0_15] : memref<8xf32, #tpu.memory_space<smem>>
    %39 = vector.broadcast %38 : f32 to vector<1x128xf32>
    %40 = arith.addf %37, %39 : vector<1x128xf32>
    %41 = vector.extract_strided_slice %36 {offsets = [1, 0], sizes = [1, 128], strides = [1, 1]} : vector<2x128xf32> to vector<1x128xf32>
    %c1_16 = arith.constant 1 : index
    %42 = memref.load %arg3[%c1_16] : memref<8xf32, #tpu.memory_space<smem>>
    %43 = vector.broadcast %42 : f32 to vector<1x128xf32>
    %44 = arith.addf %41, %43 : vector<1x128xf32>
    %45 = math.exp %40 : vector<1x128xf32>
    %46 = arith.mulf %22, %45 : vector<1x128xf32>
    %47 = arith.addf %46, %44 : vector<1x128xf32>
    %48 = arith.addf %23, %40 : vector<1x128xf32>
    %c4 = arith.constant 4 : index
    %49 = memref.load %arg1[%c4] : memref<20xf32, #tpu.memory_space<smem>>
    %c5 = arith.constant 5 : index
    %50 = memref.load %arg1[%c5] : memref<20xf32, #tpu.memory_space<smem>>
    %c6 = arith.constant 6 : index
    %51 = memref.load %arg1[%c6] : memref<20xf32, #tpu.memory_space<smem>>
    %c7 = arith.constant 7 : index
    %52 = memref.load %arg1[%c7] : memref<20xf32, #tpu.memory_space<smem>>
    %c2_17 = arith.constant 2 : index
    %53 = memref.load %arg2[%c2_17] : memref<10xf32, #tpu.memory_space<smem>>
    %c3_18 = arith.constant 3 : index
    %54 = memref.load %arg2[%c3_18] : memref<10xf32, #tpu.memory_space<smem>>
    %55 = vector.broadcast %49 : f32 to vector<1x128xf32>
    %56 = arith.mulf %15, %55 : vector<1x128xf32>
    %57 = vector.broadcast %51 : f32 to vector<1x128xf32>
    %58 = arith.mulf %47, %57 : vector<1x128xf32>
    %59 = arith.addf %56, %58 : vector<1x128xf32>
    %60 = vector.broadcast %53 : f32 to vector<1x128xf32>
    %61 = arith.addf %59, %60 : vector<1x128xf32>
    %62 = vector.broadcast %50 : f32 to vector<1x128xf32>
    %63 = arith.mulf %15, %62 : vector<1x128xf32>
    %64 = vector.broadcast %52 : f32 to vector<1x128xf32>
    %65 = arith.mulf %47, %64 : vector<1x128xf32>
    %66 = arith.addf %63, %65 : vector<1x128xf32>
    %67 = vector.broadcast %54 : f32 to vector<1x128xf32>
    %68 = arith.addf %66, %67 : vector<1x128xf32>
    %c1_19 = arith.constant 1 : index
    %c0_20 = arith.constant 0 : index
    %c0_21 = arith.constant 0 : index
    %69 = vector.load %arg6[%c1_19, %c0_20, %c0_21] : memref<4x512x128xf32, #tpu.memory_space<vmem>>, vector<1x512x128xf32>
    %70 = vector.shape_cast %69 : vector<1x512x128xf32> to vector<512x128xf32>
    %71 = vector.broadcast %61 : vector<1x128xf32> to vector<512x128xf32>
    %72 = arith.mulf %70, %71 : vector<512x128xf32>
    %c1_22 = arith.constant 1 : index
    %c0_23 = arith.constant 0 : index
    %c0_24 = arith.constant 0 : index
    %73 = vector.load %arg7[%c1_22, %c0_23, %c0_24] : memref<4x512x128xf32, #tpu.memory_space<vmem>>, vector<1x512x128xf32>
    %74 = vector.shape_cast %73 : vector<1x512x128xf32> to vector<512x128xf32>
    %75 = arith.addf %72, %74 : vector<512x128xf32>
    %cst_25 = arith.constant 0.000000e+00 : f32
    %76 = vector.broadcast %cst_25 : f32 to vector<512x128xf32>
    %77 = arith.maximumf %75, %76 : vector<512x128xf32>
    %c1_26 = arith.constant 1 : index
    %c0_27 = arith.constant 0 : index
    %c0_28 = arith.constant 0 : index
    %78 = vector.load %arg8[%c1_26, %c0_27, %c0_28] : memref<4x2x512xbf16, #tpu.memory_space<vmem>>, vector<1x2x512xbf16>
    %79 = vector.shape_cast %78 : vector<1x2x512xbf16> to vector<2x512xbf16>
    %80 = arith.truncf %77 : vector<512x128xf32> to vector<512x128xbf16>
    %cst_29 = arith.constant dense<0.000000e+00> : vector<2x128xf32>
    %81 = tpu.matmul %79, %80, %cst_29 {dimension_numbers = #tpu.dot_dimension_numbers<[1], [0], [0], [1], [0, 0, 1, 1], [], []>} : vector<2x512xbf16>, vector<512x128xbf16>, vector<2x128xf32> -> vector<2x128xf32>
    %82 = vector.extract_strided_slice %81 {offsets = [0, 0], sizes = [1, 128], strides = [1, 1]} : vector<2x128xf32> to vector<1x128xf32>
    %c2_30 = arith.constant 2 : index
    %83 = memref.load %arg3[%c2_30] : memref<8xf32, #tpu.memory_space<smem>>
    %84 = vector.broadcast %83 : f32 to vector<1x128xf32>
    %85 = arith.addf %82, %84 : vector<1x128xf32>
    %86 = vector.extract_strided_slice %81 {offsets = [1, 0], sizes = [1, 128], strides = [1, 1]} : vector<2x128xf32> to vector<1x128xf32>
    %c3_31 = arith.constant 3 : index
    %87 = memref.load %arg3[%c3_31] : memref<8xf32, #tpu.memory_space<smem>>
    %88 = vector.broadcast %87 : f32 to vector<1x128xf32>
    %89 = arith.addf %86, %88 : vector<1x128xf32>
    %90 = math.exp %85 : vector<1x128xf32>
    %91 = arith.mulf %68, %90 : vector<1x128xf32>
    %92 = arith.addf %91, %89 : vector<1x128xf32>
    %93 = arith.addf %48, %85 : vector<1x128xf32>
    %c8 = arith.constant 8 : index
    %94 = memref.load %arg1[%c8] : memref<20xf32, #tpu.memory_space<smem>>
    %c9 = arith.constant 9 : index
    %95 = memref.load %arg1[%c9] : memref<20xf32, #tpu.memory_space<smem>>
    %c10 = arith.constant 10 : index
    %96 = memref.load %arg1[%c10] : memref<20xf32, #tpu.memory_space<smem>>
    %c11 = arith.constant 11 : index
    %97 = memref.load %arg1[%c11] : memref<20xf32, #tpu.memory_space<smem>>
    %c4_32 = arith.constant 4 : index
    %98 = memref.load %arg2[%c4_32] : memref<10xf32, #tpu.memory_space<smem>>
    %c5_33 = arith.constant 5 : index
    %99 = memref.load %arg2[%c5_33] : memref<10xf32, #tpu.memory_space<smem>>
    %100 = vector.broadcast %94 : f32 to vector<1x128xf32>
    %101 = arith.mulf %61, %100 : vector<1x128xf32>
    %102 = vector.broadcast %96 : f32 to vector<1x128xf32>
    %103 = arith.mulf %92, %102 : vector<1x128xf32>
    %104 = arith.addf %101, %103 : vector<1x128xf32>
    %105 = vector.broadcast %98 : f32 to vector<1x128xf32>
    %106 = arith.addf %104, %105 : vector<1x128xf32>
    %107 = vector.broadcast %95 : f32 to vector<1x128xf32>
    %108 = arith.mulf %61, %107 : vector<1x128xf32>
    %109 = vector.broadcast %97 : f32 to vector<1x128xf32>
    %110 = arith.mulf %92, %109 : vector<1x128xf32>
    %111 = arith.addf %108, %110 : vector<1x128xf32>
    %112 = vector.broadcast %99 : f32 to vector<1x128xf32>
    %113 = arith.addf %111, %112 : vector<1x128xf32>
    %c2_34 = arith.constant 2 : index
    %c0_35 = arith.constant 0 : index
    %c0_36 = arith.constant 0 : index
    %114 = vector.load %arg6[%c2_34, %c0_35, %c0_36] : memref<4x512x128xf32, #tpu.memory_space<vmem>>, vector<1x512x128xf32>
    %115 = vector.shape_cast %114 : vector<1x512x128xf32> to vector<512x128xf32>
    %116 = vector.broadcast %106 : vector<1x128xf32> to vector<512x128xf32>
    %117 = arith.mulf %115, %116 : vector<512x128xf32>
    %c2_37 = arith.constant 2 : index
    %c0_38 = arith.constant 0 : index
    %c0_39 = arith.constant 0 : index
    %118 = vector.load %arg7[%c2_37, %c0_38, %c0_39] : memref<4x512x128xf32, #tpu.memory_space<vmem>>, vector<1x512x128xf32>
    %119 = vector.shape_cast %118 : vector<1x512x128xf32> to vector<512x128xf32>
    %120 = arith.addf %117, %119 : vector<512x128xf32>
    %cst_40 = arith.constant 0.000000e+00 : f32
    %121 = vector.broadcast %cst_40 : f32 to vector<512x128xf32>
    %122 = arith.maximumf %120, %121 : vector<512x128xf32>
    %c2_41 = arith.constant 2 : index
    %c0_42 = arith.constant 0 : index
    %c0_43 = arith.constant 0 : index
    %123 = vector.load %arg8[%c2_41, %c0_42, %c0_43] : memref<4x2x512xbf16, #tpu.memory_space<vmem>>, vector<1x2x512xbf16>
    %124 = vector.shape_cast %123 : vector<1x2x512xbf16> to vector<2x512xbf16>
    %125 = arith.truncf %122 : vector<512x128xf32> to vector<512x128xbf16>
    %cst_44 = arith.constant dense<0.000000e+00> : vector<2x128xf32>
    %126 = tpu.matmul %124, %125, %cst_44 {dimension_numbers = #tpu.dot_dimension_numbers<[1], [0], [0], [1], [0, 0, 1, 1], [], []>} : vector<2x512xbf16>, vector<512x128xbf16>, vector<2x128xf32> -> vector<2x128xf32>
    %127 = vector.extract_strided_slice %126 {offsets = [0, 0], sizes = [1, 128], strides = [1, 1]} : vector<2x128xf32> to vector<1x128xf32>
    %c4_45 = arith.constant 4 : index
    %128 = memref.load %arg3[%c4_45] : memref<8xf32, #tpu.memory_space<smem>>
    %129 = vector.broadcast %128 : f32 to vector<1x128xf32>
    %130 = arith.addf %127, %129 : vector<1x128xf32>
    %131 = vector.extract_strided_slice %126 {offsets = [1, 0], sizes = [1, 128], strides = [1, 1]} : vector<2x128xf32> to vector<1x128xf32>
    %c5_46 = arith.constant 5 : index
    %132 = memref.load %arg3[%c5_46] : memref<8xf32, #tpu.memory_space<smem>>
    %133 = vector.broadcast %132 : f32 to vector<1x128xf32>
    %134 = arith.addf %131, %133 : vector<1x128xf32>
    %135 = math.exp %130 : vector<1x128xf32>
    %136 = arith.mulf %113, %135 : vector<1x128xf32>
    %137 = arith.addf %136, %134 : vector<1x128xf32>
    %138 = arith.addf %93, %130 : vector<1x128xf32>
    %c12 = arith.constant 12 : index
    %139 = memref.load %arg1[%c12] : memref<20xf32, #tpu.memory_space<smem>>
    %c13 = arith.constant 13 : index
    %140 = memref.load %arg1[%c13] : memref<20xf32, #tpu.memory_space<smem>>
    %c14 = arith.constant 14 : index
    %141 = memref.load %arg1[%c14] : memref<20xf32, #tpu.memory_space<smem>>
    %c15 = arith.constant 15 : index
    %142 = memref.load %arg1[%c15] : memref<20xf32, #tpu.memory_space<smem>>
    %c6_47 = arith.constant 6 : index
    %143 = memref.load %arg2[%c6_47] : memref<10xf32, #tpu.memory_space<smem>>
    %c7_48 = arith.constant 7 : index
    %144 = memref.load %arg2[%c7_48] : memref<10xf32, #tpu.memory_space<smem>>
    %145 = vector.broadcast %139 : f32 to vector<1x128xf32>
    %146 = arith.mulf %106, %145 : vector<1x128xf32>
    %147 = vector.broadcast %141 : f32 to vector<1x128xf32>
    %148 = arith.mulf %137, %147 : vector<1x128xf32>
    %149 = arith.addf %146, %148 : vector<1x128xf32>
    %150 = vector.broadcast %143 : f32 to vector<1x128xf32>
    %151 = arith.addf %149, %150 : vector<1x128xf32>
    %152 = vector.broadcast %140 : f32 to vector<1x128xf32>
    %153 = arith.mulf %106, %152 : vector<1x128xf32>
    %154 = vector.broadcast %142 : f32 to vector<1x128xf32>
    %155 = arith.mulf %137, %154 : vector<1x128xf32>
    %156 = arith.addf %153, %155 : vector<1x128xf32>
    %157 = vector.broadcast %144 : f32 to vector<1x128xf32>
    %158 = arith.addf %156, %157 : vector<1x128xf32>
    %c3_49 = arith.constant 3 : index
    %c0_50 = arith.constant 0 : index
    %c0_51 = arith.constant 0 : index
    %159 = vector.load %arg6[%c3_49, %c0_50, %c0_51] : memref<4x512x128xf32, #tpu.memory_space<vmem>>, vector<1x512x128xf32>
    %160 = vector.shape_cast %159 : vector<1x512x128xf32> to vector<512x128xf32>
    %161 = vector.broadcast %151 : vector<1x128xf32> to vector<512x128xf32>
    %162 = arith.mulf %160, %161 : vector<512x128xf32>
    %c3_52 = arith.constant 3 : index
    %c0_53 = arith.constant 0 : index
    %c0_54 = arith.constant 0 : index
    %163 = vector.load %arg7[%c3_52, %c0_53, %c0_54] : memref<4x512x128xf32, #tpu.memory_space<vmem>>, vector<1x512x128xf32>
    %164 = vector.shape_cast %163 : vector<1x512x128xf32> to vector<512x128xf32>
    %165 = arith.addf %162, %164 : vector<512x128xf32>
    %cst_55 = arith.constant 0.000000e+00 : f32
    %166 = vector.broadcast %cst_55 : f32 to vector<512x128xf32>
    %167 = arith.maximumf %165, %166 : vector<512x128xf32>
    %c3_56 = arith.constant 3 : index
    %c0_57 = arith.constant 0 : index
    %c0_58 = arith.constant 0 : index
    %168 = vector.load %arg8[%c3_56, %c0_57, %c0_58] : memref<4x2x512xbf16, #tpu.memory_space<vmem>>, vector<1x2x512xbf16>
    %169 = vector.shape_cast %168 : vector<1x2x512xbf16> to vector<2x512xbf16>
    %170 = arith.truncf %167 : vector<512x128xf32> to vector<512x128xbf16>
    %cst_59 = arith.constant dense<0.000000e+00> : vector<2x128xf32>
    %171 = tpu.matmul %169, %170, %cst_59 {dimension_numbers = #tpu.dot_dimension_numbers<[1], [0], [0], [1], [0, 0, 1, 1], [], []>} : vector<2x512xbf16>, vector<512x128xbf16>, vector<2x128xf32> -> vector<2x128xf32>
    %172 = vector.extract_strided_slice %171 {offsets = [0, 0], sizes = [1, 128], strides = [1, 1]} : vector<2x128xf32> to vector<1x128xf32>
    %c6_60 = arith.constant 6 : index
    %173 = memref.load %arg3[%c6_60] : memref<8xf32, #tpu.memory_space<smem>>
    %174 = vector.broadcast %173 : f32 to vector<1x128xf32>
    %175 = arith.addf %172, %174 : vector<1x128xf32>
    %176 = vector.extract_strided_slice %171 {offsets = [1, 0], sizes = [1, 128], strides = [1, 1]} : vector<2x128xf32> to vector<1x128xf32>
    %c7_61 = arith.constant 7 : index
    %177 = memref.load %arg3[%c7_61] : memref<8xf32, #tpu.memory_space<smem>>
    %178 = vector.broadcast %177 : f32 to vector<1x128xf32>
    %179 = arith.addf %176, %178 : vector<1x128xf32>
    %180 = math.exp %175 : vector<1x128xf32>
    %181 = arith.mulf %158, %180 : vector<1x128xf32>
    %182 = arith.addf %181, %179 : vector<1x128xf32>
    %183 = arith.addf %138, %175 : vector<1x128xf32>
    %c16 = arith.constant 16 : index
    %184 = memref.load %arg1[%c16] : memref<20xf32, #tpu.memory_space<smem>>
    %c17 = arith.constant 17 : index
    %185 = memref.load %arg1[%c17] : memref<20xf32, #tpu.memory_space<smem>>
    %c18 = arith.constant 18 : index
    %186 = memref.load %arg1[%c18] : memref<20xf32, #tpu.memory_space<smem>>
    %c19 = arith.constant 19 : index
    %187 = memref.load %arg1[%c19] : memref<20xf32, #tpu.memory_space<smem>>
    %c8_62 = arith.constant 8 : index
    %188 = memref.load %arg2[%c8_62] : memref<10xf32, #tpu.memory_space<smem>>
    %c9_63 = arith.constant 9 : index
    %189 = memref.load %arg2[%c9_63] : memref<10xf32, #tpu.memory_space<smem>>
    %190 = vector.broadcast %184 : f32 to vector<1x128xf32>
    %191 = arith.mulf %151, %190 : vector<1x128xf32>
    %192 = vector.broadcast %186 : f32 to vector<1x128xf32>
    %193 = arith.mulf %182, %192 : vector<1x128xf32>
    %194 = arith.addf %191, %193 : vector<1x128xf32>
    %195 = vector.broadcast %188 : f32 to vector<1x128xf32>
    %196 = arith.addf %194, %195 : vector<1x128xf32>
    %197 = vector.broadcast %185 : f32 to vector<1x128xf32>
    %198 = arith.mulf %151, %197 : vector<1x128xf32>
    %199 = vector.broadcast %187 : f32 to vector<1x128xf32>
    %200 = arith.mulf %182, %199 : vector<1x128xf32>
    %201 = arith.addf %198, %200 : vector<1x128xf32>
    %202 = vector.broadcast %189 : f32 to vector<1x128xf32>
    %203 = arith.addf %201, %202 : vector<1x128xf32>
    %204 = tpu.concatenate %196, %203 in 0 : vector<1x128xf32>, vector<1x128xf32> -> vector<2x128xf32>
    %c0_64 = arith.constant 0 : index
    %c0_65 = arith.constant 0 : index
    %205 = vector.load %arg9[%c0_64, %c0_65] : memref<2x128xf32, #tpu.memory_space<vmem>>, vector<2x128xf32>
    tpu.vector_store %arg9[%c0_64, %c0_65], %204 {strides = array<i32>} : memref<2x128xf32, #tpu.memory_space<vmem>>, vector<2x128xf32>,
    %206 = arith.mulf %196, %196 : vector<1x128xf32>
    %207 = arith.mulf %203, %203 : vector<1x128xf32>
    %208 = arith.addf %206, %207 : vector<1x128xf32>
    %cst_66 = arith.constant 5.000000e-01 : f32
    %209 = vector.broadcast %cst_66 : f32 to vector<1x128xf32>
    %210 = arith.mulf %209, %208 : vector<1x128xf32>
    %cst_67 = arith.constant -1.83787704 : f32
    %211 = vector.broadcast %cst_67 : f32 to vector<1x128xf32>
    %212 = arith.subf %211, %210 : vector<1x128xf32>
    %213 = arith.addf %212, %183 : vector<1x128xf32>
    %c0_68 = arith.constant 0 : index
    %214 = memref.load %arg4[%c0_68] : memref<1xf32, #tpu.memory_space<smem>>
    %215 = vector.broadcast %214 : f32 to vector<1x128xf32>
    %216 = arith.addf %213, %215 : vector<1x128xf32>
    %c0_69 = arith.constant 0 : index
    %c0_70 = arith.constant 0 : index
    %217 = vector.load %arg10[%c0_69, %c0_70] : memref<1x128xf32, #tpu.memory_space<vmem>>, vector<1x128xf32>
    tpu.vector_store %arg10[%c0_69, %c0_70], %216 {strides = array<i32>} : memref<1x128xf32, #tpu.memory_space<vmem>>, vector<1x128xf32>,
    return
  }
  func.func @transform_0(%arg0: i32) -> i32 {
    %c0_i32 = arith.constant 0 : i32
    %c0_i32_0 = arith.constant 0 : i32
    return %c0_i32 : i32
  }
  func.func @transform_1(%arg0: i32) -> i32 {
    %c0_i32 = arith.constant 0 : i32
    %c0_i32_0 = arith.constant 0 : i32
    return %c0_i32 : i32
  }
  func.func @transform_2(%arg0: i32) -> i32 {
    %c0_i32 = arith.constant 0 : i32
    %c0_i32_0 = arith.constant 0 : i32
    return %c0_i32 : i32
  }
  func.func @transform_3(%arg0: i32) -> i32 {
    %c0_i32 = arith.constant 0 : i32
    %c0_i32_0 = arith.constant 0 : i32
    return %c0_i32 : i32
  }
  func.func @transform_4(%arg0: i32) -> (i32, i32) {
    %c0_i32 = arith.constant 0 : i32
    %c0_i32_0 = arith.constant 0 : i32
    return %c0_i32, %arg0 : i32, i32
  }
  func.func @transform_5(%arg0: i32) -> (i32, i32, i32) {
    %c0_i32 = arith.constant 0 : i32
    %c0_i32_0 = arith.constant 0 : i32
    %c0_i32_1 = arith.constant 0 : i32
    %c0_i32_2 = arith.constant 0 : i32
    return %c0_i32, %c0_i32_0, %c0_i32_1 : i32, i32, i32
  }
  func.func @transform_6(%arg0: i32) -> (i32, i32, i32) {
    %c0_i32 = arith.constant 0 : i32
    %c0_i32_0 = arith.constant 0 : i32
    %c0_i32_1 = arith.constant 0 : i32
    %c0_i32_2 = arith.constant 0 : i32
    return %c0_i32, %c0_i32_0, %c0_i32_1 : i32, i32, i32
  }
  func.func @transform_7(%arg0: i32) -> (i32, i32, i32) {
    %c0_i32 = arith.constant 0 : i32
    %c0_i32_0 = arith.constant 0 : i32
    %c0_i32_1 = arith.constant 0 : i32
    %c0_i32_2 = arith.constant 0 : i32
    return %c0_i32, %c0_i32_0, %c0_i32_1 : i32, i32, i32
  }
  func.func @transform_8(%arg0: i32) -> (i32, i32) {
    %c0_i32 = arith.constant 0 : i32
    %c0_i32_0 = arith.constant 0 : i32
    return %c0_i32, %arg0 : i32, i32
  }
  func.func @transform_9(%arg0: i32) -> (i32, i32) {
    %c0_i32 = arith.constant 0 : i32
    %c0_i32_0 = arith.constant 0 : i32
    return %c0_i32, %arg0 : i32, i32
  }
}

</mosaic_0001>

<bundles_post_ra>
// kernel: flowgan_forward.1
= control target key start
LH: loop header
LB: loop body
LE: loop exit
PB: predicated region body
PF: predicated region fallthrough
CT: control target
= control target key end

     0   :  { %s3997_s0 = inlined_call_operand.vmem [shape: f32[20], index: 0, kind: input, shape index: {}]   ;;  %s3998_s1 = inlined_call_operand.vmem [shape: f32[10], index: 1, kind: input, shape index: {}]   ;;  %s3999_s2 = inlined_call_operand.vmem [shape: f32[8], index: 2, kind: input, shape index: {}]   ;;  %s4000_s3 = inlined_call_operand.<no memory space> [shape: f32[1], index: 3, kind: input, shape index: {}]   ;;  %s4001_s4 = inlined_call_operand.hbm [shape: f32[2,256], index: 4, kind: input, shape index: {}]   ;;  %s4002_s5 = inlined_call_operand.hbm [shape: f32[4,512,128], index: 5, kind: input, shape index: {}]   ;;  %s4003_s6 = inlined_call_operand.hbm [shape: f32[4,512,128], index: 6, kind: input, shape index: {}]   ;;  %s4004_s7 = inlined_call_operand.hbm [shape: bf16[4,2,512], index: 7, kind: input, shape index: {}]   ;;  %s4005_s8 = inlined_call_operand.hbm [shape: f32[2,256], index: 8, kind: output, shape index: {0}]   ;;  %s4006_s9 = inlined_call_operand.hbm [shape: f32[1,256], index: 9, kind: output, shape index: {1}]  }
   0x1   :  { %4011 = sst [smem:[#allocation26_spill]] %s3997_s0 }
   0x2   :  { %4012 = sst [smem:[#allocation27_spill]] %s3998_s1 }
   0x3   :  { %4013 = sst [smem:[#allocation28_spill]] %s3999_s2 }
   0x4   :  { %15 = sst [smem:[#allocation2]] %s4000_s3 }
   0x5   :  { %16 = vsyncpa [#allocation6], 0 }
   0x6   :  { %17 = vsyncpa [#allocation8], 0 }
   0x7   :  { %18 = vsyncpa [#allocation4], 0 }
   0x8   :  { %20 = vsyncpa [#allocation4 + $0x1], 0 }
   0x9   :  { %21 = vsyncpa [#allocation12], 0 }
   0xa   :  { %22 = vsyncpa [#allocation15], 0 }
   0xb   :  { %23 = vsyncpa [#allocation5], 0 }
   0xc   :  { %25 = vsyncpa [#allocation5 + $0x1], 0 }
   0xd   :  { %26 = vsyncpa [#allocation18], 0 }
   0xe   :  { %28 = vsyncpa [#allocation18 + $0x1], 0  ;;  %s3379_s11 = smov 0   ;;  %s3381_s12 = smov 0  }
   0xf   :  { %s3383_s13 = smov 0   ;;  %s3385_s14 = smov 0  }
  0x10 LB: > { %s4014_s1 = sld [smem:[#allocation27_spill]]  ;;  %s3403_s17 = sadd.s32 4294967295, %s3310_s14   ;;  %s3310_s14 = sphi %s3385_s14, %s4042_s14   ;;  %s3306_s13 = sphi %s3383_s13, %s4041_s13   ;;  %s3302_s12 = sphi %s3381_s12, %s4040_s12   ;;  %s3298_s11 = sphi %s3379_s11, %s4039_s11  }
  0x11   : > { %p2685_p0 = scmp.ge.s32.totalorder %s3310_s14, 1  ;;  %p4007_p1 = scmp.eq.s32.totalorder %s3403_s17, 0 }
  0x12   : > { %p264_p2 = scmp.lt.s32.totalorder %s3310_s14, 3  ;;  %s3312_s19 = smov [#allocation11]  }
  0x13   : > { %s312_s20 = sshll.u32 %s3312_s19, 4  ;;  %s4017_s0 = sld [smem:[#allocation26_spill]]  ;;  %s3415_s20 = int_to_ptr.vmem [resolvable:$true] %s312_s20 }
  0x14   : > { %p3408_p3 = pnand %p2685_p0, %p264_p2  ;;  %s4018_s2 = sld [smem:[#allocation28_spill]] }
  0x16   : > { %s288_s16 = sshll.u32 %s4014_s1, 4  ;;  %p2954_p5 = pneg %p3408_p3  ;;  %s289_s16 = int_to_ptr.vmem [resolvable:$true] %s288_s16 }
  0x17   : > { %s4015_s18 = scalar_select %p3408_p3, 1, 0 }
  0x18   : > { %p3419_p6 = pnand %p2954_p5, %p4007_p1  ;;  %s3049_s28 = scalar_lea.vmem %s289_s16, 16 }
  0x19   : > { %s277_s24 = sshll.u32 %s4017_s0, 4  ;;  %p3050_p7 = scmp.ne.s32.totalorder %s289_s16, %s3049_s28  ;;  %s3426_s24 = int_to_ptr.vmem [resolvable:$true] %s277_s24 }
  0x1a   : > { %s299_s27 = sshll.u32 %s4018_s2, 4  ;;  %p3433_p8 = pneg %p3419_p6  ;;  %s300_s27 = int_to_ptr.vmem [resolvable:$true] %s299_s27 }
  0x1b   : > { %p3057_p11 = scmp.lt.s32.totalorder %s289_s16, %s289_s16  ;;  %p3058_p12 = scmp.lt.s32.totalorder %s3049_s28, %s3049_s28 }
  0x1c   : > { %p3052_p9 = pnand %p3433_p8, %p3050_p7 }
  0x1d   : > { %p3059_p13 = por %p3058_p12, %p3057_p11 }
  0x1e   : > { %p3053_p10 = pneg %p3052_p9 }
  0x20   : > { %p3060_p0 = pnand %p3059_p13, %p3053_p10 }
  0x22   : > { %3063 = shalt.err (!%p3060_p0)
}
  0x23   : > { %s3313_s30 = smov [#allocation7]   ;;  %s3075_s10 = scalar_lea.vmem %s3415_s20, 32768 }
  0x24   : > { %2960 = dma.vmem_to_smem (!%p3419_p6), %s289_s16, 16, %s3313_s30, [#allocation8]  }
  0x25   : > { %p3076_p2 = scmp.ne.s32.totalorder %s3415_s20, %s3075_s10  ;;  %p3083_p7 = scmp.lt.s32.totalorder %s3415_s20, %s3415_s20 }
  0x26   : > { %p3084_p9 = scmp.lt.s32.totalorder %s3075_s10, %s3075_s10 }
  0x27   : > { %p3078_p5 = pnand %p3076_p2, %p3433_p8 }
  0x28   : > { %p3085_p1 = por %p3084_p9, %p3083_p7 }
  0x29   : > { %p3079_p4 = pneg %p3078_p5 }
  0x2b   : > { %p3086_p11 = pnand %p3085_p1, %p3079_p4 }
  0x2d   : > { %3089 = shalt.err (!%p3086_p11)
}
  0x2e   : > { %s3314_s3 = smov 128   ;;  %s3315_s15 = smov 8  }
  0x2f   : > { %2966 = dma.hbm_to_vmem [thread:$0]  (!%p3419_p6), %s4002_s5, 32768, %s3415_s20, [#allocation12], %s3314_s3, %s3314_s3, %s3315_s15  }
  0x30   : > { %s3090_s22 = scalar_lea.vmem %s3426_s24, 16  ;;  %p3098_p12 = scmp.lt.s32.totalorder %s3426_s24, %s3426_s24 }
  0x31   : > { %p3091_p10 = scmp.ne.s32.totalorder %s3426_s24, %s3090_s22  ;;  %p3099_p13 = scmp.lt.s32.totalorder %s3090_s22, %s3090_s22 }
  0x33   : > { %p3093_p1 = pnand %p3091_p10, %p3433_p8  ;;  %p3100_p0 = por %p3099_p13, %p3098_p12 }
  0x35   : > { %p3094_p4 = pneg %p3093_p1 }
  0x37   : > { %p3101_p2 = pnand %p3100_p0, %p3094_p4 }
  0x39   : > { %3104 = shalt.err (!%p3101_p2)
}
  0x3a   : > { %s3316_s23 = smov [#allocation3]   ;;  %s3105_s20 = scalar_lea.vmem %s300_s27, 16 }
  0x3b   : > { %2957 = dma.vmem_to_smem (!%p3419_p6), %s3426_s24, 16, %s3316_s23, [#allocation6]  }
  0x3c   : > { %p3106_p5 = scmp.ne.s32.totalorder %s300_s27, %s3105_s20  ;;  %p3113_p11 = scmp.lt.s32.totalorder %s300_s27, %s300_s27 }
  0x3d   : > { %p3114_p10 = scmp.lt.s32.totalorder %s3105_s20, %s3105_s20 }
  0x3e   : > { %p3108_p7 = pnand %p3106_p5, %p3433_p8 }
  0x3f   : > { %p3115_p1 = por %p3114_p10, %p3113_p11 }
  0x40   : > { %p3109_p9 = pneg %p3108_p7 }
  0x42   : > { %p3116_p4 = pnand %p3115_p1, %p3109_p9 }
  0x44   : > { %3119 = shalt.err (!%p3116_p4)
}
  0x45   : > { %s3317_s28 = smov [#allocation9]   ;;  %s3318_s24 = smov [#allocation13]  }
  0x46   : > { %2963 = dma.vmem_to_smem (!%p3419_p6), %s300_s27, 16, %s3317_s28, [#allocation8]  }
  0x47   : > { %s325_s30 = sshll.u32 %s3318_s24, 4  ;;  %s3319_s10 = smov [#allocation14]   ;;  %s326_s30 = int_to_ptr.vmem [resolvable:$true] %s325_s30 }
  0x48   : > { %s338_s16 = sshll.u32 %s3319_s10, 4  ;;  %s3131_s19 = scalar_lea.vmem %s326_s30, 32768  ;;  %s339_s16 = int_to_ptr.vmem [resolvable:$true] %s338_s16 }
  0x49   : > { %p3132_p12 = scmp.ne.s32.totalorder %s326_s30, %s3131_s19  ;;  %p3139_p2 = scmp.lt.s32.totalorder %s326_s30, %s326_s30 }
  0x4a   : > { %p3140_p5 = scmp.lt.s32.totalorder %s3131_s19, %s3131_s19 }
  0x4b   : > { %p3134_p13 = pnand %p3132_p12, %p3433_p8 }
  0x4c   : > { %p3141_p7 = por %p3140_p5, %p3139_p2 }
  0x4d   : > { %p3135_p0 = pneg %p3134_p13 }
  0x4f   : > { %p3142_p9 = pnand %p3141_p7, %p3135_p0 }
  0x51   : > { %3145 = shalt.err (!%p3142_p9)
}
  0x52   : > { %2969 = dma.hbm_to_vmem [thread:$0]  (!%p3419_p6), %s4003_s6, 32768, %s326_s30, [#allocation12], %s3314_s3, %s3314_s3, %s3315_s15  }
  0x53   : > { %s3157_s23 = scalar_lea.vmem %s339_s16, 256  ;;  %p3165_p4 = scmp.lt.s32.totalorder %s339_s16, %s339_s16 }
  0x54   : > { %p3158_p11 = scmp.ne.s32.totalorder %s339_s16, %s3157_s23  ;;  %p3166_p12 = scmp.lt.s32.totalorder %s3157_s23, %s3157_s23 }
  0x56   : > { %p3160_p10 = pnand %p3158_p11, %p3433_p8  ;;  %p3167_p13 = por %p3166_p12, %p3165_p4 }
  0x58   : > { %p3161_p1 = pneg %p3160_p10 }
  0x5a   : > { %p3168_p0 = pnand %p3167_p13, %p3161_p1 }
  0x5c   : > { %3171 = shalt.err (!%p3168_p0)
}
  0x5d   : > { %s3320_s25 = smov 64   ;;  %s3321_s29 = smov 4  }
  0x5e   : > { %2972 = dma.hbm_to_vmem [thread:$0]  (!%p3419_p6), %s4004_s7, 256, %s339_s16, [#allocation15], %s3320_s25, %s3320_s25, %s3321_s29  }
  0x5f   : > { %s2684_s26 = sadd.s32 4294967294, %s3310_s14   ;;  %s3492_s20 = sadd.s32 1, %s3310_s14  }
  0x60   : > { %s122_s28 = ssub.s32 %s3310_s14, %s3492_s20  ;;  %s125_s24 = sadd.s32 1, %s3306_s13 }
  0x61   : > { %p123_p8 = scmp.eq.s32.totalorder %s122_s28, 0  ;;  %p132_p2 = scmp.ne.s32.totalorder %s3306_s13, %s3302_s12 }
  0x62   : > { %p133_p5 = scmp.eq.s32.totalorder %s3310_s14, 0  ;;  %p138_p7 = scmp.ne.s32.totalorder %s3302_s12, %s3298_s11 }
  0x63   : > { %s3503_s30 = scalar_select %p123_p8, %s3306_s13, %s125_s24  }
  0x64   : > { %p3505_p9 = por %p133_p5, %p132_p2  ;;  %p4021_p11 = scmp.eq.s32.totalorder %s3403_s17, 0 }
  0x65   : > { %p225_p10 = scmp.eq.s32.totalorder %s3403_s17, 1  ;;  %p231_p1 = scmp.eq.s32.totalorder %s2684_s26, 1 }
  0x66   : > { %p3511_p6 = por %p4021_p11, %p138_p7  ;;  %p2990_p4 = scmp.lt.s32.totalorder %s3310_s14, 2 }
  0x67   : > { %s352_s16 = sand.u32 1, %s3306_s13   ;;  %p3518_p12 = por %p225_p10, %p132_p2 }
  0x68   : > { %s4022_s10 = scalar_select %p3511_p6, 1, 0 }
  0x69   : > { %s4023_s19 = scalar_select %p3518_p12, 1, 0 }
  0x6a   : > { %p3522_p13 = por %p231_p1, %p138_p7  ;;  %s2693_s22 = sshll.u32 %s352_s16, 1 }
  0x6b   : > { %s2694_s23 = sshll.u32 %s3310_s14, 5  ;;  %s356_s15 = scalar_lea.vmem [#allocation10], %s2693_s22 }
  0x6c   : > { %s4024_s27 = scalar_select %p3522_p13, 1, 0 }
  0x6d   : > { %s3530_s3 = scalar_lea.hbm %s4001_s4, %s2694_s23  ;;  %s363_s26 = sshll.u32 %s356_s15, 4  ;;  %s364_s26 = int_to_ptr.vmem [resolvable:$true] %s363_s26 }
  0x6e   : > { %p3534_p0 = pnand %p2990_p4, %p3505_p9  ;;  %s353_s24 = scalar_lea.sflag [#allocation4], %s352_s16 }
  0x6f   : > { %s3172_s0 = scalar_lea.hbm %s3530_s3, 32  ;;  %s3177_s29 = scalar_lea.hbm %s4001_s4, 64 }
  0x70   : > { %p3173_p8 = scmp.ne.s32.totalorder %s3530_s3, %s3172_s0  ;;  %p3174_p2 = pneg %p3534_p0 }
  0x71   : > { %p3178_p11 = scmp.lt.s32.totalorder %s3530_s3, %s4001_s4  ;;  %p3179_p9 = scmp.lt.s32.totalorder %s3177_s29, %s3172_s0 }
  0x72   : > { %p3175_p5 = pnand %p3174_p2, %p3173_p8 }
  0x73   : > { %p3180_p10 = por %p3179_p9, %p3178_p11 }
  0x74   : > { %p3176_p7 = pneg %p3175_p5 }
  0x76   : > { %p3181_p1 = pnand %p3180_p10, %p3176_p7 }
  0x78   : > { %3184 = shalt.err (!%p3181_p1)
}
  0x79   : > { %s3185_s21 = scalar_lea.vmem %s364_s26, 32  ;;  %s3322_s16 = smov [#allocation10]  }
  0x7a   : > { %p3186_p4 = scmp.ne.s32.totalorder %s364_s26, %s3185_s21  ;;  %s3190_s1 = sshll.u32 %s3322_s16, 4  ;;  %s3191_s1 = int_to_ptr.vmem [resolvable:$false] %s3190_s1 }
  0x7b   : > { %s3192_s2 = scalar_lea.vmem %s3191_s1, 64  ;;  %p3193_p8 = scmp.lt.s32.totalorder %s364_s26, %s3191_s1 }
  0x7c   : > { %p3188_p13 = pnand %p3186_p4, %p3174_p2  ;;  %p3194_p5 = scmp.lt.s32.totalorder %s3192_s2, %s3185_s21 }
  0x7e   : > { %p3189_p12 = pneg %p3188_p13  ;;  %p3195_p6 = por %p3194_p5, %p3193_p8 }
  0x80   : > { %p3196_p3 = pnand %p3195_p6, %p3189_p12 }
  0x82   : > { %3199 = shalt.err (!%p3196_p3)
}
  0x83   : > { %2976 = dma.hbm_to_vmem [thread:$0]  (!%p3534_p0), %s3530_s3, 32, %s364_s26, %s353_s24  }
  0x84   : > { %p4026_p7 = scmp.ne.s32.totalorder %s4015_s18, 0 }
  0x85   : > { %p4027_p11 = scmp.eq.s32.totalorder (!%p4026_p7), %s3403_s17, 0 }
  0x86   : > { %372 = sbr.rel (%p4026_p7) target bundleno = 1384 (0x568), region = 52 }
  0x8b   : > { %3269 = dma.done.wait (%p4027_p11), [#allocation6], 16   ;;  %p4028_p13 = pmov %p4027_p11 }
  0x8c   : > { %p4029_p2 = pmov %p4027_p11 }
  0x8d   : > { %3271 = vsyncadd (%p4028_p13), [#allocation6], 4294967280 }
  0x8e   : > { %3273 = dma.done.wait (%p4029_p2), [#allocation8], 32   ;;  %p4030_p9 = pmov %p4029_p2 }
  0x8f   : > { %s3563_s0 = sand.u32 1, %s3302_s12   ;;  %p4031_p3 = scmp.ne.s32.totalorder %s4022_s10, 0 }
  0x90   : > { %3275 = vsyncadd (%p4030_p9), [#allocation8], 4294967264  ;;  %s2699_s1 = sshll.u32 %s3563_s0, 1  ;;  %s387_s2 = scalar_lea.sflag [#allocation4], %s3563_s0 }
  0x91   : > { %s390_s18 = scalar_lea.vmem [#allocation10], %s2699_s1 }
  0x92   : > { %3277 = dma.done.wait (%p4031_p3), %s387_s2, 32  }
  0x93   : > { %3279 = vsyncadd (%p4031_p3), %s387_s2, 4294967264  ;;  %p4032_p6 = pmov %p4029_p2 }
  0x94   : > { %p4033_p12 = pmov %p4029_p2 }
  0x95   : > { %3281 = dma.done.wait (%p4032_p6), [#allocation12], 65536  }
  0x96   : > { %3283 = vsyncadd (%p4033_p12), [#allocation12], 4294901760  ;;  %p4034_p0 = pmov %p4029_p2 }
  0x98   : > { %3285 = dma.done.wait (%p4034_p0), [#allocation15], 256   ;;  %p4035_p10 = pmov %p4034_p0 }
  0x9a   : > { %3287 = vsyncadd (%p4035_p10), [#allocation15], 4294967040 }
  0x9b   : > { %407 = sfence }
  0x9c   : > { %s444_s3 = sld [smem:[#allocation3]]  ;;  %v534_v0 = vlaneseq  ;;  %v3581_v1 = vld [vmem:[%s390_s18] sm:$0x3]  ;;  %v3323_v7 = vmov 1966171168   ;;  %v500_v15 = vld [vmem:[#allocation11 + $0xf0] sm:$0xff] }
  0x9d   : > { %s2705_s26 = sld [smem:[#allocation3 + $0x2]]  ;;  %v837_v8 = vunpack.c.l.s4 %v3323_v7  ;;  %v501_v16 = vld [vmem:[#allocation11 + $0xf8] sm:$0xff]  ;;  %v632_v17 = vld [vmem:[#allocation13 + $0xf0] sm:$0xff]  ;;  %v498_v49 = vld [vmem:[#allocation11 + $0xe0] sm:$0xff]  ;;  %vm2482_vm0 = vcmask 1040384   ;;  %p4036_p4 = scmp.ne.s32.totalorder %s4023_s19, 0 }
  0x9e   : > { %s448_s28 = sld [smem:[#allocation7]]  ;;  %v535_v6 = vshrl.u32 %v534_v0, 7  ;;  %v633_v18 = vld [vmem:[#allocation13 + $0xf8] sm:$0xff]  ;;  %v532_v19 = vld [vmem:[#allocation11 + $0x1f0] sm:$0xff]  ;;  %v499_v50 = vld [vmem:[#allocation11 + $0xe8] sm:$0xff] }
  0x9f   : > { %v838_v13 = vunpack.c.0.s8 %v837_v8  ;;  %v533_v20 = vld [vmem:[#allocation11 + $0x1f8] sm:$0xff]  ;;  %v484_v21 = vld [vmem:[#allocation11 + $0x70] sm:$0xff]  ;;  %v630_v51 = vld [vmem:[#allocation13 + $0xe0] sm:$0xff]  ;;  %s936_s10 = sld [smem:[#allocation9]] }
  0xa0   : > { %v3585_v12 = vsub.s32 0, %v535_v6  ;;  %v485_v23 = vld [vmem:[#allocation11 + $0x78] sm:$0xff]  ;;  %v516_v24 = vld [vmem:[#allocation11 + $0x170] sm:$0xff]  ;;  %v530_v56 = vld [vmem:[#allocation11 + $0x1e0] sm:$0xff]  ;;  %s2706_s24 = sld [smem:[#allocation3 + $0x3]] }
  0xa1   : > { %v517_v25 = vld [vmem:[#allocation11 + $0x178] sm:$0xff]  ;;  %v664_v26 = vld [vmem:[#allocation13 + $0x1f0] sm:$0xff]  ;;  %v3593_v29 = vsub.s32 %v838_v13, %v535_v6  ;;  %v531_v57 = vld [vmem:[#allocation11 + $0x1e8] sm:$0xff]  ;;  %s2704_s23 = sld [smem:[#allocation3 + $0x1]] }
  0xa2   : > { %v450_v2 = vstv %s444_s3  ;;  %v665_v27 = vld [vmem:[#allocation13 + $0x1f8] sm:$0xff]  ;;  %v616_v28 = vld [vmem:[#allocation13 + $0x70] sm:$0xff]  ;;  %v631_v62 = vld [vmem:[#allocation13 + $0xe8] sm:$0xff]  ;;  %s2707_s25 = sld [smem:[#allocation7 + $0x1]] }
  0xa3   : > { %v452_v3 = vstv %s2705_s26  ;;  %v451_v4 = vmul.f32 %v450_v2, %v3581_v1  ;;  %v617_v34 = vld [vmem:[#allocation13 + $0x78] sm:$0xff]  ;;  %v648_v35 = vld [vmem:[#allocation13 + $0x170] sm:$0xff]  ;;  %v482_v63 = vld [vmem:[#allocation11 + $0x60] sm:$0xff]  ;;  %s2709_s29 = sld [smem:[#allocation9 + $0x1]] }
  0xa4   : > { %v453_v5 = vmul.f32 %v452_v3, %v3581_v1  ;;  %v458_v10 = vstv %s448_s28  ;;  %v649_v36 = vld [vmem:[#allocation13 + $0x178] sm:$0xff]  ;;  %v663_v6 = vld [vmem:[#allocation13 + $0x1e8] sm:$0xff]  ;;  %v614_v13 = vld [vmem:[#allocation13 + $0x60] sm:$0xff]  ;;  %s2710_s22 = sld [smem:[#allocation3 + $0x4]] }
  0xa5   : > { %v483_v7 = vld [vmem:[#allocation11 + $0x68] sm:$0xff]  ;;  %s2712_s15 = sld [smem:[#allocation3 + $0x6]] }
  0xa6   : > { %v455_v9 = vrot.slane %v453_v5, 1  ;;  %v662_v5 = vld [vmem:[#allocation13 + $0x1e0] sm:$0xff]  ;;  %s2714_s21 = sld [smem:[#allocation7 + $0x2]] }
  0xa7   : > { %s2717_s16 = sld [smem:[#allocation9 + $0x2]] }
  0xa8   : > { %v457_v11 = vadd.f32 %v455_v9, %v451_v4  ;;  %s2711_s2 = sld [smem:[#allocation3 + $0x5]] }
  0xa9   : > { %s2713_s18 = sld [smem:[#allocation3 + $0x7]] }
  0xaa   : > { %v3587_v14 = vadd.f32 %v458_v10, %v457_v11  ;;  %s2718_s3 = sld [smem:[#allocation9 + $0x3]] }
  0xab   : > { %s2715_s26 = sld [smem:[#allocation7 + $0x3]] }
  0xac   : > { %v3591_v22 = vrot.slane %v3587_v14, %v3585_v12  ;;  %s2719_s28 = sld [smem:[#allocation3 + $0x8]] }
  0xae   : > { %v568_v30 = vmul.f32 %v3591_v22, %v500_v15  ;;  %v569_v31 = vmul.f32 %v3591_v22, %v501_v16  ;;  %v600_v32 = vmul.f32 %v3591_v22, %v532_v19  ;;  %v601_v33 = vmul.f32 %v3591_v22, %v533_v20  ;;  %v514_v15 = vld [vmem:[#allocation11 + $0x160] sm:$0xff]  ;;  %v615_v19 = vld [vmem:[#allocation13 + $0x68] sm:$0xff] }
  0xaf   : > { %v552_v37 = vmul.f32 %v3591_v22, %v484_v21  ;;  %v553_v38 = vmul.f32 %v3591_v22, %v485_v23  ;;  %v584_v39 = vmul.f32 %v3591_v22, %v516_v24  ;;  %v585_v40 = vmul.f32 %v3591_v22, %v517_v25  ;;  %v515_v20 = vld [vmem:[#allocation11 + $0x168] sm:$0xff]  ;;  %v646_v25 = vld [vmem:[#allocation13 + $0x160] sm:$0xff] }
  0xb0   : > { %v696_v41 = vadd.f32 %v632_v17, %v568_v30  ;;  %v697_v42 = vadd.f32 %v633_v18, %v569_v31  ;;  %v728_v43 = vadd.f32 %v664_v26, %v600_v32  ;;  %v729_v44 = vadd.f32 %v665_v27, %v601_v33  ;;  %v496_v26 = vld [vmem:[#allocation11 + $0xd0] sm:$0xff]  ;;  %v647_v32 = vld [vmem:[#allocation13 + $0x168] sm:$0xff]  ;;  %v497_v33 = vld [vmem:[#allocation11 + $0xd8] sm:$0xff] }
  0xb1   : > { %v680_v45 = vadd.f32 %v616_v28, %v552_v37  ;;  %v681_v46 = vadd.f32 %v617_v34, %v553_v38  ;;  %v712_v47 = vadd.f32 %v648_v35, %v584_v39  ;;  %v713_v48 = vadd.f32 %v649_v36, %v585_v40  ;;  %v628_v38 = vld [vmem:[#allocation13 + $0xd0] sm:$0xff]  ;;  %v529_v40 = vld [vmem:[#allocation11 + $0x1d8] sm:$0xff] }
  0xb2   : > { %v760_v52 = vmax.f32 %v696_v41, 0.0  ;;  %v761_v53 = vmax.f32 %v697_v42, 0.0  ;;  %v792_v54 = vmax.f32 %v728_v43, 0.0  ;;  %v793_v55 = vmax.f32 %v729_v44, 0.0  ;;  %v528_v39 = vld [vmem:[#allocation11 + $0x1d0] sm:$0xff] }
  0xb3   : > { %v744_v58 = vmax.f32 %v680_v45, 0.0  ;;  %v745_v59 = vmax.f32 %v681_v46, 0.0  ;;  %v776_v60 = vmax.f32 %v712_v47, 0.0  ;;  %v777_v61 = vmax.f32 %v713_v48, 0.0  ;;  %v629_v45 = vld [vmem:[#allocation13 + $0xd8] sm:$0xff]  ;;  %v480_v46 = vld [vmem:[#allocation11 + $0x50] sm:$0xff] }
  0xb4   : > { %v810_v0 = vpack.c.bf16 %v761_v53, %v760_v52  ;;  %v826_v2 = vpack.c.bf16 %v793_v55, %v792_v54  ;;  %v566_v3 = vmul.f32 %v3591_v22, %v498_v49  ;;  %v567_v4 = vmul.f32 %v3591_v22, %v499_v50  ;;  %v661_v52 = vld [vmem:[#allocation13 + $0x1d8] sm:$0xff] }
  0xb5   : > { %v802_v8 = vpack.c.bf16 %v745_v59, %v744_v58  ;;  %v818_v9 = vpack.c.bf16 %v777_v61, %v776_v60  ;;  %v598_v10 = vmul.f32 %v3591_v22, %v530_v56  ;;  %v599_v11 = vmul.f32 %v3591_v22, %v531_v57  ;;  %v481_v53 = vld [vmem:[#allocation11 + $0x58] sm:$0xff]  ;;  %v612_v58 = vld [vmem:[#allocation13 + $0x50] sm:$0xff] }
  0xb6   : > { %2748 = vmatprep.subr.bf16.mxu0 %v810_v0  ;;  %2770 = vmatprep.subr.bf16.mxu1 %v826_v2  ;;  %v694_v16 = vadd.f32 %v630_v51, %v566_v3  ;;  %v695_v17 = vadd.f32 %v631_v62, %v567_v4  ;;  %v550_v18 = vmul.f32 %v3591_v22, %v482_v63  ;;  %v660_v51 = vld [vmem:[#allocation13 + $0x1d0] sm:$0xff]  ;;  %v613_v0 = vld [vmem:[#allocation13 + $0x58] sm:$0xff] }
  0xb7   : > { %2749 = vmatpush3.bf16.msra.mxu0 %v802_v8  ;;  %2771 = vmatpush3.bf16.msra.mxu1 %v818_v9  ;;  %v726_v21 = vadd.f32 %v662_v5, %v598_v10  ;;  %v727_v23 = vadd.f32 %v663_v6, %v599_v11  ;;  %v551_v24 = vmul.f32 %v3591_v22, %v483_v7  ;;  %v512_v59 = vld [vmem:[#allocation11 + $0x150] sm:$0xff]  ;;  %v513_v2 = vld [vmem:[#allocation11 + $0x158] sm:$0xff]  ;;  %v494_v8 = vld [vmem:[#allocation11 + $0xc0] sm:$0xff] }
  0xb8   : > { %v758_v27 = vmax.f32 %v694_v16, 0.0  ;;  %v759_v28 = vmax.f32 %v695_v17, 0.0  ;;  %v678_v30 = vadd.f32 %v614_v13, %v550_v18  ;;  %v582_v31 = vmul.f32 %v3591_v22, %v514_v15  ;;  %v644_v7 = vld [vmem:[#allocation13 + $0x150] sm:$0xff]  ;;  %v645_v15 = vld [vmem:[#allocation13 + $0x158] sm:$0xff]  ;;  %v495_v16 = vld [vmem:[#allocation11 + $0xc8] sm:$0xff] }
  0xb9   : > { %v790_v34 = vmax.f32 %v726_v21, 0.0  ;;  %v791_v35 = vmax.f32 %v727_v23, 0.0  ;;  %v679_v36 = vadd.f32 %v615_v19, %v551_v24  ;;  %v583_v37 = vmul.f32 %v3591_v22, %v515_v20  ;;  %v626_v21 = vld [vmem:[#allocation13 + $0xc0] sm:$0xff]  ;;  %v527_v24 = vld [vmem:[#allocation11 + $0x1c8] sm:$0xff] }
  0xba   : > { %v809_v41 = vpack.c.bf16 %v759_v28, %v758_v27  ;;  %v742_v42 = vmax.f32 %v678_v30, 0.0  ;;  %v710_v43 = vadd.f32 %v646_v25, %v582_v31  ;;  %v564_v44 = vmul.f32 %v3591_v22, %v496_v26  ;;  %v526_v23 = vld [vmem:[#allocation11 + $0x1c0] sm:$0xff]  ;;  %v627_v30 = vld [vmem:[#allocation13 + $0xc8] sm:$0xff] }
  0xbb   : > { %v825_v47 = vpack.c.bf16 %v791_v35, %v790_v34  ;;  %v743_v48 = vmax.f32 %v679_v36, 0.0  ;;  %v711_v49 = vadd.f32 %v647_v32, %v583_v37  ;;  %v565_v50 = vmul.f32 %v3591_v22, %v497_v33  ;;  %v478_v31 = vld [vmem:[#allocation11 + $0x40] sm:$0xff]  ;;  %v659_v37 = vld [vmem:[#allocation13 + $0x1c8] sm:$0xff] }
  0xbc   : > { %2750 = vmatprep.subr.bf16.mxu0 %v809_v41  ;;  %v774_v54 = vmax.f32 %v710_v43, 0.0  ;;  %v692_v55 = vadd.f32 %v628_v38, %v564_v44  ;;  %v596_v56 = vmul.f32 %v3591_v22, %v528_v39  ;;  %v597_v57 = vmul.f32 %v3591_v22, %v529_v40  ;;  %v658_v36 = vld [vmem:[#allocation13 + $0x1c0] sm:$0xff]  ;;  %v479_v38 = vld [vmem:[#allocation11 + $0x48] sm:$0xff] }
  0xbd   : > { %2772 = vmatprep.subr.bf16.mxu1 %v825_v47  ;;  %v801_v60 = vpack.c.bf16 %v743_v48, %v742_v42  ;;  %v775_v61 = vmax.f32 %v711_v49, 0.0  ;;  %v693_v62 = vadd.f32 %v629_v45, %v565_v50  ;;  %v548_v63 = vmul.f32 %v3591_v22, %v480_v46  ;;  %v610_v43 = vld [vmem:[#allocation13 + $0x40] sm:$0xff]  ;;  %v611_v49 = vld [vmem:[#allocation13 + $0x48] sm:$0xff] }
  0xbe   : > { %v756_v3 = vmax.f32 %v692_v55, 0.0  ;;  %v724_v4 = vadd.f32 %v660_v51, %v596_v56  ;;  %v725_v5 = vadd.f32 %v661_v52, %v597_v57  ;;  %v549_v6 = vmul.f32 %v3591_v22, %v481_v53  ;;  %v510_v44 = vld [vmem:[#allocation11 + $0x140] sm:$0xff]  ;;  %v511_v50 = vld [vmem:[#allocation11 + $0x148] sm:$0xff]  ;;  %v492_v56 = vld [vmem:[#allocation11 + $0xb0] sm:$0xff] }
  0xbf   : > { %2751 = vmatpush3.bf16.msra.mxu0 %v801_v60  ;;  %v817_v9 = vpack.c.bf16 %v775_v61, %v774_v54  ;;  %v757_v10 = vmax.f32 %v693_v62, 0.0  ;;  %v676_v11 = vadd.f32 %v612_v58, %v548_v63  ;;  %v580_v13 = vmul.f32 %v3591_v22, %v512_v59  ;;  %v642_v55 = vld [vmem:[#allocation13 + $0x140] sm:$0xff]  ;;  %v643_v61 = vld [vmem:[#allocation13 + $0x148] sm:$0xff]  ;;  %v493_v62 = vld [vmem:[#allocation11 + $0xb8] sm:$0xff] }
  0xc0   : > { %v788_v17 = vmax.f32 %v724_v4, 0.0  ;;  %v789_v18 = vmax.f32 %v725_v5, 0.0  ;;  %v677_v19 = vadd.f32 %v613_v0, %v549_v6  ;;  %v581_v20 = vmul.f32 %v3591_v22, %v513_v2  ;;  %v624_v4 = vld [vmem:[#allocation13 + $0xb0] sm:$0xff]  ;;  %v525_v6 = vld [vmem:[#allocation11 + $0x1b8] sm:$0xff] }
  0xc1   : > { %2773 = vmatpush3.bf16.msra.mxu1 %v817_v9  ;;  %v808_v25 = vpack.c.bf16 %v757_v10, %v756_v3  ;;  %v740_v26 = vmax.f32 %v676_v11, 0.0  ;;  %v708_v27 = vadd.f32 %v644_v7, %v580_v13  ;;  %v562_v28 = vmul.f32 %v3591_v22, %v494_v8  ;;  %v524_v5 = vld [vmem:[#allocation11 + $0x1b0] sm:$0xff]  ;;  %v625_v11 = vld [vmem:[#allocation13 + $0xb8] sm:$0xff] }
  0xc2   : > { %v824_v32 = vpack.c.bf16 %v789_v18, %v788_v17  ;;  %v741_v33 = vmax.f32 %v677_v19, 0.0  ;;  %v709_v34 = vadd.f32 %v645_v15, %v581_v20  ;;  %v563_v35 = vmul.f32 %v3591_v22, %v495_v16  ;;  %v476_v13 = vld [vmem:[#allocation11 + $0x30] sm:$0xff]  ;;  %v657_v20 = vld [vmem:[#allocation13 + $0x1b8] sm:$0xff] }
  0xc3   : > { %2752 = vmatprep.subr.bf16.mxu0 %v808_v25  ;;  %v772_v39 = vmax.f32 %v708_v27, 0.0  ;;  %v690_v40 = vadd.f32 %v626_v21, %v562_v28  ;;  %v594_v41 = vmul.f32 %v3591_v22, %v526_v23  ;;  %v595_v42 = vmul.f32 %v3591_v22, %v527_v24  ;;  %v656_v19 = vld [vmem:[#allocation13 + $0x1b0] sm:$0xff]  ;;  %v477_v21 = vld [vmem:[#allocation11 + $0x38] sm:$0xff] }
  0xc4   : > { %2774 = vmatprep.subr.bf16.mxu1 %v824_v32  ;;  %v800_v45 = vpack.c.bf16 %v741_v33, %v740_v26  ;;  %v773_v46 = vmax.f32 %v709_v34, 0.0  ;;  %v691_v47 = vadd.f32 %v627_v30, %v563_v35  ;;  %v546_v48 = vmul.f32 %v3591_v22, %v478_v31  ;;  %v608_v27 = vld [vmem:[#allocation13 + $0x30] sm:$0xff]  ;;  %v609_v34 = vld [vmem:[#allocation13 + $0x38] sm:$0xff] }
  0xc5   : > { %v754_v51 = vmax.f32 %v690_v40, 0.0  ;;  %v722_v52 = vadd.f32 %v658_v36, %v594_v41  ;;  %v723_v53 = vadd.f32 %v659_v37, %v595_v42  ;;  %v547_v54 = vmul.f32 %v3591_v22, %v479_v38  ;;  %v508_v28 = vld [vmem:[#allocation11 + $0x130] sm:$0xff]  ;;  %v509_v35 = vld [vmem:[#allocation11 + $0x138] sm:$0xff]  ;;  %v490_v41 = vld [vmem:[#allocation11 + $0xa0] sm:$0xff] }
  0xc6   : > { %2753 = vmatpush3.bf16.msra.mxu0 %v800_v45  ;;  %v816_v57 = vpack.c.bf16 %v773_v46, %v772_v39  ;;  %v755_v58 = vmax.f32 %v691_v47, 0.0  ;;  %v674_v59 = vadd.f32 %v610_v43, %v546_v48  ;;  %v578_v60 = vmul.f32 %v3591_v22, %v510_v44  ;;  %v640_v40 = vld [vmem:[#allocation13 + $0x130] sm:$0xff]  ;;  %v641_v46 = vld [vmem:[#allocation13 + $0x138] sm:$0xff]  ;;  %v491_v47 = vld [vmem:[#allocation11 + $0xa8] sm:$0xff] }
  0xc7   : > { %v786_v63 = vmax.f32 %v722_v52, 0.0  ;;  %v787_v0 = vmax.f32 %v723_v53, 0.0  ;;  %v675_v2 = vadd.f32 %v611_v49, %v547_v54  ;;  %v579_v3 = vmul.f32 %v3591_v22, %v511_v50  ;;  %v622_v52 = vld [vmem:[#allocation13 + $0xa0] sm:$0xff]  ;;  %v523_v54 = vld [vmem:[#allocation11 + $0x1a8] sm:$0xff] }
  0xc8   : > { %2775 = vmatpush3.bf16.msra.mxu1 %v816_v57  ;;  %v807_v7 = vpack.c.bf16 %v755_v58, %v754_v51  ;;  %v738_v8 = vmax.f32 %v674_v59, 0.0  ;;  %v706_v9 = vadd.f32 %v642_v55, %v578_v60  ;;  %v560_v10 = vmul.f32 %v3591_v22, %v492_v56  ;;  %v522_v53 = vld [vmem:[#allocation11 + $0x1a0] sm:$0xff]  ;;  %v623_v59 = vld [vmem:[#allocation13 + $0xa8] sm:$0xff] }
  0xc9   : > { %v823_v15 = vpack.c.bf16 %v787_v0, %v786_v63  ;;  %v739_v16 = vmax.f32 %v675_v2, 0.0  ;;  %v707_v17 = vadd.f32 %v643_v61, %v579_v3  ;;  %v561_v18 = vmul.f32 %v3591_v22, %v493_v62  ;;  %v474_v60 = vld [vmem:[#allocation11 + $0x20] sm:$0xff]  ;;  %v655_v3 = vld [vmem:[#allocation13 + $0x1a8] sm:$0xff] }
  0xca   : > { %2754 = vmatprep.subr.bf16.mxu0 %v807_v7  ;;  %v770_v23 = vmax.f32 %v706_v9, 0.0  ;;  %v688_v24 = vadd.f32 %v624_v4, %v560_v10  ;;  %v592_v25 = vmul.f32 %v3591_v22, %v524_v5  ;;  %v593_v26 = vmul.f32 %v3591_v22, %v525_v6  ;;  %v654_v2 = vld [vmem:[#allocation13 + $0x1a0] sm:$0xff]  ;;  %v475_v4 = vld [vmem:[#allocation11 + $0x28] sm:$0xff] }
  0xcb   : > { %2776 = vmatprep.subr.bf16.mxu1 %v823_v15  ;;  %v799_v30 = vpack.c.bf16 %v739_v16, %v738_v8  ;;  %v771_v31 = vmax.f32 %v707_v17, 0.0  ;;  %v689_v32 = vadd.f32 %v625_v11, %v561_v18  ;;  %v544_v33 = vmul.f32 %v3591_v22, %v476_v13  ;;  %v606_v9 = vld [vmem:[#allocation13 + $0x20] sm:$0xff]  ;;  %v607_v17 = vld [vmem:[#allocation13 + $0x28] sm:$0xff] }
  0xcc   : > { %v752_v36 = vmax.f32 %v688_v24, 0.0  ;;  %v720_v37 = vadd.f32 %v656_v19, %v592_v25  ;;  %v721_v38 = vadd.f32 %v657_v20, %v593_v26  ;;  %v545_v39 = vmul.f32 %v3591_v22, %v477_v21  ;;  %v506_v10 = vld [vmem:[#allocation11 + $0x120] sm:$0xff]  ;;  %v507_v18 = vld [vmem:[#allocation11 + $0x128] sm:$0xff]  ;;  %v488_v25 = vld [vmem:[#allocation11 + $0x90] sm:$0xff] }
  0xcd   : > { %2755 = vmatpush3.bf16.msra.mxu0 %v799_v30  ;;  %v815_v42 = vpack.c.bf16 %v771_v31, %v770_v23  ;;  %v753_v43 = vmax.f32 %v689_v32, 0.0  ;;  %v672_v44 = vadd.f32 %v608_v27, %v544_v33  ;;  %v576_v45 = vmul.f32 %v3591_v22, %v508_v28  ;;  %v638_v24 = vld [vmem:[#allocation13 + $0x120] sm:$0xff]  ;;  %v639_v31 = vld [vmem:[#allocation13 + $0x128] sm:$0xff]  ;;  %v489_v32 = vld [vmem:[#allocation11 + $0x98] sm:$0xff] }
  0xce   : > { %v784_v48 = vmax.f32 %v720_v37, 0.0  ;;  %v785_v49 = vmax.f32 %v721_v38, 0.0  ;;  %v673_v50 = vadd.f32 %v609_v34, %v545_v39  ;;  %v577_v51 = vmul.f32 %v3591_v22, %v509_v35  ;;  %v620_v37 = vld [vmem:[#allocation13 + $0x90] sm:$0xff]  ;;  %v521_v39 = vld [vmem:[#allocation11 + $0x198] sm:$0xff] }
  0xcf   : > { %2777 = vmatpush3.bf16.msra.mxu1 %v815_v42  ;;  %v806_v55 = vpack.c.bf16 %v753_v43, %v752_v36  ;;  %v736_v56 = vmax.f32 %v672_v44, 0.0  ;;  %v704_v57 = vadd.f32 %v640_v40, %v576_v45  ;;  %v558_v58 = vmul.f32 %v3591_v22, %v490_v41  ;;  %v520_v38 = vld [vmem:[#allocation11 + $0x190] sm:$0xff]  ;;  %v621_v44 = vld [vmem:[#allocation13 + $0x98] sm:$0xff] }
  0xd0   : > { %v822_v61 = vpack.c.bf16 %v785_v49, %v784_v48  ;;  %v737_v62 = vmax.f32 %v673_v50, 0.0  ;;  %v705_v63 = vadd.f32 %v641_v46, %v577_v51  ;;  %v559_v0 = vmul.f32 %v3591_v22, %v491_v47  ;;  %v472_v45 = vld [vmem:[#allocation11 + $0x10] sm:$0xff]  ;;  %v653_v51 = vld [vmem:[#allocation13 + $0x198] sm:$0xff] }
  0xd1   : > { %2756 = vmatprep.subr.bf16.mxu0 %v806_v55  ;;  %v768_v5 = vmax.f32 %v704_v57, 0.0  ;;  %v686_v6 = vadd.f32 %v622_v52, %v558_v58  ;;  %v590_v7 = vmul.f32 %v3591_v22, %v522_v53  ;;  %v591_v8 = vmul.f32 %v3591_v22, %v523_v54  ;;  %v652_v50 = vld [vmem:[#allocation13 + $0x190] sm:$0xff]  ;;  %v473_v52 = vld [vmem:[#allocation11 + $0x18] sm:$0xff] }
  0xd2   : > { %2778 = vmatprep.subr.bf16.mxu1 %v822_v61  ;;  %v798_v11 = vpack.c.bf16 %v737_v62, %v736_v56  ;;  %v769_v13 = vmax.f32 %v705_v63, 0.0  ;;  %v687_v15 = vadd.f32 %v623_v59, %v559_v0  ;;  %v542_v16 = vmul.f32 %v3591_v22, %v474_v60  ;;  %v604_v57 = vld [vmem:[#allocation13 + $0x10] sm:$0xff]  ;;  %v605_v63 = vld [vmem:[#allocation13 + $0x18] sm:$0xff] }
  0xd3   : > { %v750_v19 = vmax.f32 %v686_v6, 0.0  ;;  %v718_v20 = vadd.f32 %v654_v2, %v590_v7  ;;  %v719_v21 = vadd.f32 %v655_v3, %v591_v8  ;;  %v543_v23 = vmul.f32 %v3591_v22, %v475_v4  ;;  %v504_v58 = vld [vmem:[#allocation11 + $0x110] sm:$0xff]  ;;  %v505_v0 = vld [vmem:[#allocation11 + $0x118] sm:$0xff]  ;;  %v486_v7 = vld [vmem:[#allocation11 + $0x80] sm:$0xff] }
  0xd4   : > { %2757 = vmatpush3.bf16.msra.mxu0 %v798_v11  ;;  %v814_v26 = vpack.c.bf16 %v769_v13, %v768_v5  ;;  %v751_v27 = vmax.f32 %v687_v15, 0.0  ;;  %v670_v28 = vadd.f32 %v606_v9, %v542_v16  ;;  %v574_v30 = vmul.f32 %v3591_v22, %v506_v10  ;;  %v636_v6 = vld [vmem:[#allocation13 + $0x110] sm:$0xff]  ;;  %v637_v13 = vld [vmem:[#allocation13 + $0x118] sm:$0xff]  ;;  %v487_v15 = vld [vmem:[#allocation11 + $0x88] sm:$0xff] }
  0xd5   : > { %v782_v33 = vmax.f32 %v718_v20, 0.0  ;;  %v783_v34 = vmax.f32 %v719_v21, 0.0  ;;  %v671_v35 = vadd.f32 %v607_v17, %v543_v23  ;;  %v575_v36 = vmul.f32 %v3591_v22, %v507_v18  ;;  %v618_v20 = vld [vmem:[#allocation13 + $0x80] sm:$0xff]  ;;  %v519_v23 = vld [vmem:[#allocation11 + $0x188] sm:$0xff] }
  0xd6   : > { %2779 = vmatpush3.bf16.msra.mxu1 %v814_v26  ;;  %v805_v40 = vpack.c.bf16 %v751_v27, %v750_v19  ;;  %v734_v41 = vmax.f32 %v670_v28, 0.0  ;;  %v702_v42 = vadd.f32 %v638_v24, %v574_v30  ;;  %v556_v43 = vmul.f32 %v3591_v22, %v488_v25  ;;  %v518_v21 = vld [vmem:[#allocation11 + $0x180] sm:$0xff]  ;;  %v619_v28 = vld [vmem:[#allocation13 + $0x88] sm:$0xff] }
  0xd7   : > { %v821_v46 = vpack.c.bf16 %v783_v34, %v782_v33  ;;  %v735_v47 = vmax.f32 %v671_v35, 0.0  ;;  %v703_v48 = vadd.f32 %v639_v31, %v575_v36  ;;  %v557_v49 = vmul.f32 %v3591_v22, %v489_v32  ;;  %v470_v30 = vld [vmem:[#allocation11] sm:$0xff]  ;;  %v651_v36 = vld [vmem:[#allocation13 + $0x188] sm:$0xff] }
  0xd8   : > { %2758 = vmatprep.subr.bf16.mxu0 %v805_v40  ;;  %v766_v53 = vmax.f32 %v702_v42, 0.0  ;;  %v684_v54 = vadd.f32 %v620_v37, %v556_v43  ;;  %v588_v55 = vmul.f32 %v3591_v22, %v520_v38  ;;  %v589_v56 = vmul.f32 %v3591_v22, %v521_v39  ;;  %v650_v35 = vld [vmem:[#allocation13 + $0x180] sm:$0xff]  ;;  %v471_v37 = vld [vmem:[#allocation11 + $0x8] sm:$0xff] }
  0xd9   : > { %2780 = vmatprep.subr.bf16.mxu1 %v821_v46  ;;  %v797_v59 = vpack.c.bf16 %v735_v47, %v734_v41  ;;  %v767_v60 = vmax.f32 %v703_v48, 0.0  ;;  %v685_v61 = vadd.f32 %v621_v44, %v557_v49  ;;  %v540_v62 = vmul.f32 %v3591_v22, %v472_v45  ;;  %v602_v42 = vld [vmem:[#allocation13] sm:$0xff]  ;;  %v603_v48 = vld [vmem:[#allocation13 + $0x8] sm:$0xff] }
  0xda   : > { %v748_v2 = vmax.f32 %v684_v54, 0.0  ;;  %v716_v3 = vadd.f32 %v652_v50, %v588_v55  ;;  %v717_v4 = vadd.f32 %v653_v51, %v589_v56  ;;  %v541_v5 = vmul.f32 %v3591_v22, %v473_v52  ;;  %v502_v43 = vld [vmem:[#allocation11 + $0x100] sm:$0xff]  ;;  %v503_v49 = vld [vmem:[#allocation11 + $0x108] sm:$0xff] }
  0xdb   : > { %2759 = vmatpush3.bf16.msra.mxu0 %v797_v59  ;;  %v813_v8 = vpack.c.bf16 %v767_v60, %v766_v53  ;;  %v749_v9 = vmax.f32 %v685_v61, 0.0  ;;  %v668_v10 = vadd.f32 %v604_v57, %v540_v62  ;;  %v572_v11 = vmul.f32 %v3591_v22, %v504_v58  ;;  %v634_v54 = vld [vmem:[#allocation13 + $0x100] sm:$0xff]  ;;  %v635_v60 = vld [vmem:[#allocation13 + $0x108] sm:$0xff] }
  0xdc   : > { %v780_v16 = vmax.f32 %v716_v3, 0.0  ;;  %v781_v17 = vmax.f32 %v717_v4, 0.0  ;;  %v669_v18 = vadd.f32 %v605_v63, %v541_v5  ;;  %v573_v19 = vmul.f32 %v3591_v22, %v505_v0  ;;  %v2708_v55 = vld.sshfl [vmem:[#allocation14] sm:$0x33 pattern:$0x75316420] }
  0xdd   : > { %2781 = vmatpush3.bf16.msra.mxu1 %v813_v8  ;;  %v804_v24 = vpack.c.bf16 %v749_v9, %v748_v2  ;;  %v732_v25 = vmax.f32 %v668_v10, 0.0  ;;  %v700_v26 = vadd.f32 %v636_v6, %v572_v11  ;;  %v554_v27 = vmul.f32 %v3591_v22, %v486_v7 }
  0xde   : > { %v820_v31 = vpack.c.bf16 %v781_v17, %v780_v16  ;;  %v733_v32 = vmax.f32 %v669_v18, 0.0  ;;  %v701_v33 = vadd.f32 %v637_v13, %v573_v19  ;;  %v555_v34 = vmul.f32 %v3591_v22, %v487_v15  ;;  %v3661_v18 = vld.sshfl [vmem:[#allocation14 + $0x4] sm:$0x33 pattern:$0x75316420] }
  0xdf   : > { %2760 = vmatprep.subr.bf16.mxu0 %v804_v24  ;;  %v764_v38 = vmax.f32 %v700_v26, 0.0  ;;  %v682_v39 = vadd.f32 %v618_v20, %v554_v27  ;;  %v586_v40 = vmul.f32 %v3591_v22, %v518_v21  ;;  %v587_v41 = vmul.f32 %v3591_v22, %v519_v23 }
  0xe0   : > { %2782 = vmatprep.subr.bf16.mxu1 %v820_v31  ;;  %v796_v44 = vpack.c.bf16 %v733_v32, %v732_v25  ;;  %v765_v45 = vmax.f32 %v701_v33, 0.0  ;;  %v683_v46 = vadd.f32 %v619_v28, %v555_v34  ;;  %v538_v47 = vmul.f32 %v3591_v22, %v470_v30 }
  0xe1   : > { %v746_v50 = vmax.f32 %v682_v39, 0.0  ;;  %v714_v51 = vadd.f32 %v650_v35, %v586_v40  ;;  %v715_v52 = vadd.f32 %v651_v36, %v587_v41  ;;  %v539_v53 = vmul.f32 %v3591_v22, %v471_v37 }
  0xe2   : > { %2761 = vmatpush3.bf16.msra.mxu0 %v796_v44  ;;  %v812_v56 = vpack.c.bf16 %v765_v45, %v764_v38  ;;  %v747_v57 = vmax.f32 %v683_v46, 0.0  ;;  %v666_v58 = vadd.f32 %v602_v42, %v538_v47  ;;  %v570_v59 = vmul.f32 %v3591_v22, %v502_v43 }
  0xe3   : > { %v778_v61 = vmax.f32 %v714_v51, 0.0  ;;  %v779_v62 = vmax.f32 %v715_v52, 0.0  ;;  %v667_v63 = vadd.f32 %v603_v48, %v539_v53  ;;  %v571_v0 = vmul.f32 %v3591_v22, %v503_v49 }
  0xe4   : > { %2783 = vmatpush3.bf16.msra.mxu1 %v812_v56  ;;  %v803_v2 = vpack.c.bf16 %v747_v57, %v746_v50  ;;  %v730_v3 = vmax.f32 %v666_v58, 0.0  ;;  %v698_v4 = vadd.f32 %v634_v54, %v570_v59  ;;  %v835_v5 = vcombine.high %v2708_v55, %v2708_v55  ;;  %v1001_v57 = vld [vmem:[#allocation11 + $0x2f0] sm:$0xff]  ;;  %v1002_v59 = vld [vmem:[#allocation11 + $0x2f8] sm:$0xff] }
  0xe5   : > { %v819_v6 = vpack.c.bf16 %v779_v62, %v778_v61  ;;  %v731_v7 = vmax.f32 %v667_v63, 0.0  ;;  %v699_v8 = vadd.f32 %v635_v60, %v571_v0  ;;  %v842_v11 = vrot.slane %v2708_v55, %v3593_v29  ;;  %v1033_v60 = vld [vmem:[#allocation11 + $0x3f0] sm:$0xff]  ;;  %v1034_v61 = vld [vmem:[#allocation11 + $0x3f8] sm:$0xff] }
  0xe6   : > { %2762 = vmatprep.subr.bf16.mxu0 %v803_v2  ;;  %v762_v9 = vmax.f32 %v698_v4, 0.0  ;;  %v849_v10 = vrot.slane %v835_v5, %v3593_v29  ;;  %v1338_v19 = vcombine.high %v3661_v18, %v3661_v18  ;;  %v937_v31 = vstv %s936_s10  ;;  %v1134_v62 = vld [vmem:[#allocation13 + $0x2f0] sm:$0xff]  ;;  %v1135_v63 = vld [vmem:[#allocation13 + $0x2f8] sm:$0xff]  ;;  %s2720_s10 = sld [smem:[#allocation3 + $0x9]] }
  0xe7   : > { %2784 = vmatprep.subr.bf16.mxu1 %v819_v6  ;;  %v795_v13 = vpack.c.bf16 %v731_v7, %v730_v3  ;;  %v763_v15 = vmax.f32 %v699_v8, 0.0  ;;  %v850_v17 = vcombine.high %v842_v11, %v842_v11  ;;  %v462_v35 = vstv %s2706_s24  ;;  %v985_v0 = vld [vmem:[#allocation11 + $0x270] sm:$0xff]  ;;  %v986_v3 = vld [vmem:[#allocation11 + $0x278] sm:$0xff]  ;;  %s2721_s24 = sld [smem:[#allocation3 + $0xa]] }
  0xe8   : > { %888 = vmatprep.mubr.bf16.mxu0 %v849_v10  ;;  %v851_v16 = vcombine.high %v849_v10, %v849_v10  ;;  %v1352_v20 = vrot.slane %v1338_v19, %v3593_v29  ;;  %v463_v38 = vmul.f32 %v462_v35, %v3581_v1  ;;  %v460_v40 = vstv %s2704_s23  ;;  %v1017_v4 = vld [vmem:[#allocation11 + $0x370] sm:$0xff]  ;;  %v1018_v5 = vld [vmem:[#allocation11 + $0x378] sm:$0xff]  ;;  %s2722_s23 = sld [smem:[#allocation3 + $0xb]] }
  0xe9   : > { %2763 = vmatpush3.bf16.msra.mxu0 %v795_v13  ;;  %v811_v22 = vpack.c.bf16 %v763_v15, %v762_v9  ;;  %v461_v41 = vmul.f32 %v460_v40, %v3581_v1  ;;  %v468_v44 = vstv %s2707_s25  ;;  %v940_v45 = vstv %s2709_s29  ;;  %v1166_v6 = vld [vmem:[#allocation13 + $0x3f0] sm:$0xff]  ;;  %v1167_v7 = vld [vmem:[#allocation13 + $0x3f8] sm:$0xff]  ;;  %v1032_v40 = vld [vmem:[#allocation11 + $0x3e8] sm:$0xff]  ;;  %s2723_s25 = sld [smem:[#allocation7 + $0x4]] }
  0xea   : > { %928 = vmatprep.mubr.bf16.mxu1 %v851_v16  ;;  %v1354_v21 = vcombine.high %v1352_v20, %v1352_v20  ;;  %v465_v42 = vrot.slane %v463_v38, 1  ;;  %v956_v49 = vstv %s2710_s22  ;;  %v958_v52 = vstv %s2712_s15  ;;  %v1118_v8 = vld [vmem:[#allocation13 + $0x270] sm:$0xff]  ;;  %v1119_v15 = vld [vmem:[#allocation13 + $0x278] sm:$0xff]  ;;  %s2726_s29 = sld [smem:[#allocation9 + $0x4]] }
  0xeb   : > { %2785 = vmatpush3.bf16.msra.mxu1 %v811_v22  ;;  %v957_v54 = vmul.f32 %v956_v49, %v3587_v14  ;;  %v961_v55 = vstv %s2714_s21  ;;  %v1150_v16 = vld [vmem:[#allocation13 + $0x370] sm:$0xff]  ;;  %v1151_v22 = vld [vmem:[#allocation13 + $0x378] sm:$0xff]  ;;  %s2727_s22 = sld [smem:[#allocation9 + $0x5]] }
  0xec   : > { %889 = vmatmul.mubr.bf16.vlgmr.msra.gmra.mxu0 %v842_v11  ;;  %v467_v43 = vadd.f32 %v465_v42, %v461_v41  ;;  %v983_v41 = vld [vmem:[#allocation11 + $0x260] sm:$0xff]  ;;  %s2724_s15 = sld [smem:[#allocation7 + $0x5]] }
  0xed   : > { %1391 = vmatprep.mubr.bf16.mxu0 %v1352_v20  ;;  %s2728_s21 = sld [smem:[#allocation3 + $0xc]] }
  0xee   : > { %929 = vmatmul.mubr.bf16.vlgmr.msra.gmra.mxu1 %v850_v17  ;;  %v469_v46 = vadd.f32 %v468_v44, %v467_v43 }
  0xef   : > { %1431 = vmatprep.mubr.bf16.mxu1 %v1354_v21 }
 0x1ac   : > { %v2764_v23 = vpop.f32.mrf.mxu0 }
 0x1ae   : > { %v2786_v24 = vpop.f32.mrf.mxu1  ;;  %v2765_v25 = vpop.f32.mrf.mxu0 }
 0x1af   : > { %v2766_v26 = vadd.f32 %v2765_v25, %v2764_v23 }
 0x1b0   : > { %v2787_v27 = vpop.f32.mrf.mxu1  ;;  %v2767_v28 = vpop.f32.mrf.mxu0 }
 0x1b1   : > { %v2788_v30 = vadd.f32 %v2787_v27, %v2786_v24 }
 0x1b2   : > { %v2789_v32 = vpop.f32.mrf.mxu1  ;;  %v2768_v33 = vpop.f32.mrf.mxu0 }
 0x1b3   : > { %v931_v34 = vadd.f32 %v2788_v30, %v2766_v26  ;;  %v999_v32 = vld [vmem:[#allocation11 + $0x2e0] sm:$0xff]  ;;  %v1000_v33 = vld [vmem:[#allocation11 + $0x2e8] sm:$0xff] }
 0x1b4   : > { %v2790_v36 = vpop.f32.mrf.mxu1 }
 0x1b5   : > { %v3666_v37 = vadd.f32 %v937_v31, %v931_v34  ;;  %v941_v47 = vadd.f32 %v940_v45, %v931_v34  ;;  %v1031_v34 = vld [vmem:[#allocation11 + $0x3e0] sm:$0xff] }
 0x1b7   : > { %v942_v39 = vmul.f32 1.442695, %v3666_v37  ;;  %v946_v51 = vrot.slane %v941_v47, 1  ;;  %v1133_v47 = vld [vmem:[#allocation13 + $0x2e8] sm:$0xff] }
 0x1b9   : > { %3041 = vpow2.f32 %v942_v39 }
 0x1c6   : > { %v3042_v48 = vpop.eup %3041 }
 0x1c7   : > { %v944_v50 = vmul.f32 %v3042_v48, %v469_v46  ;;  %v1132_v46 = vld [vmem:[#allocation13 + $0x2e0] sm:$0xff] }
 0x1c9   : > { %v3671_v53 = vadd.f32 %v946_v51, %v944_v50 }
 0x1cb   : > { %v959_v1 = vmul.f32 %v958_v52, %v3671_v53  ;;  %v1164_v52 = vld [vmem:[#allocation13 + $0x3e0] sm:$0xff] }
 0x1cd   : > { %v960_v56 = vadd.f32 %v959_v1, %v957_v54  ;;  %v1165_v54 = vld [vmem:[#allocation13 + $0x3e8] sm:$0xff] }
 0x1ce   : > { %v984_v1 = vld [vmem:[#allocation11 + $0x268] sm:$0xff] }
 0x1cf   : > { %v3675_v58 = vadd.f32 %v961_v55, %v960_v56 }
 0x1d1   : > { %v3679_v2 = vrot.slane %v3675_v58, %v3585_v12 }
 0x1d3   : > { %v1069_v9 = vmul.f32 %v3679_v2, %v1001_v57  ;;  %v1070_v10 = vmul.f32 %v3679_v2, %v1002_v59  ;;  %v1101_v11 = vmul.f32 %v3679_v2, %v1033_v60  ;;  %v1102_v13 = vmul.f32 %v3679_v2, %v1034_v61  ;;  %v1116_v60 = vld [vmem:[#allocation13 + $0x260] sm:$0xff] }
 0x1d4   : > { %v1053_v17 = vmul.f32 %v3679_v2, %v985_v0  ;;  %v1054_v19 = vmul.f32 %v3679_v2, %v986_v3  ;;  %v1085_v20 = vmul.f32 %v3679_v2, %v1017_v4  ;;  %v1086_v21 = vmul.f32 %v3679_v2, %v1018_v5  ;;  %v1015_v61 = vld [vmem:[#allocation11 + $0x360] sm:$0xff]  ;;  %v1117_v3 = vld [vmem:[#allocation13 + $0x268] sm:$0xff] }
 0x1d5   : > { %v1198_v23 = vadd.f32 %v1134_v62, %v1069_v9  ;;  %v1199_v24 = vadd.f32 %v1135_v63, %v1070_v10  ;;  %v1230_v25 = vadd.f32 %v1166_v6, %v1101_v11  ;;  %v1231_v26 = vadd.f32 %v1167_v7, %v1102_v13  ;;  %v1016_v4 = vld [vmem:[#allocation11 + $0x368] sm:$0xff]  ;;  %v997_v9 = vld [vmem:[#allocation11 + $0x2d0] sm:$0xff] }
 0x1d6   : > { %v1182_v27 = vadd.f32 %v1118_v8, %v1053_v17  ;;  %v1183_v28 = vadd.f32 %v1119_v15, %v1054_v19  ;;  %v1214_v30 = vadd.f32 %v1150_v16, %v1085_v20  ;;  %v1215_v31 = vadd.f32 %v1151_v22, %v1086_v21  ;;  %v1148_v8 = vld [vmem:[#allocation13 + $0x360] sm:$0xff]  ;;  %v1149_v16 = vld [vmem:[#allocation13 + $0x368] sm:$0xff]  ;;  %v998_v22 = vld [vmem:[#allocation11 + $0x2d8] sm:$0xff] }
 0x1d7   : > { %v1262_v35 = vmax.f32 %v1198_v23, 0.0  ;;  %v1263_v36 = vmax.f32 %v1199_v24, 0.0  ;;  %v1294_v38 = vmax.f32 %v1230_v25, 0.0  ;;  %v1295_v39 = vmax.f32 %v1231_v26, 0.0  ;;  %v1130_v23 = vld [vmem:[#allocation13 + $0x2d0] sm:$0xff]  ;;  %v1030_v25 = vld [vmem:[#allocation11 + $0x3d8] sm:$0xff] }
 0x1d8   : > { %v1246_v42 = vmax.f32 %v1182_v27, 0.0  ;;  %v1247_v43 = vmax.f32 %v1183_v28, 0.0  ;;  %v1278_v44 = vmax.f32 %v1214_v30, 0.0  ;;  %v1279_v45 = vmax.f32 %v1215_v31, 0.0  ;;  %v1029_v24 = vld [vmem:[#allocation11 + $0x3d0] sm:$0xff]  ;;  %v1131_v31 = vld [vmem:[#allocation13 + $0x2d8] sm:$0xff] }
 0x1d9   : > { %v1313_v48 = vpack.c.bf16 %v1263_v36, %v1262_v35  ;;  %v1329_v49 = vpack.c.bf16 %v1295_v39, %v1294_v38  ;;  %v1067_v50 = vmul.f32 %v3679_v2, %v999_v32  ;;  %v1068_v51 = vmul.f32 %v3679_v2, %v1000_v33  ;;  %v981_v32 = vld [vmem:[#allocation11 + $0x250] sm:$0xff]  ;;  %v1163_v39 = vld [vmem:[#allocation13 + $0x3d8] sm:$0xff] }
 0x1da   : > { %v1305_v55 = vpack.c.bf16 %v1247_v43, %v1246_v42  ;;  %v1321_v56 = vpack.c.bf16 %v1279_v45, %v1278_v44  ;;  %v1099_v57 = vmul.f32 %v3679_v2, %v1031_v34  ;;  %v1100_v59 = vmul.f32 %v3679_v2, %v1032_v40  ;;  %v1162_v38 = vld [vmem:[#allocation13 + $0x3d0] sm:$0xff]  ;;  %v982_v40 = vld [vmem:[#allocation11 + $0x258] sm:$0xff] }
 0x1db   : > { %2792 = vmatprep.subr.bf16.mxu0 %v1313_v48  ;;  %2814 = vmatprep.subr.bf16.mxu1 %v1329_v49  ;;  %v1196_v62 = vadd.f32 %v1132_v46, %v1067_v50  ;;  %v1197_v63 = vadd.f32 %v1133_v47, %v1068_v51  ;;  %v1051_v0 = vmul.f32 %v3679_v2, %v983_v41  ;;  %v1114_v45 = vld [vmem:[#allocation13 + $0x250] sm:$0xff]  ;;  %v1115_v51 = vld [vmem:[#allocation13 + $0x258] sm:$0xff] }
 0x1dc   : > { %2793 = vmatpush3.bf16.msra.mxu0 %v1305_v55  ;;  %2815 = vmatpush3.bf16.msra.mxu1 %v1321_v56  ;;  %v1228_v5 = vadd.f32 %v1164_v52, %v1099_v57  ;;  %v1229_v6 = vadd.f32 %v1165_v54, %v1100_v59  ;;  %v1052_v7 = vmul.f32 %v3679_v2, %v984_v1  ;;  %v1013_v46 = vld [vmem:[#allocation11 + $0x350] sm:$0xff]  ;;  %v1014_v52 = vld [vmem:[#allocation11 + $0x358] sm:$0xff]  ;;  %v995_v59 = vld [vmem:[#allocation11 + $0x2c0] sm:$0xff] }
 0x1dd   : > { %v1260_v10 = vmax.f32 %v1196_v62, 0.0  ;;  %v1261_v11 = vmax.f32 %v1197_v63, 0.0  ;;  %v1180_v13 = vadd.f32 %v1116_v60, %v1051_v0  ;;  %v1083_v15 = vmul.f32 %v3679_v2, %v1015_v61  ;;  %v1146_v57 = vld [vmem:[#allocation13 + $0x350] sm:$0xff]  ;;  %v1147_v0 = vld [vmem:[#allocation13 + $0x358] sm:$0xff] }
 0x1de   : > { %v1292_v17 = vmax.f32 %v1228_v5, 0.0  ;;  %v1293_v19 = vmax.f32 %v1229_v6, 0.0  ;;  %v1181_v20 = vadd.f32 %v1117_v3, %v1052_v7  ;;  %v1084_v21 = vmul.f32 %v3679_v2, %v1016_v4  ;;  %v996_v3 = vld [vmem:[#allocation11 + $0x2c8] sm:$0xff] }
 0x1df   : > { %v1312_v26 = vpack.c.bf16 %v1261_v11, %v1260_v10  ;;  %v1244_v27 = vmax.f32 %v1180_v13, 0.0  ;;  %v1212_v28 = vadd.f32 %v1148_v8, %v1083_v15  ;;  %v1065_v30 = vmul.f32 %v3679_v2, %v997_v9  ;;  %v1128_v8 = vld [vmem:[#allocation13 + $0x2c0] sm:$0xff]  ;;  %v1028_v10 = vld [vmem:[#allocation11 + $0x3c8] sm:$0xff] }
 0x1e0   : > { %v1328_v33 = vpack.c.bf16 %v1293_v19, %v1292_v17  ;;  %v1245_v34 = vmax.f32 %v1181_v20, 0.0  ;;  %v1213_v35 = vadd.f32 %v1149_v16, %v1084_v21  ;;  %v1066_v36 = vmul.f32 %v3679_v2, %v998_v22  ;;  %v1027_v9 = vld [vmem:[#allocation11 + $0x3c0] sm:$0xff]  ;;  %v1129_v22 = vld [vmem:[#allocation13 + $0x2c8] sm:$0xff] }
 0x1e1   : > { %2794 = vmatprep.subr.bf16.mxu0 %v1312_v26  ;;  %v1276_v41 = vmax.f32 %v1212_v28, 0.0  ;;  %v1194_v42 = vadd.f32 %v1130_v23, %v1065_v30  ;;  %v1097_v43 = vmul.f32 %v3679_v2, %v1029_v24  ;;  %v1098_v44 = vmul.f32 %v3679_v2, %v1030_v25  ;;  %v979_v17 = vld [vmem:[#allocation11 + $0x240] sm:$0xff]  ;;  %v1161_v25 = vld [vmem:[#allocation13 + $0x3c8] sm:$0xff] }
 0x1e2   : > { %2816 = vmatprep.subr.bf16.mxu1 %v1328_v33  ;;  %v1304_v47 = vpack.c.bf16 %v1245_v34, %v1244_v27  ;;  %v1277_v48 = vmax.f32 %v1213_v35, 0.0  ;;  %v1195_v49 = vadd.f32 %v1131_v31, %v1066_v36  ;;  %v1049_v50 = vmul.f32 %v3679_v2, %v981_v32  ;;  %v1160_v24 = vld [vmem:[#allocation13 + $0x3c0] sm:$0xff]  ;;  %v980_v26 = vld [vmem:[#allocation11 + $0x248] sm:$0xff] }
 0x1e3   : > { %v1258_v54 = vmax.f32 %v1194_v42, 0.0  ;;  %v1226_v1 = vadd.f32 %v1162_v38, %v1097_v43  ;;  %v1227_v55 = vadd.f32 %v1163_v39, %v1098_v44  ;;  %v1050_v56 = vmul.f32 %v3679_v2, %v982_v40  ;;  %v1112_v32 = vld [vmem:[#allocation13 + $0x240] sm:$0xff]  ;;  %v1113_v39 = vld [vmem:[#allocation13 + $0x248] sm:$0xff] }
 0x1e4   : > { %2795 = vmatpush3.bf16.msra.mxu0 %v1304_v47  ;;  %v1320_v60 = vpack.c.bf16 %v1277_v48, %v1276_v41  ;;  %v1259_v61 = vmax.f32 %v1195_v49, 0.0  ;;  %v1178_v62 = vadd.f32 %v1114_v45, %v1049_v50  ;;  %v1081_v63 = vmul.f32 %v3679_v2, %v1013_v46  ;;  %v1011_v33 = vld [vmem:[#allocation11 + $0x340] sm:$0xff]  ;;  %v1012_v40 = vld [vmem:[#allocation11 + $0x348] sm:$0xff]  ;;  %v993_v46 = vld [vmem:[#allocation11 + $0x2b0] sm:$0xff] }
 0x1e5   : > { %v1290_v4 = vmax.f32 %v1226_v1, 0.0  ;;  %v1291_v5 = vmax.f32 %v1227_v55, 0.0  ;;  %v1179_v6 = vadd.f32 %v1115_v51, %v1050_v56  ;;  %v1082_v7 = vmul.f32 %v3679_v2, %v1014_v52  ;;  %v1144_v45 = vld [vmem:[#allocation13 + $0x340] sm:$0xff]  ;;  %v1145_v51 = vld [vmem:[#allocation13 + $0x348] sm:$0xff]  ;;  %v994_v52 = vld [vmem:[#allocation11 + $0x2b8] sm:$0xff] }
 0x1e6   : > { %2817 = vmatpush3.bf16.msra.mxu1 %v1320_v60  ;;  %v1311_v11 = vpack.c.bf16 %v1259_v61, %v1258_v54  ;;  %v1242_v13 = vmax.f32 %v1178_v62, 0.0  ;;  %v1210_v15 = vadd.f32 %v1146_v57, %v1081_v63  ;;  %v1063_v16 = vmul.f32 %v3679_v2, %v995_v59  ;;  %v1126_v57 = vld [vmem:[#allocation13 + $0x2b0] sm:$0xff]  ;;  %v1026_v60 = vld [vmem:[#allocation11 + $0x3b8] sm:$0xff] }
 0x1e7   : > { %v1327_v19 = vpack.c.bf16 %v1291_v5, %v1290_v4  ;;  %v1243_v20 = vmax.f32 %v1179_v6, 0.0  ;;  %v1211_v21 = vadd.f32 %v1147_v0, %v1082_v7  ;;  %v1064_v23 = vmul.f32 %v3679_v2, %v996_v3  ;;  %v1025_v59 = vld [vmem:[#allocation11 + $0x3b0] sm:$0xff]  ;;  %v1127_v3 = vld [vmem:[#allocation13 + $0x2b8] sm:$0xff] }
 0x1e8   : > { %2796 = vmatprep.subr.bf16.mxu0 %v1311_v11  ;;  %v1274_v27 = vmax.f32 %v1210_v15, 0.0  ;;  %v1192_v28 = vadd.f32 %v1128_v8, %v1063_v16  ;;  %v1095_v30 = vmul.f32 %v3679_v2, %v1027_v9  ;;  %v1096_v31 = vmul.f32 %v3679_v2, %v1028_v10  ;;  %v977_v4 = vld [vmem:[#allocation11 + $0x230] sm:$0xff]  ;;  %v1159_v10 = vld [vmem:[#allocation13 + $0x3b8] sm:$0xff] }
 0x1e9   : > { %2818 = vmatprep.subr.bf16.mxu1 %v1327_v19  ;;  %v1303_v34 = vpack.c.bf16 %v1243_v20, %v1242_v13  ;;  %v1275_v35 = vmax.f32 %v1211_v21, 0.0  ;;  %v1193_v36 = vadd.f32 %v1129_v22, %v1064_v23  ;;  %v1047_v38 = vmul.f32 %v3679_v2, %v979_v17  ;;  %v1158_v9 = vld [vmem:[#allocation13 + $0x3b0] sm:$0xff]  ;;  %v978_v11 = vld [vmem:[#allocation11 + $0x238] sm:$0xff] }
 0x1ea   : > { %v1256_v41 = vmax.f32 %v1192_v28, 0.0  ;;  %v1224_v42 = vadd.f32 %v1160_v24, %v1095_v30  ;;  %v1225_v43 = vadd.f32 %v1161_v25, %v1096_v31  ;;  %v1048_v44 = vmul.f32 %v3679_v2, %v980_v26  ;;  %v1110_v17 = vld [vmem:[#allocation13 + $0x230] sm:$0xff]  ;;  %v1111_v25 = vld [vmem:[#allocation13 + $0x238] sm:$0xff] }
 0x1eb   : > { %2797 = vmatpush3.bf16.msra.mxu0 %v1303_v34  ;;  %v1319_v47 = vpack.c.bf16 %v1275_v35, %v1274_v27  ;;  %v1257_v48 = vmax.f32 %v1193_v36, 0.0  ;;  %v1176_v49 = vadd.f32 %v1112_v32, %v1047_v38  ;;  %v1079_v50 = vmul.f32 %v3679_v2, %v1011_v33  ;;  %v1009_v19 = vld [vmem:[#allocation11 + $0x330] sm:$0xff]  ;;  %v1010_v26 = vld [vmem:[#allocation11 + $0x338] sm:$0xff]  ;;  %v991_v33 = vld [vmem:[#allocation11 + $0x2a0] sm:$0xff] }
 0x1ec   : > { %v1288_v54 = vmax.f32 %v1224_v42, 0.0  ;;  %v1289_v1 = vmax.f32 %v1225_v43, 0.0  ;;  %v1177_v55 = vadd.f32 %v1113_v39, %v1048_v44  ;;  %v1080_v56 = vmul.f32 %v3679_v2, %v1012_v40  ;;  %v1142_v32 = vld [vmem:[#allocation13 + $0x330] sm:$0xff]  ;;  %v1143_v39 = vld [vmem:[#allocation13 + $0x338] sm:$0xff]  ;;  %v992_v40 = vld [vmem:[#allocation11 + $0x2a8] sm:$0xff] }
 0x1ed   : > { %2819 = vmatpush3.bf16.msra.mxu1 %v1319_v47  ;;  %v1310_v61 = vpack.c.bf16 %v1257_v48, %v1256_v41  ;;  %v1240_v62 = vmax.f32 %v1176_v49, 0.0  ;;  %v1208_v63 = vadd.f32 %v1144_v45, %v1079_v50  ;;  %v1061_v0 = vmul.f32 %v3679_v2, %v993_v46  ;;  %v1124_v45 = vld [vmem:[#allocation13 + $0x2a0] sm:$0xff]  ;;  %v1024_v47 = vld [vmem:[#allocation11 + $0x3a8] sm:$0xff] }
 0x1ee   : > { %v1326_v5 = vpack.c.bf16 %v1289_v1, %v1288_v54  ;;  %v1241_v6 = vmax.f32 %v1177_v55, 0.0  ;;  %v1209_v7 = vadd.f32 %v1145_v51, %v1080_v56  ;;  %v1062_v8 = vmul.f32 %v3679_v2, %v994_v52  ;;  %v1023_v46 = vld [vmem:[#allocation11 + $0x3a0] sm:$0xff]  ;;  %v1125_v52 = vld [vmem:[#allocation13 + $0x2a8] sm:$0xff] }
 0x1ef   : > { %2798 = vmatprep.subr.bf16.mxu0 %v1310_v61  ;;  %v1272_v13 = vmax.f32 %v1208_v63, 0.0  ;;  %v1190_v15 = vadd.f32 %v1126_v57, %v1061_v0  ;;  %v1093_v16 = vmul.f32 %v3679_v2, %v1025_v59  ;;  %v1094_v22 = vmul.f32 %v3679_v2, %v1026_v60  ;;  %v975_v54 = vld [vmem:[#allocation11 + $0x220] sm:$0xff]  ;;  %v1157_v60 = vld [vmem:[#allocation13 + $0x3a8] sm:$0xff] }
 0x1f0   : > { %2820 = vmatprep.subr.bf16.mxu1 %v1326_v5  ;;  %v1302_v20 = vpack.c.bf16 %v1241_v6, %v1240_v62  ;;  %v1273_v21 = vmax.f32 %v1209_v7, 0.0  ;;  %v1191_v23 = vadd.f32 %v1127_v3, %v1062_v8  ;;  %v1045_v24 = vmul.f32 %v3679_v2, %v977_v4  ;;  %v1156_v59 = vld [vmem:[#allocation13 + $0x3a0] sm:$0xff]  ;;  %v976_v61 = vld [vmem:[#allocation11 + $0x228] sm:$0xff] }
 0x1f1   : > { %v1254_v27 = vmax.f32 %v1190_v15, 0.0  ;;  %v1222_v28 = vadd.f32 %v1158_v9, %v1093_v16  ;;  %v1223_v30 = vadd.f32 %v1159_v10, %v1094_v22  ;;  %v1046_v31 = vmul.f32 %v3679_v2, %v978_v11  ;;  %v1108_v4 = vld [vmem:[#allocation13 + $0x220] sm:$0xff]  ;;  %v1109_v10 = vld [vmem:[#allocation13 + $0x228] sm:$0xff] }
 0x1f2   : > { %2799 = vmatpush3.bf16.msra.mxu0 %v1302_v20  ;;  %v1318_v34 = vpack.c.bf16 %v1273_v21, %v1272_v13  ;;  %v1255_v35 = vmax.f32 %v1191_v23, 0.0  ;;  %v1174_v36 = vadd.f32 %v1110_v17, %v1045_v24  ;;  %v1077_v38 = vmul.f32 %v3679_v2, %v1009_v19  ;;  %v1007_v5 = vld [vmem:[#allocation11 + $0x320] sm:$0xff]  ;;  %v1008_v11 = vld [vmem:[#allocation11 + $0x328] sm:$0xff]  ;;  %v989_v19 = vld [vmem:[#allocation11 + $0x290] sm:$0xff] }
 0x1f3   : > { %v1286_v41 = vmax.f32 %v1222_v28, 0.0  ;;  %v1287_v42 = vmax.f32 %v1223_v30, 0.0  ;;  %v1175_v43 = vadd.f32 %v1111_v25, %v1046_v31  ;;  %v1078_v44 = vmul.f32 %v3679_v2, %v1010_v26  ;;  %v1140_v17 = vld [vmem:[#allocation13 + $0x320] sm:$0xff]  ;;  %v1141_v25 = vld [vmem:[#allocation13 + $0x328] sm:$0xff]  ;;  %v990_v26 = vld [vmem:[#allocation11 + $0x298] sm:$0xff] }
 0x1f4   : > { %2821 = vmatpush3.bf16.msra.mxu1 %v1318_v34  ;;  %v1309_v48 = vpack.c.bf16 %v1255_v35, %v1254_v27  ;;  %v1238_v49 = vmax.f32 %v1174_v36, 0.0  ;;  %v1206_v50 = vadd.f32 %v1142_v32, %v1077_v38  ;;  %v1059_v51 = vmul.f32 %v3679_v2, %v991_v33  ;;  %v1122_v32 = vld [vmem:[#allocation13 + $0x290] sm:$0xff]  ;;  %v1022_v34 = vld [vmem:[#allocation11 + $0x398] sm:$0xff] }
 0x1f5   : > { %v1325_v1 = vpack.c.bf16 %v1287_v42, %v1286_v41  ;;  %v1239_v55 = vmax.f32 %v1175_v43, 0.0  ;;  %v1207_v56 = vadd.f32 %v1143_v39, %v1078_v44  ;;  %v1060_v57 = vmul.f32 %v3679_v2, %v992_v40  ;;  %v1021_v33 = vld [vmem:[#allocation11 + $0x390] sm:$0xff]  ;;  %v1123_v40 = vld [vmem:[#allocation13 + $0x298] sm:$0xff] }
 0x1f6   : > { %2800 = vmatprep.subr.bf16.mxu0 %v1309_v48  ;;  %v1270_v62 = vmax.f32 %v1206_v50, 0.0  ;;  %v1188_v63 = vadd.f32 %v1124_v45, %v1059_v51  ;;  %v1091_v0 = vmul.f32 %v3679_v2, %v1023_v46  ;;  %v1092_v3 = vmul.f32 %v3679_v2, %v1024_v47  ;;  %v973_v41 = vld [vmem:[#allocation11 + $0x210] sm:$0xff]  ;;  %v1155_v47 = vld [vmem:[#allocation13 + $0x398] sm:$0xff] }
 0x1f7   : > { %2822 = vmatprep.subr.bf16.mxu1 %v1325_v1  ;;  %v1301_v6 = vpack.c.bf16 %v1239_v55, %v1238_v49  ;;  %v1271_v7 = vmax.f32 %v1207_v56, 0.0  ;;  %v1189_v8 = vadd.f32 %v1125_v52, %v1060_v57  ;;  %v1043_v9 = vmul.f32 %v3679_v2, %v975_v54  ;;  %v1154_v46 = vld [vmem:[#allocation13 + $0x390] sm:$0xff]  ;;  %v974_v48 = vld [vmem:[#allocation11 + $0x218] sm:$0xff] }
 0x1f8   : > { %v1252_v13 = vmax.f32 %v1188_v63, 0.0  ;;  %v1220_v15 = vadd.f32 %v1156_v59, %v1091_v0  ;;  %v1221_v16 = vadd.f32 %v1157_v60, %v1092_v3  ;;  %v1044_v22 = vmul.f32 %v3679_v2, %v976_v61  ;;  %v1106_v54 = vld [vmem:[#allocation13 + $0x210] sm:$0xff]  ;;  %v1107_v60 = vld [vmem:[#allocation13 + $0x218] sm:$0xff] }
 0x1f9   : > { %2801 = vmatpush3.bf16.msra.mxu0 %v1301_v6  ;;  %v1317_v20 = vpack.c.bf16 %v1271_v7, %v1270_v62  ;;  %v1253_v21 = vmax.f32 %v1189_v8, 0.0  ;;  %v1172_v23 = vadd.f32 %v1108_v4, %v1043_v9  ;;  %v1075_v24 = vmul.f32 %v3679_v2, %v1007_v5  ;;  %v1005_v1 = vld [vmem:[#allocation11 + $0x310] sm:$0xff]  ;;  %v1006_v61 = vld [vmem:[#allocation11 + $0x318] sm:$0xff]  ;;  %v987_v5 = vld [vmem:[#allocation11 + $0x280] sm:$0xff] }
 0x1fa   : > { %v1284_v27 = vmax.f32 %v1220_v15, 0.0  ;;  %v1285_v28 = vmax.f32 %v1221_v16, 0.0  ;;  %v1173_v30 = vadd.f32 %v1109_v10, %v1044_v22  ;;  %v1076_v31 = vmul.f32 %v3679_v2, %v1008_v11  ;;  %v1138_v4 = vld [vmem:[#allocation13 + $0x310] sm:$0xff]  ;;  %v1139_v10 = vld [vmem:[#allocation13 + $0x318] sm:$0xff]  ;;  %v988_v11 = vld [vmem:[#allocation11 + $0x288] sm:$0xff] }
 0x1fb   : > { %2823 = vmatpush3.bf16.msra.mxu1 %v1317_v20  ;;  %v1308_v35 = vpack.c.bf16 %v1253_v21, %v1252_v13  ;;  %v1236_v36 = vmax.f32 %v1172_v23, 0.0  ;;  %v1204_v38 = vadd.f32 %v1140_v17, %v1075_v24  ;;  %v1057_v39 = vmul.f32 %v3679_v2, %v989_v19  ;;  %v1120_v17 = vld [vmem:[#allocation13 + $0x280] sm:$0xff]  ;;  %v1020_v20 = vld [vmem:[#allocation11 + $0x388] sm:$0xff] }
 0x1fc   : > { %v1324_v42 = vpack.c.bf16 %v1285_v28, %v1284_v27  ;;  %v1237_v43 = vmax.f32 %v1173_v30, 0.0  ;;  %v1205_v44 = vadd.f32 %v1141_v25, %v1076_v31  ;;  %v1058_v45 = vmul.f32 %v3679_v2, %v990_v26  ;;  %v1019_v19 = vld [vmem:[#allocation11 + $0x380] sm:$0xff]  ;;  %v1121_v26 = vld [vmem:[#allocation13 + $0x288] sm:$0xff] }
 0x1fd   : > { %2802 = vmatprep.subr.bf16.mxu0 %v1308_v35  ;;  %v1268_v49 = vmax.f32 %v1204_v38, 0.0  ;;  %v1186_v50 = vadd.f32 %v1122_v32, %v1057_v39  ;;  %v1089_v51 = vmul.f32 %v3679_v2, %v1021_v33  ;;  %v1090_v52 = vmul.f32 %v3679_v2, %v1022_v34  ;;  %v971_v27 = vld [vmem:[#allocation11 + $0x200] sm:$0xff]  ;;  %v1153_v34 = vld [vmem:[#allocation13 + $0x388] sm:$0xff] }
 0x1fe   : > { %2824 = vmatprep.subr.bf16.mxu1 %v1324_v42  ;;  %v1300_v55 = vpack.c.bf16 %v1237_v43, %v1236_v36  ;;  %v1269_v56 = vmax.f32 %v1205_v44, 0.0  ;;  %v1187_v57 = vadd.f32 %v1123_v40, %v1058_v45  ;;  %v1041_v59 = vmul.f32 %v3679_v2, %v973_v41  ;;  %v1152_v33 = vld [vmem:[#allocation13 + $0x380] sm:$0xff]  ;;  %v972_v35 = vld [vmem:[#allocation11 + $0x208] sm:$0xff] }
 0x1ff   : > { %v1250_v62 = vmax.f32 %v1186_v50, 0.0  ;;  %v1218_v63 = vadd.f32 %v1154_v46, %v1089_v51  ;;  %v1219_v0 = vadd.f32 %v1155_v47, %v1090_v52  ;;  %v1042_v3 = vmul.f32 %v3679_v2, %v974_v48  ;;  %v1104_v41 = vld [vmem:[#allocation13 + $0x200] sm:$0xff]  ;;  %v1105_v47 = vld [vmem:[#allocation13 + $0x208] sm:$0xff] }
 0x200   : > { %2803 = vmatpush3.bf16.msra.mxu0 %v1300_v55  ;;  %v1316_v6 = vpack.c.bf16 %v1269_v56, %v1268_v49  ;;  %v1251_v7 = vmax.f32 %v1187_v57, 0.0  ;;  %v1170_v8 = vadd.f32 %v1106_v54, %v1041_v59  ;;  %v1073_v9 = vmul.f32 %v3679_v2, %v1005_v1  ;;  %v1003_v42 = vld [vmem:[#allocation11 + $0x300] sm:$0xff]  ;;  %v1004_v48 = vld [vmem:[#allocation11 + $0x308] sm:$0xff] }
 0x201   : > { %v1282_v13 = vmax.f32 %v1218_v63, 0.0  ;;  %v1283_v15 = vmax.f32 %v1219_v0, 0.0  ;;  %v1171_v16 = vadd.f32 %v1107_v60, %v1042_v3  ;;  %v1074_v22 = vmul.f32 %v3679_v2, %v1006_v61  ;;  %v1136_v54 = vld [vmem:[#allocation13 + $0x300] sm:$0xff]  ;;  %v1137_v59 = vld [vmem:[#allocation13 + $0x308] sm:$0xff] }
 0x202   : > { %2825 = vmatpush3.bf16.msra.mxu1 %v1316_v6  ;;  %v1307_v21 = vpack.c.bf16 %v1251_v7, %v1250_v62  ;;  %v1234_v23 = vmax.f32 %v1170_v8, 0.0  ;;  %v1202_v24 = vadd.f32 %v1138_v4, %v1073_v9  ;;  %v1055_v25 = vmul.f32 %v3679_v2, %v987_v5 }
 0x203   : > { %v1323_v28 = vpack.c.bf16 %v1283_v15, %v1282_v13  ;;  %v1235_v30 = vmax.f32 %v1171_v16, 0.0  ;;  %v1203_v31 = vadd.f32 %v1139_v10, %v1074_v22  ;;  %v1056_v32 = vmul.f32 %v3679_v2, %v988_v11 }
 0x204   : > { %2804 = vmatprep.subr.bf16.mxu0 %v1307_v21  ;;  %v1266_v36 = vmax.f32 %v1202_v24, 0.0  ;;  %v1184_v38 = vadd.f32 %v1120_v17, %v1055_v25  ;;  %v1087_v39 = vmul.f32 %v3679_v2, %v1019_v19  ;;  %v1088_v40 = vmul.f32 %v3679_v2, %v1020_v20 }
 0x205   : > { %2826 = vmatprep.subr.bf16.mxu1 %v1323_v28  ;;  %v1299_v43 = vpack.c.bf16 %v1235_v30, %v1234_v23  ;;  %v1267_v44 = vmax.f32 %v1203_v31, 0.0  ;;  %v1185_v45 = vadd.f32 %v1121_v26, %v1056_v32  ;;  %v1039_v46 = vmul.f32 %v3679_v2, %v971_v27 }
 0x206   : > { %v1248_v49 = vmax.f32 %v1184_v38, 0.0  ;;  %v1216_v50 = vadd.f32 %v1152_v33, %v1087_v39  ;;  %v1217_v51 = vadd.f32 %v1153_v34, %v1088_v40  ;;  %v1040_v52 = vmul.f32 %v3679_v2, %v972_v35 }
 0x207   : > { %2805 = vmatpush3.bf16.msra.mxu0 %v1299_v43  ;;  %v1315_v1 = vpack.c.bf16 %v1267_v44, %v1266_v36  ;;  %v1249_v55 = vmax.f32 %v1185_v45, 0.0  ;;  %v1168_v56 = vadd.f32 %v1104_v41, %v1039_v46  ;;  %v1071_v57 = vmul.f32 %v3679_v2, %v1003_v42 }
 0x208   : > { %v1280_v60 = vmax.f32 %v1216_v50, 0.0  ;;  %v1281_v61 = vmax.f32 %v1217_v51, 0.0  ;;  %v1169_v62 = vadd.f32 %v1105_v47, %v1040_v52  ;;  %v1072_v63 = vmul.f32 %v3679_v2, %v1004_v48  ;;  %v3747_v2 = vld.sshfl [vmem:[#allocation14 + $0x8] sm:$0x33 pattern:$0x75316420] }
 0x209   : > { %2827 = vmatpush3.bf16.msra.mxu1 %v1315_v1  ;;  %v1306_v0 = vpack.c.bf16 %v1249_v55, %v1248_v49  ;;  %v1232_v3 = vmax.f32 %v1168_v56, 0.0  ;;  %v1200_v4 = vadd.f32 %v1136_v54, %v1071_v57  ;;  %v1345_v9 = vrot.slane %v3661_v18, %v3593_v29 }
 0x20a   : > { %v1322_v5 = vpack.c.bf16 %v1281_v61, %v1280_v60  ;;  %v1233_v6 = vmax.f32 %v1169_v62, 0.0  ;;  %v1201_v7 = vadd.f32 %v1137_v59, %v1072_v63  ;;  %v1841_v16 = vcombine.high %v3747_v2, %v3747_v2  ;;  %v1504_v59 = vld [vmem:[#allocation11 + $0x4f0] sm:$0xff]  ;;  %v1505_v60 = vld [vmem:[#allocation11 + $0x4f8] sm:$0xff] }
 0x20b   : > { %2806 = vmatprep.subr.bf16.mxu0 %v1306_v0  ;;  %v1264_v8 = vmax.f32 %v1200_v4, 0.0  ;;  %v1353_v15 = vcombine.high %v1345_v9, %v1345_v9  ;;  %v1440_v26 = vstv %s2717_s16  ;;  %v963_v34 = vstv %s2711_s2  ;;  %v1637_v61 = vld [vmem:[#allocation13 + $0x4f0] sm:$0xff]  ;;  %v1638_v62 = vld [vmem:[#allocation13 + $0x4f8] sm:$0xff]  ;;  %s2729_s16 = sld [smem:[#allocation3 + $0xd]] }
 0x20c   : > { %2828 = vmatprep.subr.bf16.mxu1 %v1322_v5  ;;  %v1298_v10 = vpack.c.bf16 %v1233_v6, %v1232_v3  ;;  %v1265_v11 = vmax.f32 %v1201_v7, 0.0  ;;  %v1855_v22 = vrot.slane %v1841_v16, %v3593_v29  ;;  %v965_v35 = vstv %s2713_s18  ;;  %v1536_v63 = vld [vmem:[#allocation11 + $0x5f0] sm:$0xff]  ;;  %v1537_v0 = vld [vmem:[#allocation11 + $0x5f8] sm:$0xff]  ;;  %s2730_s2 = sld [smem:[#allocation3 + $0xe]] }
 0x20d   : > { %v964_v36 = vmul.f32 %v963_v34, %v3587_v14  ;;  %v966_v38 = vmul.f32 %v965_v35, %v3671_v53  ;;  %v1443_v39 = vstv %s2718_s3  ;;  %v968_v41 = vstv %s2715_s26  ;;  %v1488_v3 = vld [vmem:[#allocation11 + $0x470] sm:$0xff]  ;;  %v1489_v5 = vld [vmem:[#allocation11 + $0x478] sm:$0xff]  ;;  %v1503_v34 = vld [vmem:[#allocation11 + $0x4e8] sm:$0xff]  ;;  %s2731_s18 = sld [smem:[#allocation3 + $0xf]] }
 0x20e   : > { %2807 = vmatpush3.bf16.msra.mxu0 %v1298_v10  ;;  %v1314_v13 = vpack.c.bf16 %v1265_v11, %v1264_v8  ;;  %v1857_v17 = vcombine.high %v1855_v22, %v1855_v22  ;;  %v1459_v47 = vstv %s2719_s28  ;;  %v1461_v48 = vstv %s2721_s24  ;;  %v1521_v6 = vld [vmem:[#allocation11 + $0x578] sm:$0xff]  ;;  %v1669_v7 = vld [vmem:[#allocation13 + $0x5f0] sm:$0xff]  ;;  %v1635_v35 = vld [vmem:[#allocation13 + $0x4e0] sm:$0xff]  ;;  %s2732_s3 = sld [smem:[#allocation7 + $0x6]] }
 0x20f   : > { %v967_v40 = vadd.f32 %v966_v38, %v964_v36  ;;  %v1466_v49 = vstv %s2720_s10  ;;  %v1468_v50 = vstv %s2722_s23  ;;  %v1460_v53 = vmul.f32 %v1459_v47, %v3675_v58  ;;  %v1670_v8 = vld [vmem:[#allocation13 + $0x5f8] sm:$0xff]  ;;  %v1636_v47 = vld [vmem:[#allocation13 + $0x4e8] sm:$0xff]  ;;  %s2735_s26 = sld [smem:[#allocation9 + $0x6]] }
 0x210   : > { %2829 = vmatpush3.bf16.msra.mxu1 %v1314_v13  ;;  %v1467_v52 = vmul.f32 %v1466_v49, %v3675_v58  ;;  %v1464_v1 = vstv %s2723_s25  ;;  %v1520_v58 = vld [vmem:[#allocation11 + $0x570] sm:$0xff]  ;;  %v1622_v16 = vld [vmem:[#allocation13 + $0x478] sm:$0xff]  ;;  %s2736_s28 = sld [smem:[#allocation9 + $0x7]] }
 0x211   : > { %1392 = vmatmul.mubr.bf16.vlgmr.msra.gmra.mxu0 %v1345_v9  ;;  %v969_v43 = vadd.f32 %v968_v41, %v967_v40  ;;  %v1621_v9 = vld [vmem:[#allocation13 + $0x470] sm:$0xff]  ;;  %v1534_v41 = vld [vmem:[#allocation11 + $0x5e0] sm:$0xff]  ;;  %s2733_s10 = sld [smem:[#allocation7 + $0x7]] }
 0x212   : > { %1894 = vmatprep.mubr.bf16.mxu0 %v1855_v22  ;;  %v1653_v22 = vld [vmem:[#allocation13 + $0x570] sm:$0xff]  ;;  %s2738_s24 = sld [smem:[#allocation3 + $0x11]] }
 0x213   : > { %1432 = vmatmul.mubr.bf16.vlgmr.msra.gmra.mxu1 %v1353_v15  ;;  %s2737_s23 = sld [smem:[#allocation3 + $0x10]] }
 0x214   : > { %1934 = vmatprep.mubr.bf16.mxu1 %v1857_v17  ;;  %v1654_v17 = vld [vmem:[#allocation13 + $0x578] sm:$0xff]  ;;  %s2739_s25 = sld [smem:[#allocation3 + $0x12]] }
 0x2d1   : > { %v2808_v18 = vpop.f32.mrf.mxu0 }
 0x2d3   : > { %v2830_v19 = vpop.f32.mrf.mxu1  ;;  %v2809_v20 = vpop.f32.mrf.mxu0 }
 0x2d4   : > { %v2810_v21 = vadd.f32 %v2809_v20, %v2808_v18 }
 0x2d5   : > { %v2831_v23 = vpop.f32.mrf.mxu1  ;;  %v2811_v24 = vpop.f32.mrf.mxu0 }
 0x2d6   : > { %v2832_v25 = vadd.f32 %v2831_v23, %v2830_v19 }
 0x2d7   : > { %v2833_v27 = vpop.f32.mrf.mxu1  ;;  %v2812_v28 = vpop.f32.mrf.mxu0 }
 0x2d8   : > { %v1434_v30 = vadd.f32 %v2832_v25, %v2810_v21 }
 0x2d9   : > { %v2834_v31 = vpop.f32.mrf.mxu1 }
 0x2da   : > { %v3752_v32 = vadd.f32 %v1440_v26, %v1434_v30  ;;  %v1444_v42 = vadd.f32 %v1443_v39, %v1434_v30 }
 0x2dc   : > { %v1445_v33 = vmul.f32 1.442695, %v3752_v32  ;;  %v1449_v46 = vrot.slane %v1444_v42, 1  ;;  %v1535_v42 = vld [vmem:[#allocation11 + $0x5e8] sm:$0xff] }
 0x2de   : > { %3043 = vpow2.f32 %v1445_v33  ;;  %v1502_v33 = vld [vmem:[#allocation11 + $0x4e0] sm:$0xff] }
 0x2eb   : > { %v3044_v44 = vpop.eup %3043 }
 0x2ec   : > { %v1447_v45 = vmul.f32 %v3044_v44, %v969_v43 }
 0x2ee   : > { %v1451_v14 = vadd.f32 %v1449_v46, %v1447_v45 }
 0x2f0   : > { %v1462_v51 = vmul.f32 %v1461_v48, %v1451_v14  ;;  %v1469_v54 = vmul.f32 %v1468_v50, %v1451_v14  ;;  %v1486_v48 = vld [vmem:[#allocation11 + $0x460] sm:$0xff] }
 0x2f2   : > { %v1463_v55 = vadd.f32 %v1462_v51, %v1460_v53  ;;  %v3759_v56 = vadd.f32 %v1469_v54, %v1467_v52  ;;  %v1667_v51 = vld [vmem:[#allocation13 + $0x5e0] sm:$0xff]  ;;  %v1668_v52 = vld [vmem:[#allocation13 + $0x5e8] sm:$0xff] }
 0x2f3   : > { %v1487_v54 = vld [vmem:[#allocation11 + $0x468] sm:$0xff] }
 0x2f4   : > { %v3761_v57 = vadd.f32 %v1464_v1, %v1463_v55 }
 0x2f6   : > { %v3765_v4 = vrot.slane %v3761_v57, %v3585_v12 }
 0x2f8   : > { %v1572_v10 = vmul.f32 %v3765_v4, %v1504_v59  ;;  %v1573_v11 = vmul.f32 %v3765_v4, %v1505_v60  ;;  %v1604_v13 = vmul.f32 %v3765_v4, %v1536_v63  ;;  %v1605_v15 = vmul.f32 %v3765_v4, %v1537_v0 }
 0x2f9   : > { %v1556_v18 = vmul.f32 %v3765_v4, %v1488_v3  ;;  %v1557_v19 = vmul.f32 %v3765_v4, %v1489_v5  ;;  %v1588_v20 = vmul.f32 %v3765_v4, %v1520_v58  ;;  %v1589_v21 = vmul.f32 %v3765_v4, %v1521_v6  ;;  %v1620_v5 = vld [vmem:[#allocation13 + $0x468] sm:$0xff] }
 0x2fa   : > { %v1701_v23 = vadd.f32 %v1637_v61, %v1572_v10  ;;  %v1702_v24 = vadd.f32 %v1638_v62, %v1573_v11  ;;  %v1733_v25 = vadd.f32 %v1669_v7, %v1604_v13  ;;  %v1734_v26 = vadd.f32 %v1670_v8, %v1605_v15  ;;  %v1619_v61 = vld [vmem:[#allocation13 + $0x460] sm:$0xff]  ;;  %v1519_v58 = vld [vmem:[#allocation11 + $0x568] sm:$0xff]  ;;  %v1500_v10 = vld [vmem:[#allocation11 + $0x4d0] sm:$0xff] }
 0x2fb   : > { %v1685_v27 = vadd.f32 %v1621_v9, %v1556_v18  ;;  %v1686_v28 = vadd.f32 %v1622_v16, %v1557_v19  ;;  %v1717_v30 = vadd.f32 %v1653_v22, %v1588_v20  ;;  %v1718_v31 = vadd.f32 %v1654_v17, %v1589_v21  ;;  %v1518_v62 = vld [vmem:[#allocation11 + $0x560] sm:$0xff]  ;;  %v1652_v22 = vld [vmem:[#allocation13 + $0x568] sm:$0xff]  ;;  %v1501_v17 = vld [vmem:[#allocation11 + $0x4d8] sm:$0xff] }
 0x2fc   : > { %v1765_v36 = vmax.f32 %v1701_v23, 0.0  ;;  %v1766_v38 = vmax.f32 %v1702_v24, 0.0  ;;  %v1797_v39 = vmax.f32 %v1733_v25, 0.0  ;;  %v1798_v40 = vmax.f32 %v1734_v26, 0.0  ;;  %v1651_v9 = vld [vmem:[#allocation13 + $0x560] sm:$0xff]  ;;  %v1633_v23 = vld [vmem:[#allocation13 + $0x4d0] sm:$0xff] }
 0x2fd   : > { %v1749_v43 = vmax.f32 %v1685_v27, 0.0  ;;  %v1750_v44 = vmax.f32 %v1686_v28, 0.0  ;;  %v1781_v45 = vmax.f32 %v1717_v30, 0.0  ;;  %v1782_v46 = vmax.f32 %v1718_v31, 0.0  ;;  %v1532_v24 = vld [vmem:[#allocation11 + $0x5d0] sm:$0xff]  ;;  %v1533_v25 = vld [vmem:[#allocation11 + $0x5d8] sm:$0xff] }
 0x2fe   : > { %v1816_v49 = vpack.c.bf16 %v1766_v38, %v1765_v36  ;;  %v1832_v50 = vpack.c.bf16 %v1798_v40, %v1797_v39  ;;  %v1570_v14 = vmul.f32 %v3765_v4, %v1502_v33  ;;  %v1571_v53 = vmul.f32 %v3765_v4, %v1503_v34  ;;  %v1634_v31 = vld [vmem:[#allocation13 + $0x4d8] sm:$0xff]  ;;  %v1484_v33 = vld [vmem:[#allocation11 + $0x450] sm:$0xff] }
 0x2ff   : > { %v1808_v1 = vpack.c.bf16 %v1750_v44, %v1749_v43  ;;  %v1824_v55 = vpack.c.bf16 %v1782_v46, %v1781_v45  ;;  %v1602_v59 = vmul.f32 %v3765_v4, %v1534_v41  ;;  %v1603_v60 = vmul.f32 %v3765_v4, %v1535_v42  ;;  %v1665_v39 = vld [vmem:[#allocation13 + $0x5d0] sm:$0xff]  ;;  %v1666_v40 = vld [vmem:[#allocation13 + $0x5d8] sm:$0xff] }
 0x300   : > { %2836 = vmatprep.subr.bf16.mxu0 %v1816_v49  ;;  %2858 = vmatprep.subr.bf16.mxu1 %v1832_v50  ;;  %v1699_v63 = vadd.f32 %v1635_v35, %v1570_v14  ;;  %v1700_v0 = vadd.f32 %v1636_v47, %v1571_v53  ;;  %v1554_v3 = vmul.f32 %v3765_v4, %v1486_v48  ;;  %v1485_v41 = vld [vmem:[#allocation11 + $0x458] sm:$0xff]  ;;  %v1617_v46 = vld [vmem:[#allocation13 + $0x450] sm:$0xff] }
 0x301   : > { %2837 = vmatpush3.bf16.msra.mxu0 %v1808_v1  ;;  %2859 = vmatpush3.bf16.msra.mxu1 %v1824_v55  ;;  %v1731_v6 = vadd.f32 %v1667_v51, %v1602_v59  ;;  %v1732_v7 = vadd.f32 %v1668_v52, %v1603_v60  ;;  %v1555_v8 = vmul.f32 %v3765_v4, %v1487_v54  ;;  %v1516_v47 = vld [vmem:[#allocation11 + $0x550] sm:$0xff]  ;;  %v1618_v53 = vld [vmem:[#allocation13 + $0x458] sm:$0xff]  ;;  %v1498_v60 = vld [vmem:[#allocation11 + $0x4c0] sm:$0xff] }
 0x302   : > { %v1763_v11 = vmax.f32 %v1699_v63, 0.0  ;;  %v1764_v13 = vmax.f32 %v1700_v0, 0.0  ;;  %v1683_v15 = vadd.f32 %v1619_v61, %v1554_v3  ;;  %v1586_v16 = vmul.f32 %v3765_v4, %v1518_v62  ;;  %v1517_v51 = vld [vmem:[#allocation11 + $0x558] sm:$0xff]  ;;  %v1649_v59 = vld [vmem:[#allocation13 + $0x550] sm:$0xff] }
 0x303   : > { %v1795_v18 = vmax.f32 %v1731_v6, 0.0  ;;  %v1796_v19 = vmax.f32 %v1732_v7, 0.0  ;;  %v1684_v20 = vadd.f32 %v1620_v5, %v1555_v8  ;;  %v1587_v21 = vmul.f32 %v3765_v4, %v1519_v58  ;;  %v1650_v3 = vld [vmem:[#allocation13 + $0x558] sm:$0xff]  ;;  %v1499_v5 = vld [vmem:[#allocation11 + $0x4c8] sm:$0xff] }
 0x304   : > { %v1815_v26 = vpack.c.bf16 %v1764_v13, %v1763_v11  ;;  %v1747_v27 = vmax.f32 %v1683_v15, 0.0  ;;  %v1715_v28 = vadd.f32 %v1651_v9, %v1586_v16  ;;  %v1568_v30 = vmul.f32 %v3765_v4, %v1500_v10  ;;  %v1631_v9 = vld [vmem:[#allocation13 + $0x4c0] sm:$0xff]  ;;  %v1531_v11 = vld [vmem:[#allocation11 + $0x5c8] sm:$0xff] }
 0x305   : > { %v1831_v34 = vpack.c.bf16 %v1796_v19, %v1795_v18  ;;  %v1748_v35 = vmax.f32 %v1684_v20, 0.0  ;;  %v1716_v36 = vadd.f32 %v1652_v22, %v1587_v21  ;;  %v1569_v38 = vmul.f32 %v3765_v4, %v1501_v17  ;;  %v1530_v10 = vld [vmem:[#allocation11 + $0x5c0] sm:$0xff]  ;;  %v1632_v17 = vld [vmem:[#allocation13 + $0x4c8] sm:$0xff] }
 0x306   : > { %2838 = vmatprep.subr.bf16.mxu0 %v1815_v26  ;;  %v1779_v42 = vmax.f32 %v1715_v28, 0.0  ;;  %v1697_v43 = vadd.f32 %v1633_v23, %v1568_v30  ;;  %v1600_v44 = vmul.f32 %v3765_v4, %v1532_v24  ;;  %v1601_v45 = vmul.f32 %v3765_v4, %v1533_v25  ;;  %v1482_v18 = vld [vmem:[#allocation11 + $0x440] sm:$0xff]  ;;  %v1664_v25 = vld [vmem:[#allocation13 + $0x5c8] sm:$0xff] }
 0x307   : > { %2860 = vmatprep.subr.bf16.mxu1 %v1831_v34  ;;  %v1807_v48 = vpack.c.bf16 %v1748_v35, %v1747_v27  ;;  %v1780_v49 = vmax.f32 %v1716_v36, 0.0  ;;  %v1698_v50 = vadd.f32 %v1634_v31, %v1569_v38  ;;  %v1552_v14 = vmul.f32 %v3765_v4, %v1484_v33  ;;  %v1663_v24 = vld [vmem:[#allocation13 + $0x5c0] sm:$0xff]  ;;  %v1483_v26 = vld [vmem:[#allocation11 + $0x448] sm:$0xff] }
 0x308   : > { %v1761_v52 = vmax.f32 %v1697_v43, 0.0  ;;  %v1729_v54 = vadd.f32 %v1665_v39, %v1600_v44  ;;  %v1730_v1 = vadd.f32 %v1666_v40, %v1601_v45  ;;  %v1553_v55 = vmul.f32 %v3765_v4, %v1485_v41  ;;  %v1615_v33 = vld [vmem:[#allocation13 + $0x440] sm:$0xff]  ;;  %v1616_v40 = vld [vmem:[#allocation13 + $0x448] sm:$0xff] }
 0x309   : > { %2839 = vmatpush3.bf16.msra.mxu0 %v1807_v48  ;;  %v1823_v61 = vpack.c.bf16 %v1780_v49, %v1779_v42  ;;  %v1762_v62 = vmax.f32 %v1698_v50, 0.0  ;;  %v1681_v63 = vadd.f32 %v1617_v46, %v1552_v14  ;;  %v1584_v0 = vmul.f32 %v3765_v4, %v1516_v47  ;;  %v1514_v34 = vld [vmem:[#allocation11 + $0x540] sm:$0xff]  ;;  %v1515_v41 = vld [vmem:[#allocation11 + $0x548] sm:$0xff]  ;;  %v1496_v47 = vld [vmem:[#allocation11 + $0x4b0] sm:$0xff] }
 0x30a   : > { %v1793_v58 = vmax.f32 %v1729_v54, 0.0  ;;  %v1794_v6 = vmax.f32 %v1730_v1, 0.0  ;;  %v1682_v7 = vadd.f32 %v1618_v53, %v1553_v55  ;;  %v1585_v8 = vmul.f32 %v3765_v4, %v1517_v51  ;;  %v1647_v46 = vld [vmem:[#allocation13 + $0x540] sm:$0xff]  ;;  %v1648_v53 = vld [vmem:[#allocation13 + $0x548] sm:$0xff]  ;;  %v1497_v51 = vld [vmem:[#allocation11 + $0x4b8] sm:$0xff] }
 0x30b   : > { %2861 = vmatpush3.bf16.msra.mxu1 %v1823_v61  ;;  %v1814_v13 = vpack.c.bf16 %v1762_v62, %v1761_v52  ;;  %v1745_v15 = vmax.f32 %v1681_v63, 0.0  ;;  %v1713_v16 = vadd.f32 %v1649_v59, %v1584_v0  ;;  %v1566_v22 = vmul.f32 %v3765_v4, %v1498_v60  ;;  %v1629_v59 = vld [vmem:[#allocation13 + $0x4b0] sm:$0xff]  ;;  %v1529_v61 = vld [vmem:[#allocation11 + $0x5b8] sm:$0xff] }
 0x30c   : > { %v1830_v19 = vpack.c.bf16 %v1794_v6, %v1793_v58  ;;  %v1746_v20 = vmax.f32 %v1682_v7, 0.0  ;;  %v1714_v21 = vadd.f32 %v1650_v3, %v1585_v8  ;;  %v1567_v23 = vmul.f32 %v3765_v4, %v1499_v5  ;;  %v1528_v60 = vld [vmem:[#allocation11 + $0x5b0] sm:$0xff]  ;;  %v1630_v5 = vld [vmem:[#allocation13 + $0x4b8] sm:$0xff] }
 0x30d   : > { %2840 = vmatprep.subr.bf16.mxu0 %v1814_v13  ;;  %v1777_v27 = vmax.f32 %v1713_v16, 0.0  ;;  %v1695_v28 = vadd.f32 %v1631_v9, %v1566_v22  ;;  %v1598_v30 = vmul.f32 %v3765_v4, %v1530_v10  ;;  %v1599_v31 = vmul.f32 %v3765_v4, %v1531_v11  ;;  %v1480_v58 = vld [vmem:[#allocation11 + $0x430] sm:$0xff]  ;;  %v1662_v11 = vld [vmem:[#allocation13 + $0x5b8] sm:$0xff] }
 0x30e   : > { %2862 = vmatprep.subr.bf16.mxu1 %v1830_v19  ;;  %v1806_v35 = vpack.c.bf16 %v1746_v20, %v1745_v15  ;;  %v1778_v36 = vmax.f32 %v1714_v21, 0.0  ;;  %v1696_v38 = vadd.f32 %v1632_v17, %v1567_v23  ;;  %v1550_v39 = vmul.f32 %v3765_v4, %v1482_v18  ;;  %v1661_v10 = vld [vmem:[#allocation13 + $0x5b0] sm:$0xff]  ;;  %v1481_v13 = vld [vmem:[#allocation11 + $0x438] sm:$0xff] }
 0x30f   : > { %v1759_v42 = vmax.f32 %v1695_v28, 0.0  ;;  %v1727_v43 = vadd.f32 %v1663_v24, %v1598_v30  ;;  %v1728_v44 = vadd.f32 %v1664_v25, %v1599_v31  ;;  %v1551_v45 = vmul.f32 %v3765_v4, %v1483_v26  ;;  %v1613_v18 = vld [vmem:[#allocation13 + $0x430] sm:$0xff]  ;;  %v1614_v25 = vld [vmem:[#allocation13 + $0x438] sm:$0xff] }
 0x310   : > { %2841 = vmatpush3.bf16.msra.mxu0 %v1806_v35  ;;  %v1822_v48 = vpack.c.bf16 %v1778_v36, %v1777_v27  ;;  %v1760_v49 = vmax.f32 %v1696_v38, 0.0  ;;  %v1679_v50 = vadd.f32 %v1615_v33, %v1550_v39  ;;  %v1582_v14 = vmul.f32 %v3765_v4, %v1514_v34  ;;  %v1512_v19 = vld [vmem:[#allocation11 + $0x530] sm:$0xff]  ;;  %v1513_v26 = vld [vmem:[#allocation11 + $0x538] sm:$0xff]  ;;  %v1494_v34 = vld [vmem:[#allocation11 + $0x4a0] sm:$0xff] }
 0x311   : > { %v1791_v52 = vmax.f32 %v1727_v43, 0.0  ;;  %v1792_v54 = vmax.f32 %v1728_v44, 0.0  ;;  %v1680_v1 = vadd.f32 %v1616_v40, %v1551_v45  ;;  %v1583_v55 = vmul.f32 %v3765_v4, %v1515_v41  ;;  %v1645_v33 = vld [vmem:[#allocation13 + $0x530] sm:$0xff]  ;;  %v1646_v40 = vld [vmem:[#allocation13 + $0x538] sm:$0xff]  ;;  %v1495_v41 = vld [vmem:[#allocation11 + $0x4a8] sm:$0xff] }
 0x312   : > { %2863 = vmatpush3.bf16.msra.mxu1 %v1822_v48  ;;  %v1813_v62 = vpack.c.bf16 %v1760_v49, %v1759_v42  ;;  %v1743_v63 = vmax.f32 %v1679_v50, 0.0  ;;  %v1711_v0 = vadd.f32 %v1647_v46, %v1582_v14  ;;  %v1564_v3 = vmul.f32 %v3765_v4, %v1496_v47  ;;  %v1627_v46 = vld [vmem:[#allocation13 + $0x4a0] sm:$0xff]  ;;  %v1527_v48 = vld [vmem:[#allocation11 + $0x5a8] sm:$0xff] }
 0x313   : > { %v1829_v6 = vpack.c.bf16 %v1792_v54, %v1791_v52  ;;  %v1744_v7 = vmax.f32 %v1680_v1, 0.0  ;;  %v1712_v8 = vadd.f32 %v1648_v53, %v1583_v55  ;;  %v1565_v9 = vmul.f32 %v3765_v4, %v1497_v51  ;;  %v1526_v47 = vld [vmem:[#allocation11 + $0x5a0] sm:$0xff]  ;;  %v1628_v51 = vld [vmem:[#allocation13 + $0x4a8] sm:$0xff] }
 0x314   : > { %2842 = vmatprep.subr.bf16.mxu0 %v1813_v62  ;;  %v1775_v15 = vmax.f32 %v1711_v0, 0.0  ;;  %v1693_v16 = vadd.f32 %v1629_v59, %v1564_v3  ;;  %v1596_v22 = vmul.f32 %v3765_v4, %v1528_v60  ;;  %v1597_v17 = vmul.f32 %v3765_v4, %v1529_v61  ;;  %v1478_v52 = vld [vmem:[#allocation11 + $0x420] sm:$0xff]  ;;  %v1660_v61 = vld [vmem:[#allocation13 + $0x5a8] sm:$0xff] }
 0x315   : > { %2864 = vmatprep.subr.bf16.mxu1 %v1829_v6  ;;  %v1805_v20 = vpack.c.bf16 %v1744_v7, %v1743_v63  ;;  %v1776_v21 = vmax.f32 %v1712_v8, 0.0  ;;  %v1694_v23 = vadd.f32 %v1630_v5, %v1565_v9  ;;  %v1548_v24 = vmul.f32 %v3765_v4, %v1480_v58  ;;  %v1659_v60 = vld [vmem:[#allocation13 + $0x5a0] sm:$0xff]  ;;  %v1479_v62 = vld [vmem:[#allocation11 + $0x428] sm:$0xff] }
 0x316   : > { %v1757_v27 = vmax.f32 %v1693_v16, 0.0  ;;  %v1725_v28 = vadd.f32 %v1661_v10, %v1596_v22  ;;  %v1726_v30 = vadd.f32 %v1662_v11, %v1597_v17  ;;  %v1549_v31 = vmul.f32 %v3765_v4, %v1481_v13  ;;  %v1611_v58 = vld [vmem:[#allocation13 + $0x420] sm:$0xff]  ;;  %v1612_v11 = vld [vmem:[#allocation13 + $0x428] sm:$0xff] }
 0x317   : > { %2843 = vmatpush3.bf16.msra.mxu0 %v1805_v20  ;;  %v1821_v35 = vpack.c.bf16 %v1776_v21, %v1775_v15  ;;  %v1758_v36 = vmax.f32 %v1694_v23, 0.0  ;;  %v1677_v38 = vadd.f32 %v1613_v18, %v1548_v24  ;;  %v1580_v39 = vmul.f32 %v3765_v4, %v1512_v19  ;;  %v1510_v6 = vld [vmem:[#allocation11 + $0x520] sm:$0xff]  ;;  %v1511_v13 = vld [vmem:[#allocation11 + $0x528] sm:$0xff]  ;;  %v1492_v19 = vld [vmem:[#allocation11 + $0x490] sm:$0xff] }
 0x318   : > { %v1789_v42 = vmax.f32 %v1725_v28, 0.0  ;;  %v1790_v43 = vmax.f32 %v1726_v30, 0.0  ;;  %v1678_v44 = vadd.f32 %v1614_v25, %v1549_v31  ;;  %v1581_v45 = vmul.f32 %v3765_v4, %v1513_v26  ;;  %v1643_v18 = vld [vmem:[#allocation13 + $0x520] sm:$0xff]  ;;  %v1644_v25 = vld [vmem:[#allocation13 + $0x528] sm:$0xff]  ;;  %v1493_v26 = vld [vmem:[#allocation11 + $0x498] sm:$0xff] }
 0x319   : > { %2865 = vmatpush3.bf16.msra.mxu1 %v1821_v35  ;;  %v1812_v49 = vpack.c.bf16 %v1758_v36, %v1757_v27  ;;  %v1741_v50 = vmax.f32 %v1677_v38, 0.0  ;;  %v1709_v14 = vadd.f32 %v1645_v33, %v1580_v39  ;;  %v1562_v53 = vmul.f32 %v3765_v4, %v1494_v34  ;;  %v1625_v33 = vld [vmem:[#allocation13 + $0x490] sm:$0xff]  ;;  %v1525_v35 = vld [vmem:[#allocation11 + $0x598] sm:$0xff] }
 0x31a   : > { %v1828_v54 = vpack.c.bf16 %v1790_v43, %v1789_v42  ;;  %v1742_v1 = vmax.f32 %v1678_v44, 0.0  ;;  %v1710_v55 = vadd.f32 %v1646_v40, %v1581_v45  ;;  %v1563_v59 = vmul.f32 %v3765_v4, %v1495_v41  ;;  %v1524_v34 = vld [vmem:[#allocation11 + $0x590] sm:$0xff]  ;;  %v1626_v41 = vld [vmem:[#allocation13 + $0x498] sm:$0xff] }
 0x31b   : > { %2844 = vmatprep.subr.bf16.mxu0 %v1812_v49  ;;  %v1773_v63 = vmax.f32 %v1709_v14, 0.0  ;;  %v1691_v0 = vadd.f32 %v1627_v46, %v1562_v53  ;;  %v1594_v3 = vmul.f32 %v3765_v4, %v1526_v47  ;;  %v1595_v5 = vmul.f32 %v3765_v4, %v1527_v48  ;;  %v1476_v42 = vld [vmem:[#allocation11 + $0x410] sm:$0xff]  ;;  %v1658_v48 = vld [vmem:[#allocation13 + $0x598] sm:$0xff] }
 0x31c   : > { %2866 = vmatprep.subr.bf16.mxu1 %v1828_v54  ;;  %v1804_v7 = vpack.c.bf16 %v1742_v1, %v1741_v50  ;;  %v1774_v8 = vmax.f32 %v1710_v55, 0.0  ;;  %v1692_v9 = vadd.f32 %v1628_v51, %v1563_v59  ;;  %v1546_v10 = vmul.f32 %v3765_v4, %v1478_v52  ;;  %v1657_v47 = vld [vmem:[#allocation13 + $0x590] sm:$0xff]  ;;  %v1477_v49 = vld [vmem:[#allocation11 + $0x418] sm:$0xff] }
 0x31d   : > { %v1755_v15 = vmax.f32 %v1691_v0, 0.0  ;;  %v1723_v16 = vadd.f32 %v1659_v60, %v1594_v3  ;;  %v1724_v22 = vadd.f32 %v1660_v61, %v1595_v5  ;;  %v1547_v17 = vmul.f32 %v3765_v4, %v1479_v62  ;;  %v1609_v52 = vld [vmem:[#allocation13 + $0x410] sm:$0xff]  ;;  %v1610_v61 = vld [vmem:[#allocation13 + $0x418] sm:$0xff] }
 0x31e   : > { %2845 = vmatpush3.bf16.msra.mxu0 %v1804_v7  ;;  %v1820_v20 = vpack.c.bf16 %v1774_v8, %v1773_v63  ;;  %v1756_v21 = vmax.f32 %v1692_v9, 0.0  ;;  %v1675_v23 = vadd.f32 %v1611_v58, %v1546_v10  ;;  %v1578_v24 = vmul.f32 %v3765_v4, %v1510_v6  ;;  %v1508_v54 = vld [vmem:[#allocation11 + $0x510] sm:$0xff]  ;;  %v1509_v62 = vld [vmem:[#allocation11 + $0x518] sm:$0xff]  ;;  %v1490_v6 = vld [vmem:[#allocation11 + $0x480] sm:$0xff] }
 0x31f   : > { %v1787_v27 = vmax.f32 %v1723_v16, 0.0  ;;  %v1788_v28 = vmax.f32 %v1724_v22, 0.0  ;;  %v1676_v30 = vadd.f32 %v1612_v11, %v1547_v17  ;;  %v1579_v31 = vmul.f32 %v3765_v4, %v1511_v13  ;;  %v1641_v58 = vld [vmem:[#allocation13 + $0x510] sm:$0xff]  ;;  %v1642_v11 = vld [vmem:[#allocation13 + $0x518] sm:$0xff]  ;;  %v1491_v13 = vld [vmem:[#allocation11 + $0x488] sm:$0xff] }
 0x320   : > { %2867 = vmatpush3.bf16.msra.mxu1 %v1820_v20  ;;  %v1811_v36 = vpack.c.bf16 %v1756_v21, %v1755_v15  ;;  %v1739_v38 = vmax.f32 %v1675_v23, 0.0  ;;  %v1707_v39 = vadd.f32 %v1643_v18, %v1578_v24  ;;  %v1560_v40 = vmul.f32 %v3765_v4, %v1492_v19  ;;  %v1623_v18 = vld [vmem:[#allocation13 + $0x480] sm:$0xff]  ;;  %v1523_v20 = vld [vmem:[#allocation11 + $0x588] sm:$0xff] }
 0x321   : > { %v1827_v43 = vpack.c.bf16 %v1788_v28, %v1787_v27  ;;  %v1740_v44 = vmax.f32 %v1676_v30, 0.0  ;;  %v1708_v45 = vadd.f32 %v1644_v25, %v1579_v31  ;;  %v1561_v46 = vmul.f32 %v3765_v4, %v1493_v26  ;;  %v1522_v19 = vld [vmem:[#allocation11 + $0x580] sm:$0xff]  ;;  %v1624_v26 = vld [vmem:[#allocation13 + $0x488] sm:$0xff] }
 0x322   : > { %2846 = vmatprep.subr.bf16.mxu0 %v1811_v36  ;;  %v1771_v50 = vmax.f32 %v1707_v39, 0.0  ;;  %v1689_v14 = vadd.f32 %v1625_v33, %v1560_v40  ;;  %v1592_v53 = vmul.f32 %v3765_v4, %v1524_v34  ;;  %v1593_v51 = vmul.f32 %v3765_v4, %v1525_v35  ;;  %v1474_v27 = vld [vmem:[#allocation11 + $0x400] sm:$0xff]  ;;  %v1656_v35 = vld [vmem:[#allocation13 + $0x588] sm:$0xff] }
 0x323   : > { %2868 = vmatprep.subr.bf16.mxu1 %v1827_v43  ;;  %v1803_v1 = vpack.c.bf16 %v1740_v44, %v1739_v38  ;;  %v1772_v55 = vmax.f32 %v1708_v45, 0.0  ;;  %v1690_v59 = vadd.f32 %v1626_v41, %v1561_v46  ;;  %v1544_v60 = vmul.f32 %v3765_v4, %v1476_v42  ;;  %v1655_v34 = vld [vmem:[#allocation13 + $0x580] sm:$0xff]  ;;  %v1475_v36 = vld [vmem:[#allocation11 + $0x408] sm:$0xff] }
 0x324   : > { %v1753_v63 = vmax.f32 %v1689_v14, 0.0  ;;  %v1721_v0 = vadd.f32 %v1657_v47, %v1592_v53  ;;  %v1722_v3 = vadd.f32 %v1658_v48, %v1593_v51  ;;  %v1545_v5 = vmul.f32 %v3765_v4, %v1477_v49  ;;  %v1607_v42 = vld [vmem:[#allocation13 + $0x400] sm:$0xff]  ;;  %v1608_v48 = vld [vmem:[#allocation13 + $0x408] sm:$0xff] }
 0x325   : > { %2847 = vmatpush3.bf16.msra.mxu0 %v1803_v1  ;;  %v1819_v7 = vpack.c.bf16 %v1772_v55, %v1771_v50  ;;  %v1754_v8 = vmax.f32 %v1690_v59, 0.0  ;;  %v1673_v9 = vadd.f32 %v1609_v52, %v1544_v60  ;;  %v1576_v10 = vmul.f32 %v3765_v4, %v1508_v54  ;;  %v1506_v43 = vld [vmem:[#allocation11 + $0x500] sm:$0xff]  ;;  %v1507_v49 = vld [vmem:[#allocation11 + $0x508] sm:$0xff] }
 0x326   : > { %v1785_v15 = vmax.f32 %v1721_v0, 0.0  ;;  %v1786_v16 = vmax.f32 %v1722_v3, 0.0  ;;  %v1674_v22 = vadd.f32 %v1610_v61, %v1545_v5  ;;  %v1577_v17 = vmul.f32 %v3765_v4, %v1509_v62  ;;  %v1639_v52 = vld [vmem:[#allocation13 + $0x500] sm:$0xff]  ;;  %v1640_v60 = vld [vmem:[#allocation13 + $0x508] sm:$0xff] }
 0x327   : > { %2869 = vmatpush3.bf16.msra.mxu1 %v1819_v7  ;;  %v1810_v21 = vpack.c.bf16 %v1754_v8, %v1753_v63  ;;  %v1737_v23 = vmax.f32 %v1673_v9, 0.0  ;;  %v1705_v24 = vadd.f32 %v1641_v58, %v1576_v10  ;;  %v1558_v25 = vmul.f32 %v3765_v4, %v1490_v6 }
 0x328   : > { %v1826_v28 = vpack.c.bf16 %v1786_v16, %v1785_v15  ;;  %v1738_v30 = vmax.f32 %v1674_v22, 0.0  ;;  %v1706_v31 = vadd.f32 %v1642_v11, %v1577_v17  ;;  %v1559_v33 = vmul.f32 %v3765_v4, %v1491_v13 }
 0x329   : > { %2848 = vmatprep.subr.bf16.mxu0 %v1810_v21  ;;  %v1769_v38 = vmax.f32 %v1705_v24, 0.0  ;;  %v1687_v39 = vadd.f32 %v1623_v18, %v1558_v25  ;;  %v1590_v40 = vmul.f32 %v3765_v4, %v1522_v19  ;;  %v1591_v41 = vmul.f32 %v3765_v4, %v1523_v20 }
 0x32a   : > { %2870 = vmatprep.subr.bf16.mxu1 %v1826_v28  ;;  %v1802_v44 = vpack.c.bf16 %v1738_v30, %v1737_v23  ;;  %v1770_v45 = vmax.f32 %v1706_v31, 0.0  ;;  %v1688_v46 = vadd.f32 %v1624_v26, %v1559_v33  ;;  %v1542_v47 = vmul.f32 %v3765_v4, %v1474_v27 }
 0x32b   : > { %v1751_v50 = vmax.f32 %v1687_v39, 0.0  ;;  %v1719_v14 = vadd.f32 %v1655_v34, %v1590_v40  ;;  %v1720_v53 = vadd.f32 %v1656_v35, %v1591_v41  ;;  %v1543_v51 = vmul.f32 %v3765_v4, %v1475_v36 }
 0x32c   : > { %2849 = vmatpush3.bf16.msra.mxu0 %v1802_v44  ;;  %v1818_v54 = vpack.c.bf16 %v1770_v45, %v1769_v38  ;;  %v1752_v1 = vmax.f32 %v1688_v46, 0.0  ;;  %v1671_v55 = vadd.f32 %v1607_v42, %v1542_v47  ;;  %v1574_v59 = vmul.f32 %v3765_v4, %v1506_v43 }
 0x32d   : > { %v1783_v61 = vmax.f32 %v1719_v14, 0.0  ;;  %v1784_v62 = vmax.f32 %v1720_v53, 0.0  ;;  %v1672_v63 = vadd.f32 %v1608_v48, %v1543_v51  ;;  %v1575_v0 = vmul.f32 %v3765_v4, %v1507_v49  ;;  %v3833_v4 = vld.sshfl [vmem:[#allocation14 + $0xc] sm:$0x33 pattern:$0x75316420] }
 0x32e   : > { %2871 = vmatpush3.bf16.msra.mxu1 %v1818_v54  ;;  %v1809_v3 = vpack.c.bf16 %v1752_v1, %v1751_v50  ;;  %v1735_v5 = vmax.f32 %v1671_v55, 0.0  ;;  %v1703_v58 = vadd.f32 %v1639_v52, %v1574_v59  ;;  %v1848_v10 = vrot.slane %v3747_v2, %v3593_v29  ;;  %v2008_v1 = vld [vmem:[#allocation11 + $0x6f8] sm:$0xff]  ;;  %v2140_v55 = vld [vmem:[#allocation13 + $0x6f0] sm:$0xff] }
 0x32f   : > { %v1825_v6 = vpack.c.bf16 %v1784_v62, %v1783_v61  ;;  %v1736_v7 = vmax.f32 %v1672_v63, 0.0  ;;  %v1704_v8 = vadd.f32 %v1640_v60, %v1575_v0  ;;  %v2344_v22 = vcombine.high %v3833_v4, %v3833_v4  ;;  %v2141_v59 = vld [vmem:[#allocation13 + $0x6f8] sm:$0xff]  ;;  %v2039_v60 = vld [vmem:[#allocation11 + $0x7f0] sm:$0xff] }
 0x330   : > { %2850 = vmatprep.subr.bf16.mxu0 %v1809_v3  ;;  %v1767_v9 = vmax.f32 %v1703_v58, 0.0  ;;  %v1856_v16 = vcombine.high %v1848_v10, %v1848_v10  ;;  %v1943_v26 = vstv %s2726_s29  ;;  %v1452_v33 = vadd.f32 %v3752_v32, %v3666_v37  ;;  %v2040_v61 = vld [vmem:[#allocation11 + $0x7f8] sm:$0xff]  ;;  %v1991_v62 = vld [vmem:[#allocation11 + $0x670] sm:$0xff]  ;;  %s2740_s29 = sld [smem:[#allocation3 + $0x13]] }
 0x331   : > { %2872 = vmatprep.subr.bf16.mxu1 %v1825_v6  ;;  %v1801_v11 = vpack.c.bf16 %v1736_v7, %v1735_v5  ;;  %v1768_v13 = vmax.f32 %v1704_v8, 0.0  ;;  %v2358_v17 = vrot.slane %v2344_v22, %v3593_v29  ;;  %v1946_v38 = vstv %s2727_s22  ;;  %v1992_v0 = vld [vmem:[#allocation11 + $0x678] sm:$0xff]  ;;  %v2172_v5 = vld [vmem:[#allocation13 + $0x7f0] sm:$0xff]  ;;  %s2741_s22 = sld [smem:[#allocation7 + $0x8]] }
 0x332   : > { %v1471_v39 = vstv %s2724_s15  ;;  %v1962_v32 = vstv %s2728_s21  ;;  %v1964_v44 = vstv %s2730_s2  ;;  %v1969_v45 = vstv %s2729_s16  ;;  %v2024_v3 = vld [vmem:[#allocation11 + $0x778] sm:$0xff]  ;;  %v2124_v6 = vld [vmem:[#allocation13 + $0x670] sm:$0xff]  ;;  %s2742_s15 = sld [smem:[#allocation7 + $0x9]]  ;;  %s2744_s21 = sshll.u32 %s3403_s17, 5 }
 0x333   : > { %2851 = vmatpush3.bf16.msra.mxu0 %v1801_v11  ;;  %v1817_v15 = vpack.c.bf16 %v1768_v13, %v1767_v9  ;;  %v2360_v18 = vcombine.high %v2358_v17, %v2358_v17  ;;  %v1472_v41 = vadd.f32 %v1471_v39, %v3759_v56  ;;  %v1971_v46 = vstv %s2731_s18  ;;  %v2007_v56 = vld [vmem:[#allocation11 + $0x6f0] sm:$0xff]  ;;  %v2173_v58 = vld [vmem:[#allocation13 + $0x7f8] sm:$0xff]  ;;  %s435_s16 = scalar_lea.vmem [#allocation16], %s2699_s1  ;;  %s3928_s18 = sld [smem:[#allocation2]] }
 0x334   : > { %v1963_v48 = vmul.f32 %v1962_v32, %v3761_v57  ;;  %v1970_v50 = vmul.f32 %v1969_v45, %v3761_v57  ;;  %v1967_v53 = vstv %s2732_s3  ;;  %v2023_v57 = vld [vmem:[#allocation11 + $0x770] sm:$0xff]  ;;  %v2125_v11 = vld [vmem:[#allocation13 + $0x678] sm:$0xff]  ;;  %s2513_s2 = sshll.u32 %s435_s16, 4  ;;  %s2496_s1 = scalar_lea.sflag [#allocation5], %s3563_s0  ;;  %s3935_s2 = int_to_ptr.vmem [resolvable:$true] %s2513_s2 }
 0x335   : > { %2873 = vmatpush3.bf16.msra.mxu1 %v1817_v15  ;;  %v2156_v13 = vld [vmem:[#allocation13 + $0x770] sm:$0xff]  ;;  %v2157_v15 = vld [vmem:[#allocation13 + $0x778] sm:$0xff] }
 0x336   : > { %1895 = vmatmul.mubr.bf16.vlgmr.msra.gmra.mxu0 %v1848_v10 }
 0x337   : > { %2397 = vmatprep.mubr.bf16.mxu0 %v2358_v17 }
 0x338   : > { %1935 = vmatmul.mubr.bf16.vlgmr.msra.gmra.mxu1 %v1856_v16 }
 0x339   : > { %2437 = vmatprep.mubr.bf16.mxu1 %v2360_v18 }
 0x3f6   : > { %v2852_v2 = vpop.f32.mrf.mxu0 }
 0x3f8   : > { %v2874_v19 = vpop.f32.mrf.mxu1  ;;  %v2853_v20 = vpop.f32.mrf.mxu0 }
 0x3f9   : > { %v2854_v21 = vadd.f32 %v2853_v20, %v2852_v2 }
 0x3fa   : > { %v2875_v23 = vpop.f32.mrf.mxu1  ;;  %v2855_v24 = vpop.f32.mrf.mxu0 }
 0x3fb   : > { %v2876_v25 = vadd.f32 %v2875_v23, %v2874_v19 }
 0x3fc   : > { %v2877_v27 = vpop.f32.mrf.mxu1  ;;  %v2856_v28 = vpop.f32.mrf.mxu0 }
 0x3fd   : > { %v1937_v30 = vadd.f32 %v2876_v25, %v2854_v21  ;;  %v2006_v27 = vld [vmem:[#allocation11 + $0x6e8] sm:$0xff]  ;;  %v2138_v28 = vld [vmem:[#allocation13 + $0x6e0] sm:$0xff] }
 0x3fe   : > { %v2878_v31 = vpop.f32.mrf.mxu1 }
 0x3ff   : > { %v1944_v34 = vadd.f32 %v1943_v26, %v1937_v30  ;;  %v1947_v40 = vadd.f32 %v1946_v38, %v1937_v30  ;;  %v2005_v26 = vld [vmem:[#allocation11 + $0x6e0] sm:$0xff]  ;;  %v2038_v38 = vld [vmem:[#allocation11 + $0x7e8] sm:$0xff] }
 0x401   : > { %v1948_v35 = vmul.f32 1.442695, %v1944_v34  ;;  %v3840_v36 = vadd.f32 %v1944_v34, %v1452_v33  ;;  %v1952_v37 = vrot.slane %v1947_v40, 1 }
 0x403   : > { %3045 = vpow2.f32 %v1948_v35  ;;  %v2037_v35 = vld [vmem:[#allocation11 + $0x7e0] sm:$0xff] }
 0x410   : > { %v3046_v42 = vpop.eup %3045 }
 0x411   : > { %v1950_v43 = vmul.f32 %v3046_v42, %v1472_v41 }
 0x413   : > { %v1954_v47 = vadd.f32 %v1952_v37, %v1950_v43  ;;  %v2139_v43 = vld [vmem:[#allocation13 + $0x6e8] sm:$0xff]  ;;  %v1989_v37 = vld [vmem:[#allocation11 + $0x660] sm:$0xff] }
 0x415   : > { %v1965_v49 = vmul.f32 %v1964_v44, %v1954_v47  ;;  %v1972_v14 = vmul.f32 %v1971_v46, %v1954_v47  ;;  %v2170_v47 = vld [vmem:[#allocation13 + $0x7e0] sm:$0xff] }
 0x417   : > { %v1966_v51 = vadd.f32 %v1965_v49, %v1963_v48  ;;  %v3845_v52 = vadd.f32 %v1972_v14, %v1970_v50  ;;  %v2171_v48 = vld [vmem:[#allocation13 + $0x7e8] sm:$0xff] }
 0x418   : > { %v1990_v49 = vld [vmem:[#allocation11 + $0x668] sm:$0xff] }
 0x419   : > { %v3847_v54 = vadd.f32 %v1967_v53, %v1966_v51 }
 0x41b   : > { %v3851_v63 = vrot.slane %v3847_v54, %v3585_v12 }
 0x41d   : > { %v2075_v7 = vmul.f32 %v3851_v63, %v2007_v56  ;;  %v2076_v8 = vmul.f32 %v3851_v63, %v2008_v1  ;;  %v2107_v9 = vmul.f32 %v3851_v63, %v2039_v60  ;;  %v2108_v10 = vmul.f32 %v3851_v63, %v2040_v61  ;;  %v2122_v56 = vld [vmem:[#allocation13 + $0x660] sm:$0xff]  ;;  %v2123_v61 = vld [vmem:[#allocation13 + $0x668] sm:$0xff] }
 0x41e   : > { %v2059_v12 = vmul.f32 %v3851_v63, %v1991_v62  ;;  %v2060_v16 = vmul.f32 %v3851_v63, %v1992_v0  ;;  %v2091_v22 = vmul.f32 %v3851_v63, %v2023_v57  ;;  %v2092_v17 = vmul.f32 %v3851_v63, %v2024_v3  ;;  %v2021_v1 = vld [vmem:[#allocation11 + $0x760] sm:$0xff]  ;;  %v2022_v62 = vld [vmem:[#allocation11 + $0x768] sm:$0xff] }
 0x41f   : > { %v2204_v18 = vadd.f32 %v2140_v55, %v2075_v7  ;;  %v2205_v2 = vadd.f32 %v2141_v59, %v2076_v8  ;;  %v2236_v19 = vadd.f32 %v2172_v5, %v2107_v9  ;;  %v2237_v20 = vadd.f32 %v2173_v58, %v2108_v10  ;;  %v2154_v5 = vld [vmem:[#allocation13 + $0x760] sm:$0xff]  ;;  %v2003_v58 = vld [vmem:[#allocation11 + $0x6d0] sm:$0xff]  ;;  %v2155_v10 = vld [vmem:[#allocation13 + $0x768] sm:$0xff] }
 0x420   : > { %v2188_v21 = vadd.f32 %v2124_v6, %v2059_v12  ;;  %v2189_v23 = vadd.f32 %v2125_v11, %v2060_v16  ;;  %v2220_v24 = vadd.f32 %v2156_v13, %v2091_v22  ;;  %v2221_v25 = vadd.f32 %v2157_v15, %v2092_v17  ;;  %v2004_v11 = vld [vmem:[#allocation11 + $0x6d8] sm:$0xff]  ;;  %v2136_v22 = vld [vmem:[#allocation13 + $0x6d0] sm:$0xff] }
 0x421   : > { %v2268_v30 = vmax.f32 %v2204_v18, 0.0  ;;  %v2269_v31 = vmax.f32 %v2205_v2, 0.0  ;;  %v2300_v33 = vmax.f32 %v2236_v19, 0.0  ;;  %v2301_v34 = vmax.f32 %v2237_v20, 0.0  ;;  %v2035_v17 = vld [vmem:[#allocation11 + $0x7d0] sm:$0xff]  ;;  %v2036_v18 = vld [vmem:[#allocation11 + $0x7d8] sm:$0xff] }
 0x422   : > { %v2252_v39 = vmax.f32 %v2188_v21, 0.0  ;;  %v2253_v40 = vmax.f32 %v2189_v23, 0.0  ;;  %v2284_v41 = vmax.f32 %v2220_v24, 0.0  ;;  %v2285_v42 = vmax.f32 %v2221_v25, 0.0  ;;  %v2137_v23 = vld [vmem:[#allocation13 + $0x6d8] sm:$0xff]  ;;  %v1987_v24 = vld [vmem:[#allocation11 + $0x650] sm:$0xff] }
 0x423   : > { %v2319_v32 = vpack.c.bf16 %v2269_v31, %v2268_v30  ;;  %v2335_v44 = vpack.c.bf16 %v2301_v34, %v2300_v33  ;;  %v2073_v45 = vmul.f32 %v3851_v63, %v2005_v26  ;;  %v2074_v46 = vmul.f32 %v3851_v63, %v2006_v27  ;;  %v2168_v30 = vld [vmem:[#allocation13 + $0x7d0] sm:$0xff]  ;;  %v2169_v31 = vld [vmem:[#allocation13 + $0x7d8] sm:$0xff] }
 0x424   : > { %v2311_v50 = vpack.c.bf16 %v2253_v40, %v2252_v39  ;;  %v2327_v14 = vpack.c.bf16 %v2285_v42, %v2284_v41  ;;  %v2105_v53 = vmul.f32 %v3851_v63, %v2037_v35  ;;  %v2106_v51 = vmul.f32 %v3851_v63, %v2038_v38  ;;  %v1988_v33 = vld [vmem:[#allocation11 + $0x658] sm:$0xff]  ;;  %v2120_v40 = vld [vmem:[#allocation13 + $0x650] sm:$0xff] }
 0x425   : > { %2880 = vmatprep.subr.bf16.mxu0 %v2319_v32  ;;  %2902 = vmatprep.subr.bf16.mxu1 %v2335_v44  ;;  %v2202_v55 = vadd.f32 %v2138_v28, %v2073_v45  ;;  %v2203_v59 = vadd.f32 %v2139_v43, %v2074_v46  ;;  %v2057_v60 = vmul.f32 %v3851_v63, %v1989_v37  ;;  %v2019_v41 = vld [vmem:[#allocation11 + $0x750] sm:$0xff]  ;;  %v2121_v44 = vld [vmem:[#allocation13 + $0x658] sm:$0xff] }
 0x426   : > { %2881 = vmatpush3.bf16.msra.mxu0 %v2311_v50  ;;  %2903 = vmatpush3.bf16.msra.mxu1 %v2327_v14  ;;  %v2234_v0 = vadd.f32 %v2170_v47, %v2105_v53  ;;  %v2235_v57 = vadd.f32 %v2171_v48, %v2106_v51  ;;  %v2058_v3 = vmul.f32 %v3851_v63, %v1990_v49  ;;  %v2020_v45 = vld [vmem:[#allocation11 + $0x758] sm:$0xff]  ;;  %v2152_v50 = vld [vmem:[#allocation13 + $0x750] sm:$0xff]  ;;  %v2001_v14 = vld [vmem:[#allocation11 + $0x6c0] sm:$0xff] }
 0x427   : > { %v2266_v6 = vmax.f32 %v2202_v55, 0.0  ;;  %v2267_v7 = vmax.f32 %v2203_v59, 0.0  ;;  %v2186_v8 = vadd.f32 %v2122_v56, %v2057_v60  ;;  %v2089_v9 = vmul.f32 %v3851_v63, %v2021_v1  ;;  %v2153_v55 = vld [vmem:[#allocation13 + $0x758] sm:$0xff]  ;;  %v2002_v59 = vld [vmem:[#allocation11 + $0x6c8] sm:$0xff] }
 0x428   : > { %v2298_v13 = vmax.f32 %v2234_v0, 0.0  ;;  %v2299_v15 = vmax.f32 %v2235_v57, 0.0  ;;  %v2187_v12 = vadd.f32 %v2123_v61, %v2058_v3  ;;  %v2090_v16 = vmul.f32 %v3851_v63, %v2022_v62  ;;  %v2134_v57 = vld [vmem:[#allocation13 + $0x6c0] sm:$0xff] }
 0x429   : > { %v2318_v2 = vpack.c.bf16 %v2267_v7, %v2266_v6  ;;  %v2250_v19 = vmax.f32 %v2186_v8, 0.0  ;;  %v2218_v20 = vadd.f32 %v2154_v5, %v2089_v9  ;;  %v2071_v21 = vmul.f32 %v3851_v63, %v2003_v58  ;;  %v2033_v3 = vld [vmem:[#allocation11 + $0x7c0] sm:$0xff]  ;;  %v2034_v5 = vld [vmem:[#allocation11 + $0x7c8] sm:$0xff] }
 0x42a   : > { %v2334_v25 = vpack.c.bf16 %v2299_v15, %v2298_v13  ;;  %v2251_v26 = vmax.f32 %v2187_v12, 0.0  ;;  %v2219_v27 = vadd.f32 %v2155_v10, %v2090_v16  ;;  %v2072_v28 = vmul.f32 %v3851_v63, %v2004_v11  ;;  %v2135_v9 = vld [vmem:[#allocation13 + $0x6c8] sm:$0xff]  ;;  %v1985_v10 = vld [vmem:[#allocation11 + $0x640] sm:$0xff] }
 0x42b   : > { %2882 = vmatprep.subr.bf16.mxu0 %v2318_v2  ;;  %v2282_v34 = vmax.f32 %v2218_v20, 0.0  ;;  %v2200_v35 = vadd.f32 %v2136_v22, %v2071_v21  ;;  %v2103_v38 = vmul.f32 %v3851_v63, %v2035_v17  ;;  %v2104_v39 = vmul.f32 %v3851_v63, %v2036_v18  ;;  %v2166_v16 = vld [vmem:[#allocation13 + $0x7c0] sm:$0xff]  ;;  %v2167_v22 = vld [vmem:[#allocation13 + $0x7c8] sm:$0xff] }
 0x42c   : > { %2904 = vmatprep.subr.bf16.mxu1 %v2334_v25  ;;  %v2310_v42 = vpack.c.bf16 %v2251_v26, %v2250_v19  ;;  %v2283_v43 = vmax.f32 %v2219_v27, 0.0  ;;  %v2201_v37 = vadd.f32 %v2137_v23, %v2072_v28  ;;  %v2055_v32 = vmul.f32 %v3851_v63, %v1987_v24  ;;  %v1986_v17 = vld [vmem:[#allocation11 + $0x648] sm:$0xff]  ;;  %v2118_v21 = vld [vmem:[#allocation13 + $0x640] sm:$0xff] }
 0x42d   : > { %v2264_v46 = vmax.f32 %v2200_v35, 0.0  ;;  %v2232_v47 = vadd.f32 %v2168_v30, %v2103_v38  ;;  %v2233_v48 = vadd.f32 %v2169_v31, %v2104_v39  ;;  %v2056_v49 = vmul.f32 %v3851_v63, %v1988_v33  ;;  %v2017_v23 = vld [vmem:[#allocation11 + $0x740] sm:$0xff]  ;;  %v2119_v28 = vld [vmem:[#allocation13 + $0x648] sm:$0xff]  ;;  %v1999_v39 = vld [vmem:[#allocation11 + $0x6b0] sm:$0xff] }
 0x42e   : > { %2883 = vmatpush3.bf16.msra.mxu0 %v2310_v42  ;;  %v2326_v53 = vpack.c.bf16 %v2283_v43, %v2282_v34  ;;  %v2265_v51 = vmax.f32 %v2201_v37, 0.0  ;;  %v2184_v56 = vadd.f32 %v2120_v40, %v2055_v32  ;;  %v2087_v1 = vmul.f32 %v3851_v63, %v2019_v41  ;;  %v2018_v30 = vld [vmem:[#allocation11 + $0x748] sm:$0xff]  ;;  %v2150_v38 = vld [vmem:[#allocation13 + $0x740] sm:$0xff]  ;;  %v2000_v32 = vld [vmem:[#allocation11 + $0x6b8] sm:$0xff] }
 0x42f   : > { %v2296_v60 = vmax.f32 %v2232_v47, 0.0  ;;  %v2297_v61 = vmax.f32 %v2233_v48, 0.0  ;;  %v2185_v62 = vadd.f32 %v2121_v44, %v2056_v49  ;;  %v2088_v0 = vmul.f32 %v3851_v63, %v2020_v45  ;;  %v2151_v37 = vld [vmem:[#allocation13 + $0x748] sm:$0xff]  ;;  %v2132_v48 = vld [vmem:[#allocation13 + $0x6b0] sm:$0xff] }
 0x430   : > { %2905 = vmatpush3.bf16.msra.mxu1 %v2326_v53  ;;  %v2317_v58 = vpack.c.bf16 %v2265_v51, %v2264_v46  ;;  %v2248_v6 = vmax.f32 %v2184_v56, 0.0  ;;  %v2216_v7 = vadd.f32 %v2152_v50, %v2087_v1  ;;  %v2069_v8 = vmul.f32 %v3851_v63, %v2001_v14  ;;  %v2031_v49 = vld [vmem:[#allocation11 + $0x7b0] sm:$0xff]  ;;  %v2032_v50 = vld [vmem:[#allocation11 + $0x7b8] sm:$0xff] }
 0x431   : > { %v2333_v11 = vpack.c.bf16 %v2297_v61, %v2296_v60  ;;  %v2249_v13 = vmax.f32 %v2185_v62, 0.0  ;;  %v2217_v15 = vadd.f32 %v2153_v55, %v2088_v0  ;;  %v2070_v12 = vmul.f32 %v3851_v63, %v2002_v59  ;;  %v2133_v1 = vld [vmem:[#allocation13 + $0x6b8] sm:$0xff]  ;;  %v1983_v55 = vld [vmem:[#allocation11 + $0x630] sm:$0xff] }
 0x432   : > { %2884 = vmatprep.subr.bf16.mxu0 %v2317_v58  ;;  %v2280_v18 = vmax.f32 %v2216_v7, 0.0  ;;  %v2198_v2 = vadd.f32 %v2134_v57, %v2069_v8  ;;  %v2101_v19 = vmul.f32 %v3851_v63, %v2033_v3  ;;  %v2102_v20 = vmul.f32 %v3851_v63, %v2034_v5  ;;  %v2164_v0 = vld [vmem:[#allocation13 + $0x7b0] sm:$0xff]  ;;  %v2165_v57 = vld [vmem:[#allocation13 + $0x7b8] sm:$0xff] }
 0x433   : > { %2906 = vmatprep.subr.bf16.mxu1 %v2333_v11  ;;  %v2309_v24 = vpack.c.bf16 %v2249_v13, %v2248_v6  ;;  %v2281_v25 = vmax.f32 %v2217_v15, 0.0  ;;  %v2199_v26 = vadd.f32 %v2135_v9, %v2070_v12  ;;  %v2053_v27 = vmul.f32 %v3851_v63, %v1985_v10  ;;  %v1984_v3 = vld [vmem:[#allocation11 + $0x638] sm:$0xff]  ;;  %v2116_v8 = vld [vmem:[#allocation13 + $0x630] sm:$0xff] }
 0x434   : > { %v2262_v31 = vmax.f32 %v2198_v2, 0.0  ;;  %v2230_v33 = vadd.f32 %v2166_v16, %v2101_v19  ;;  %v2231_v34 = vadd.f32 %v2167_v22, %v2102_v20  ;;  %v2054_v35 = vmul.f32 %v3851_v63, %v1986_v17  ;;  %v2015_v9 = vld [vmem:[#allocation11 + $0x730] sm:$0xff]  ;;  %v2117_v12 = vld [vmem:[#allocation13 + $0x638] sm:$0xff]  ;;  %v1997_v20 = vld [vmem:[#allocation11 + $0x6a0] sm:$0xff] }
 0x435   : > { %2885 = vmatpush3.bf16.msra.mxu0 %v2309_v24  ;;  %v2325_v40 = vpack.c.bf16 %v2281_v25, %v2280_v18  ;;  %v2263_v41 = vmax.f32 %v2199_v26, 0.0  ;;  %v2182_v42 = vadd.f32 %v2118_v21, %v2053_v27  ;;  %v2085_v43 = vmul.f32 %v3851_v63, %v2017_v23  ;;  %v2016_v16 = vld [vmem:[#allocation11 + $0x738] sm:$0xff]  ;;  %v2148_v19 = vld [vmem:[#allocation13 + $0x730] sm:$0xff]  ;;  %v1998_v27 = vld [vmem:[#allocation11 + $0x6a8] sm:$0xff] }
 0x436   : > { %v2294_v44 = vmax.f32 %v2230_v33, 0.0  ;;  %v2295_v45 = vmax.f32 %v2231_v34, 0.0  ;;  %v2183_v46 = vadd.f32 %v2119_v28, %v2054_v35  ;;  %v2086_v47 = vmul.f32 %v3851_v63, %v2018_v30  ;;  %v2149_v26 = vld [vmem:[#allocation13 + $0x738] sm:$0xff]  ;;  %v2130_v34 = vld [vmem:[#allocation13 + $0x6a0] sm:$0xff] }
 0x437   : > { %2907 = vmatpush3.bf16.msra.mxu1 %v2325_v40  ;;  %v2316_v14 = vpack.c.bf16 %v2263_v41, %v2262_v31  ;;  %v2246_v53 = vmax.f32 %v2182_v42, 0.0  ;;  %v2214_v51 = vadd.f32 %v2150_v38, %v2085_v43  ;;  %v2067_v56 = vmul.f32 %v3851_v63, %v1999_v39  ;;  %v2029_v35 = vld [vmem:[#allocation11 + $0x7a0] sm:$0xff]  ;;  %v2030_v38 = vld [vmem:[#allocation11 + $0x7a8] sm:$0xff] }
 0x438   : > { %v2332_v59 = vpack.c.bf16 %v2295_v45, %v2294_v44  ;;  %v2247_v60 = vmax.f32 %v2183_v46, 0.0  ;;  %v2215_v61 = vadd.f32 %v2151_v37, %v2086_v47  ;;  %v2068_v62 = vmul.f32 %v3851_v63, %v2000_v32  ;;  %v2131_v43 = vld [vmem:[#allocation13 + $0x6a8] sm:$0xff]  ;;  %v1981_v37 = vld [vmem:[#allocation11 + $0x620] sm:$0xff] }
 0x439   : > { %2886 = vmatprep.subr.bf16.mxu0 %v2316_v14  ;;  %v2278_v5 = vmax.f32 %v2214_v51, 0.0  ;;  %v2196_v58 = vadd.f32 %v2132_v48, %v2067_v56  ;;  %v2099_v6 = vmul.f32 %v3851_v63, %v2031_v49  ;;  %v2100_v7 = vmul.f32 %v3851_v63, %v2032_v50  ;;  %v2162_v47 = vld [vmem:[#allocation13 + $0x7a0] sm:$0xff]  ;;  %v2163_v48 = vld [vmem:[#allocation13 + $0x7a8] sm:$0xff] }
 0x43a   : > { %2908 = vmatprep.subr.bf16.mxu1 %v2332_v59  ;;  %v2308_v10 = vpack.c.bf16 %v2247_v60, %v2246_v53  ;;  %v2279_v11 = vmax.f32 %v2215_v61, 0.0  ;;  %v2197_v13 = vadd.f32 %v2133_v1, %v2068_v62  ;;  %v2051_v15 = vmul.f32 %v3851_v63, %v1983_v55  ;;  %v1982_v49 = vld [vmem:[#allocation11 + $0x628] sm:$0xff]  ;;  %v2114_v56 = vld [vmem:[#allocation13 + $0x620] sm:$0xff] }
 0x43b   : > { %v2260_v22 = vmax.f32 %v2196_v58, 0.0  ;;  %v2228_v17 = vadd.f32 %v2164_v0, %v2099_v6  ;;  %v2229_v18 = vadd.f32 %v2165_v57, %v2100_v7  ;;  %v2052_v2 = vmul.f32 %v3851_v63, %v1984_v3  ;;  %v2013_v1 = vld [vmem:[#allocation11 + $0x720] sm:$0xff]  ;;  %v2115_v62 = vld [vmem:[#allocation13 + $0x628] sm:$0xff]  ;;  %v1995_v7 = vld [vmem:[#allocation11 + $0x690] sm:$0xff] }
 0x43c   : > { %2887 = vmatpush3.bf16.msra.mxu0 %v2308_v10  ;;  %v2324_v21 = vpack.c.bf16 %v2279_v11, %v2278_v5  ;;  %v2261_v23 = vmax.f32 %v2197_v13, 0.0  ;;  %v2180_v24 = vadd.f32 %v2116_v8, %v2051_v15  ;;  %v2083_v25 = vmul.f32 %v3851_v63, %v2015_v9  ;;  %v2014_v0 = vld [vmem:[#allocation11 + $0x728] sm:$0xff]  ;;  %v2146_v6 = vld [vmem:[#allocation13 + $0x720] sm:$0xff]  ;;  %v1996_v15 = vld [vmem:[#allocation11 + $0x698] sm:$0xff] }
 0x43d   : > { %v2292_v28 = vmax.f32 %v2228_v17, 0.0  ;;  %v2293_v30 = vmax.f32 %v2229_v18, 0.0  ;;  %v2181_v31 = vadd.f32 %v2117_v12, %v2052_v2  ;;  %v2084_v33 = vmul.f32 %v3851_v63, %v2016_v16  ;;  %v2147_v13 = vld [vmem:[#allocation13 + $0x728] sm:$0xff]  ;;  %v2128_v18 = vld [vmem:[#allocation13 + $0x690] sm:$0xff] }
 0x43e   : > { %2909 = vmatpush3.bf16.msra.mxu1 %v2324_v21  ;;  %v2315_v39 = vpack.c.bf16 %v2261_v23, %v2260_v22  ;;  %v2244_v40 = vmax.f32 %v2180_v24, 0.0  ;;  %v2212_v41 = vadd.f32 %v2148_v19, %v2083_v25  ;;  %v2065_v42 = vmul.f32 %v3851_v63, %v1997_v20  ;;  %v2027_v2 = vld [vmem:[#allocation11 + $0x790] sm:$0xff]  ;;  %v2028_v19 = vld [vmem:[#allocation11 + $0x798] sm:$0xff] }
 0x43f   : > { %v2331_v32 = vpack.c.bf16 %v2293_v30, %v2292_v28  ;;  %v2245_v44 = vmax.f32 %v2181_v31, 0.0  ;;  %v2213_v45 = vadd.f32 %v2149_v26, %v2084_v33  ;;  %v2066_v46 = vmul.f32 %v3851_v63, %v1998_v27  ;;  %v2129_v25 = vld [vmem:[#allocation13 + $0x698] sm:$0xff]  ;;  %v1979_v26 = vld [vmem:[#allocation11 + $0x610] sm:$0xff] }
 0x440   : > { %2888 = vmatprep.subr.bf16.mxu0 %v2315_v39  ;;  %v2276_v50 = vmax.f32 %v2212_v41, 0.0  ;;  %v2194_v14 = vadd.f32 %v2130_v34, %v2065_v42  ;;  %v2097_v53 = vmul.f32 %v3851_v63, %v2029_v35  ;;  %v2098_v51 = vmul.f32 %v3851_v63, %v2030_v38  ;;  %v2160_v33 = vld [vmem:[#allocation13 + $0x790] sm:$0xff]  ;;  %v2161_v34 = vld [vmem:[#allocation13 + $0x798] sm:$0xff] }
 0x441   : > { %2910 = vmatprep.subr.bf16.mxu1 %v2331_v32  ;;  %v2307_v55 = vpack.c.bf16 %v2245_v44, %v2244_v40  ;;  %v2277_v59 = vmax.f32 %v2213_v45, 0.0  ;;  %v2195_v60 = vadd.f32 %v2131_v43, %v2066_v46  ;;  %v2049_v61 = vmul.f32 %v3851_v63, %v1981_v37  ;;  %v1980_v35 = vld [vmem:[#allocation11 + $0x618] sm:$0xff]  ;;  %v2112_v42 = vld [vmem:[#allocation13 + $0x610] sm:$0xff] }
 0x442   : > { %v2258_v57 = vmax.f32 %v2194_v14, 0.0  ;;  %v2226_v3 = vadd.f32 %v2162_v47, %v2097_v53  ;;  %v2227_v5 = vadd.f32 %v2163_v48, %v2098_v51  ;;  %v2050_v58 = vmul.f32 %v3851_v63, %v1982_v49  ;;  %v2011_v43 = vld [vmem:[#allocation11 + $0x710] sm:$0xff]  ;;  %v2113_v46 = vld [vmem:[#allocation13 + $0x618] sm:$0xff]  ;;  %v1993_v51 = vld [vmem:[#allocation11 + $0x680] sm:$0xff] }
 0x443   : > { %2889 = vmatpush3.bf16.msra.mxu0 %v2307_v55  ;;  %v2323_v8 = vpack.c.bf16 %v2277_v59, %v2276_v50  ;;  %v2259_v9 = vmax.f32 %v2195_v60, 0.0  ;;  %v2178_v10 = vadd.f32 %v2114_v56, %v2049_v61  ;;  %v2081_v11 = vmul.f32 %v3851_v63, %v2013_v1  ;;  %v2012_v47 = vld [vmem:[#allocation11 + $0x718] sm:$0xff]  ;;  %v2144_v53 = vld [vmem:[#allocation13 + $0x710] sm:$0xff]  ;;  %v1994_v61 = vld [vmem:[#allocation11 + $0x688] sm:$0xff] }
 0x444   : > { %v2290_v12 = vmax.f32 %v2226_v3, 0.0  ;;  %v2291_v16 = vmax.f32 %v2227_v5, 0.0  ;;  %v2179_v22 = vadd.f32 %v2115_v62, %v2050_v58  ;;  %v2082_v17 = vmul.f32 %v3851_v63, %v2014_v0  ;;  %v2145_v60 = vld [vmem:[#allocation13 + $0x718] sm:$0xff]  ;;  %v2126_v5 = vld [vmem:[#allocation13 + $0x680] sm:$0xff] }
 0x445   : > { %2911 = vmatpush3.bf16.msra.mxu1 %v2323_v8  ;;  %v2314_v20 = vpack.c.bf16 %v2259_v9, %v2258_v57  ;;  %v2242_v21 = vmax.f32 %v2178_v10, 0.0  ;;  %v2210_v23 = vadd.f32 %v2146_v6, %v2081_v11  ;;  %v2063_v24 = vmul.f32 %v3851_v63, %v1995_v7  ;;  %v2025_v58 = vld [vmem:[#allocation11 + $0x780] sm:$0xff]  ;;  %v2026_v6 = vld [vmem:[#allocation11 + $0x788] sm:$0xff] }
 0x446   : > { %v2330_v27 = vpack.c.bf16 %v2291_v16, %v2290_v12  ;;  %v2243_v28 = vmax.f32 %v2179_v22, 0.0  ;;  %v2211_v30 = vadd.f32 %v2147_v13, %v2082_v17  ;;  %v2064_v31 = vmul.f32 %v3851_v63, %v1996_v15  ;;  %v2127_v11 = vld [vmem:[#allocation13 + $0x688] sm:$0xff]  ;;  %v1977_v13 = vld [vmem:[#allocation11 + $0x600] sm:$0xff] }
 0x447   : > { %2890 = vmatprep.subr.bf16.mxu0 %v2314_v20  ;;  %v2274_v38 = vmax.f32 %v2210_v23, 0.0  ;;  %v2192_v39 = vadd.f32 %v2128_v18, %v2063_v24  ;;  %v2095_v40 = vmul.f32 %v3851_v63, %v2027_v2  ;;  %v2096_v41 = vmul.f32 %v3851_v63, %v2028_v19  ;;  %v2158_v17 = vld [vmem:[#allocation13 + $0x780] sm:$0xff]  ;;  %v2159_v18 = vld [vmem:[#allocation13 + $0x788] sm:$0xff] }
 0x448   : > { %2912 = vmatprep.subr.bf16.mxu1 %v2330_v27  ;;  %v2306_v37 = vpack.c.bf16 %v2243_v28, %v2242_v21  ;;  %v2275_v32 = vmax.f32 %v2211_v30, 0.0  ;;  %v2193_v44 = vadd.f32 %v2129_v25, %v2064_v31  ;;  %v2047_v45 = vmul.f32 %v3851_v63, %v1979_v26  ;;  %v1978_v2 = vld [vmem:[#allocation11 + $0x608] sm:$0xff]  ;;  %v2110_v24 = vld [vmem:[#allocation13 + $0x600] sm:$0xff] }
 0x449   : > { %v2256_v48 = vmax.f32 %v2192_v39, 0.0  ;;  %v2224_v49 = vadd.f32 %v2160_v33, %v2095_v40  ;;  %v2225_v50 = vadd.f32 %v2161_v34, %v2096_v41  ;;  %v2048_v14 = vmul.f32 %v3851_v63, %v1980_v35  ;;  %v2009_v25 = vld [vmem:[#allocation11 + $0x700] sm:$0xff]  ;;  %v2111_v31 = vld [vmem:[#allocation13 + $0x608] sm:$0xff] }
 0x44a   : > { %2891 = vmatpush3.bf16.msra.mxu0 %v2306_v37  ;;  %v2322_v56 = vpack.c.bf16 %v2275_v32, %v2274_v38  ;;  %v2257_v1 = vmax.f32 %v2193_v44, 0.0  ;;  %v2176_v55 = vadd.f32 %v2112_v42, %v2047_v45  ;;  %v2079_v59 = vmul.f32 %v3851_v63, %v2011_v43  ;;  %v2010_v33 = vld [vmem:[#allocation11 + $0x708] sm:$0xff]  ;;  %v2142_v40 = vld [vmem:[#allocation13 + $0x700] sm:$0xff] }
 0x44b   : > { %v2288_v62 = vmax.f32 %v2224_v49, 0.0  ;;  %v2289_v0 = vmax.f32 %v2225_v50, 0.0  ;;  %v2177_v57 = vadd.f32 %v2113_v46, %v2048_v14  ;;  %v2080_v3 = vmul.f32 %v3851_v63, %v2012_v47  ;;  %v2143_v32 = vld [vmem:[#allocation13 + $0x708] sm:$0xff] }
 0x44c   : > { %2913 = vmatpush3.bf16.msra.mxu1 %v2322_v56  ;;  %v2313_v7 = vpack.c.bf16 %v2257_v1, %v2256_v48  ;;  %v2240_v8 = vmax.f32 %v2176_v55, 0.0  ;;  %v2208_v9 = vadd.f32 %v2144_v53, %v2079_v59  ;;  %v2061_v10 = vmul.f32 %v3851_v63, %v1993_v51 }
 0x44d   : > { %v2329_v15 = vpack.c.bf16 %v2289_v0, %v2288_v62  ;;  %v2241_v12 = vmax.f32 %v2177_v57, 0.0  ;;  %v2209_v16 = vadd.f32 %v2145_v60, %v2080_v3  ;;  %v2062_v22 = vmul.f32 %v3851_v63, %v1994_v61 }
 0x44e   : > { %2892 = vmatprep.subr.bf16.mxu0 %v2313_v7  ;;  %v2272_v19 = vmax.f32 %v2208_v9, 0.0  ;;  %v2190_v20 = vadd.f32 %v2126_v5, %v2061_v10  ;;  %v2093_v21 = vmul.f32 %v3851_v63, %v2025_v58  ;;  %v2094_v23 = vmul.f32 %v3851_v63, %v2026_v6 }
 0x44f   : > { %2914 = vmatprep.subr.bf16.mxu1 %v2329_v15  ;;  %v2305_v26 = vpack.c.bf16 %v2241_v12, %v2240_v8  ;;  %v2273_v27 = vmax.f32 %v2209_v16, 0.0  ;;  %v2191_v28 = vadd.f32 %v2127_v11, %v2062_v22  ;;  %v2045_v30 = vmul.f32 %v3851_v63, %v1977_v13 }
 0x450   : > { %v2254_v34 = vmax.f32 %v2190_v20, 0.0  ;;  %v2222_v35 = vadd.f32 %v2158_v17, %v2093_v21  ;;  %v2223_v38 = vadd.f32 %v2159_v18, %v2094_v23  ;;  %v2046_v39 = vmul.f32 %v3851_v63, %v1978_v2 }
 0x451   : > { %2893 = vmatpush3.bf16.msra.mxu0 %v2305_v26  ;;  %v2321_v41 = vpack.c.bf16 %v2273_v27, %v2272_v19  ;;  %v2255_v42 = vmax.f32 %v2191_v28, 0.0  ;;  %v2174_v43 = vadd.f32 %v2110_v24, %v2045_v30  ;;  %v2077_v37 = vmul.f32 %v3851_v63, %v2009_v25 }
 0x452   : > { %v2286_v44 = vmax.f32 %v2222_v35, 0.0  ;;  %v2287_v45 = vmax.f32 %v2223_v38, 0.0  ;;  %v2175_v46 = vadd.f32 %v2111_v31, %v2046_v39  ;;  %v2078_v47 = vmul.f32 %v3851_v63, %v2010_v33 }
 0x453   : > { %2915 = vmatpush3.bf16.msra.mxu1 %v2321_v41  ;;  %v2312_v48 = vpack.c.bf16 %v2255_v42, %v2254_v34  ;;  %v2238_v49 = vmax.f32 %v2174_v43, 0.0  ;;  %v2206_v50 = vadd.f32 %v2142_v40, %v2077_v37  ;;  %v2351_v1 = vrot.slane %v3833_v4, %v3593_v29 }
 0x454   : > { %v2328_v14 = vpack.c.bf16 %v2287_v45, %v2286_v44  ;;  %v2239_v53 = vmax.f32 %v2175_v46, 0.0  ;;  %v2207_v51 = vadd.f32 %v2143_v32, %v2078_v47  ;;  %v2446_v6 = vstv %s2735_s26 }
 0x455   : > { %2894 = vmatprep.subr.bf16.mxu0 %v2312_v48  ;;  %v2270_v56 = vmax.f32 %v2206_v50, 0.0  ;;  %v2359_v61 = vcombine.high %v2351_v1, %v2351_v1  ;;  %v2449_v11 = vstv %s2736_s28  ;;  %v1974_v13 = vstv %s2733_s10  ;;  %s3933_s28 = scalar_lea.hbm %s4005_s8, %s2744_s21  ;;  %s3200_s10 = scalar_lea.vmem %s3935_s2, 32 }
 0x456   : > { %2916 = vmatprep.subr.bf16.mxu1 %v2328_v14  ;;  %v2304_v55 = vpack.c.bf16 %v2239_v53, %v2238_v49  ;;  %v2271_v59 = vmax.f32 %v2207_v51, 0.0  ;;  %v1975_v12 = vadd.f32 %v1974_v13, %v3845_v52  ;;  %v2467_v18 = vstv %s2739_s25  ;;  %p3201_p1 = scmp.ne.s32.totalorder %s3935_s2, %s3200_s10 }
 0x457   : > { %v2472_v2 = vstv %s2738_s24  ;;  %v2474_v19 = vstv %s2740_s29  ;;  %v2465_v20 = vstv %s2737_s23  ;;  %v2470_v27 = vstv %s2741_s22  ;;  %s3324_s24 = smov [#allocation16]  }
 0x458   : > { %2895 = vmatpush3.bf16.msra.mxu0 %v2304_v55  ;;  %v2320_v60 = vpack.c.bf16 %v2271_v59, %v2270_v56  ;;  %v2473_v24 = vmul.f32 %v2472_v2, %v3847_v54  ;;  %v2466_v26 = vmul.f32 %v2465_v20, %v3847_v54  ;;  %v2477_v28 = vstv %s2742_s15  ;;  %p3202_p8 = pnand %p3201_p1, %p4036_p4  ;;  %s3204_s23 = sshll.u32 %s3324_s24, 4  ;;  %s3205_s23 = int_to_ptr.vmem [resolvable:$false] %s3204_s23 }
 0x459   : > { %s3206_s25 = scalar_lea.vmem %s3205_s23, 64  ;;  %p3207_p7 = scmp.lt.s32.totalorder %s3935_s2, %s3205_s23 }
 0x45a   : > { %2917 = vmatpush3.bf16.msra.mxu1 %v2320_v60  ;;  %p3203_p5 = pneg %p3202_p8  ;;  %p3208_p11 = scmp.lt.s32.totalorder %s3206_s25, %s3200_s10 }
 0x45b   : > { %2398 = vmatmul.mubr.bf16.vlgmr.msra.gmra.mxu0 %v2351_v1 }
 0x45c   : > { %p3209_p13 = por %p3208_p11, %p3207_p7 }
 0x45d   : > { %2438 = vmatmul.mubr.bf16.vlgmr.msra.gmra.mxu1 %v2359_v61 }
 0x45e   : > { %p3210_p2 = pnand %p3209_p13, %p3203_p5 }
 0x51b   : > { %v2896_v63 = vpop.f32.mrf.mxu0 }
 0x51d   : > { %v2918_v62 = vpop.f32.mrf.mxu1  ;;  %v2897_v0 = vpop.f32.mrf.mxu0 }
 0x51e   : > { %v2898_v57 = vadd.f32 %v2897_v0, %v2896_v63 }
 0x51f   : > { %v2919_v3 = vpop.f32.mrf.mxu1  ;;  %v2899_v5 = vpop.f32.mrf.mxu0 }
 0x520   : > { %v2920_v58 = vadd.f32 %v2919_v3, %v2918_v62 }
 0x521   : > { %v2921_v7 = vpop.f32.mrf.mxu1  ;;  %v2900_v29 = vpop.f32.mrf.mxu0 }
 0x522   : > { %v2440_v4 = vadd.f32 %v2920_v58, %v2898_v57 }
 0x523   : > { %v2922_v8 = vpop.f32.mrf.mxu1 }
 0x524   : > { %v3919_v9 = vadd.f32 %v2446_v6, %v2440_v4  ;;  %v2450_v15 = vadd.f32 %v2449_v11, %v2440_v4 }
 0x526   : > { %v2451_v10 = vmul.f32 1.442695, %v3919_v9  ;;  %v2455_v17 = vrot.slane %v2450_v15, 1 }
 0x528   : > { %3047 = vpow2.f32 %v2451_v10 }
 0x535   : > { %v3048_v16 = vpop.eup %3047 }
 0x536   : > { %v2453_v22 = vmul.f32 %v3048_v16, %v1975_v12 }
 0x538   : > { %v2457_v21 = vadd.f32 %v2455_v17, %v2453_v22 }
 0x53a   : > { %v2468_v23 = vmul.f32 %v2467_v18, %v2457_v21  ;;  %v2475_v25 = vmul.f32 %v2474_v19, %v2457_v21 }
 0x53c   : > { %v2476_v30 = vadd.f32 %v2475_v25, %v2473_v24  ;;  %v2469_v52 = vadd.f32 %v2468_v23, %v2466_v26 }
 0x53e   : > { %v2471_v31 = vadd.f32 %v2470_v27, %v2469_v52  ;;  %v2478_v33 = vadd.f32 %v2477_v28, %v2476_v30 }
 0x540   : > { %v2480_v34 = vrot.slane %v2478_v33, 7  ;;  %v2485_v35 = vmul.f32 %v2471_v31, %v2471_v31  ;;  %v2486_v38 = vmul.f32 %v2478_v33, %v2478_v33 }
 0x542   : > { %v2483_v54 = vsel %vm2482_vm0, %v2471_v31, %v2480_v34  ;;  %v2487_v39 = vadd.f32 %v2486_v38, %v2485_v35 }
 0x543   : > { %2484 = vst [vmem:[%s435_s16] sm:$0x3] %v2483_v54 }
 0x544   : > { %3213 = shalt.err (!%p3210_p2)
}
 0x545   : > { %s3214_s29 = scalar_lea.hbm %s3933_s28, 32  ;;  %s3218_s21 = scalar_lea.hbm %s4005_s8, 64 }
 0x546   : > { %p3215_p9 = scmp.ne.s32.totalorder %s3933_s28, %s3214_s29  ;;  %p3219_p12 = scmp.lt.s32.totalorder %s3933_s28, %s4005_s8 }
 0x547   : > { %p3220_p0 = scmp.lt.s32.totalorder %s3218_s21, %s3214_s29 }
 0x548   : > { %p3216_p3 = pnand %p3215_p9, %p4036_p4 }
 0x549   : > { %p3221_p10 = por %p3220_p0, %p3219_p12 }
 0x54a   : > { %p3217_p6 = pneg %p3216_p3 }
 0x54c   : > { %p3222_p1 = pnand %p3221_p10, %p3217_p6 }
 0x54e   : > { %3225 = shalt.err (!%p3222_p1)
}
 0x54f   : > { %2950 = dma.vmem_to_hbm [thread:$0]  (%p4036_p4), %s3935_s2, 32, %s3933_s28, %s2496_s1   ;;  %v2488_v40 = vmul.f32 0.5, %v2487_v39  ;;  %v2458_v41 = vadd.f32 %v3919_v9, %v3840_v36  ;;  %v2492_v43 = vstv %s3928_s18 }
 0x550   : > { %s2745_s26 = sshll.u32 %s3403_s17, 4  ;;  %s441_s10 = scalar_lea.vmem [#allocation17], %s3563_s0 }
 0x551   : > { %v2489_v42 = vsub.f32 -1.837877, %v2488_v40  ;;  %s2526_s24 = sshll.u32 %s441_s10, 4  ;;  %s2524_s29 = scalar_lea.hbm %s4006_s9, %s2745_s26  ;;  %s2527_s24 = int_to_ptr.vmem [resolvable:$true] %s2526_s24 }
 0x552   : > { %s2501_s22 = scalar_lea.sflag [#allocation18], %s3563_s0  ;;  %s3226_s2 = scalar_lea.vmem %s2527_s24, 16 }
 0x553   : > { %v2490_v37 = vadd.f32 %v2489_v42, %v2458_v41  ;;  %p3227_p8 = scmp.ne.s32.totalorder %s2527_s24, %s3226_s2  ;;  %s3325_s28 = smov [#allocation17]  }
 0x554   : > { %s3230_s1 = sshll.u32 %s3325_s28, 4  ;;  %s3231_s1 = int_to_ptr.vmem [resolvable:$false] %s3230_s1 }
 0x555   : > { %v2493_v32 = vadd.f32 %v2492_v43, %v2490_v37  ;;  %p3228_p5 = pnand %p3227_p8, %p4036_p4  ;;  %s3232_s17 = scalar_lea.vmem %s3231_s1, 32 }
 0x556   : > { %p3233_p11 = scmp.lt.s32.totalorder %s2527_s24, %s3231_s1  ;;  %p3234_p13 = scmp.lt.s32.totalorder %s3232_s17, %s3226_s2 }
 0x557   : > { %2494 = vst [vmem:[%s441_s10] sm:$0x1] %v2493_v32  ;;  %p3229_p7 = pneg %p3228_p5 }
 0x558   : > { %p3235_p2 = por %p3234_p13, %p3233_p11 }
 0x55a   : > { %p3236_p9 = pnand %p3235_p2, %p3229_p7 }
 0x55c   : > { %3239 = shalt.err (!%p3236_p9)
}
 0x55d   : > { %s3240_s18 = scalar_lea.hbm %s2524_s29, 16  ;;  %s3244_s21 = scalar_lea.hbm %s4006_s9, 32 }
 0x55e   : > { %p3241_p3 = scmp.ne.s32.totalorder %s2524_s29, %s3240_s18  ;;  %p3245_p0 = scmp.lt.s32.totalorder %s2524_s29, %s4006_s9 }
 0x55f   : > { %p3246_p10 = scmp.lt.s32.totalorder %s3244_s21, %s3240_s18 }
 0x560   : > { %p3242_p6 = pnand %p3241_p3, %p4036_p4 }
 0x561   : > { %p3247_p1 = por %p3246_p10, %p3245_p0 }
 0x562   : > { %p3243_p12 = pneg %p3242_p6 }
 0x564   : > { %p3248_p8 = pnand %p3247_p1, %p3243_p12 }
 0x566   : > { %3251 = shalt.err (!%p3248_p8)
}
 0x567   : > { %2951 = dma.vmem_to_hbm [thread:$0]  (%p4036_p4), %s2527_s24, 16, %s2524_s29, %s2501_s22  }
 0x568 PF: > { %s2538_s26 = sand.u32 1, %s3298_s11   ;;  %p4037_p5 = scmp.ne.s32.totalorder %s4024_s27, 0 }
 0x569   : > { %p4038_p7 = scmp.ge.s32.totalorder %s3310_s14, 2  ;;  %s2539_s10 = scalar_lea.sflag [#allocation5], %s2538_s26 }
 0x56b   : > { %p2978_p11 = pnand %p4038_p7, %p4037_p5 }
 0x56d   : > { %p2979_p13 = pneg %p2978_p11 }
 0x56f   : > { %3289 = dma.done.wait (%p2979_p13), %s2539_s10, 32  }
 0x570   : > { %3291 = vsyncadd (%p2979_p13), %s2539_s10, 4294967264  ;;  %s2548_s23 = scalar_lea.sflag [#allocation18], %s2538_s26 }
 0x571   : > { %3293 = dma.done.wait (%p2979_p13), %s2548_s23, 16  }
 0x572   : > { %3295 = vsyncadd (%p2979_p13), %s2548_s23, 4294967280  ;;  %p31_p4 = scmp.ge.s32.totalorder %s3492_s20, 4   ;;  %s4039_s11 = smov %s3302_s12 }
 0x573   : > { %s4040_s12 = smov %s3306_s13  ;;  %s4041_s13 = smov %s3503_s30 }
 0x574   : > { %s4042_s14 = smov %s3492_s20  ;;  %33 = sbr.rel (!%p31_p4) target bundleno = 16 (0x10), region = 148 }
 0x579   :  { %2552 = vsyncpa [#allocation4], 1 }
 0x57a   :  { %2554 = vsyncpa [#allocation4 + $0x1], 1 }
 0x57b   :  { %2555 = vsyncpa [#allocation12], 1 }
 0x57c   :  { %2556 = vsyncpa [#allocation15], 1 }
 0x57d   :  { %2557 = vsyncpa [#allocation5], 1 }
 0x57e   :  { %2559 = vsyncpa [#allocation5 + $0x1], 1 }
 0x57f   :  { %2560 = vsyncpa [#allocation18], 1 }
 0x580   :  { %2562 = vsyncpa [#allocation18 + $0x1], 1 }
 0x581   :  { %2563 = vsyncpa [#allocation6], 1 }
 0x582   :  { %2565 = vsyncpa [#allocation6 + $0x1], 1 }
 0x583   :  { %2566 = vsyncpa [#allocation8], 1 }

</bundles_post_ra>
